<compile_context>
chip_gen: v7x
topology: tpu7x:2x2x1
jax: 0.10.0
libtpu: 0.0.40
codegen_flags: <defaults>
</compile_context>

<pallas_src>
import math

import jax
import jax.numpy as jnp
from jax.experimental import pallas as pl
from jax.experimental.pallas import tpu as pltpu

# ----------------------- small demo configuration ---------------------------
# (PyTorch defaults: dim=256, num_heads=8; here a lane-aligned small version.)
D = 128            # model dim
H = 8              # attention heads
DH = D // H        # per-head dim
B = 2              # batch
LQ = 8             # intra (query) sequence length
LK = 8             # inter (key/value) sequence length

NEG_INF = -1e9

# Row indices inside the packed (16, D) bias / LayerNorm slab.
_XQ_B, _XK_B, _XV_B, _XO_B = 0, 1, 2, 3       # cross-attn q/k/v/out biases
_SQ_B, _SK_B, _SV_B, _SO_B = 4, 5, 6, 7       # self-attn  q/k/v/out biases
_F1_B, _F2_B = 8, 9                           # feed-forward biases
_N1_G, _N1_B, _N2_G, _N2_B, _N3_G, _N3_B = 10, 11, 12, 13, 14, 15
_VEC_ROWS = 16


# ----------------------------- shared math core -------------------------------
def _row(vec, i):
    return vec[i:i + 1, :]                    # (1, D) static sublane slice


def _dotw(x, w):
    """Weight matmul: bf16 MXU operands, f32 accumulation (x stays f32 elsewhere)."""
    return jnp.dot(x.astype(w.dtype), w, preferred_element_type=jnp.float32)


def _layer_norm(x, g, b, eps=1e-5):
    mu = jnp.mean(x, axis=-1, keepdims=True)
    xc = x - mu
    var = jnp.mean(xc * xc, axis=-1, keepdims=True)
    return xc * jax.lax.rsqrt(var + eps) * g + b


def _mha(q, k, v, bias, w_out, ctx_ref, approx_recip):
    """Multi-head attention on token-flattened (batch-folded) operands.

    q: (Tq, D) f32, already scaled by 1/sqrt(DH) (folded into W_q / b_q).
    k, v: (Tk, D) f32.
    bias: (Tq, Tk) f32 additive bias (block-diag batch mask + key padding) or None.
    w_out: (D, D) bf16 out-projection, pre-transposed (in, out).
    ctx_ref: (Tq, D) f32 VMEM scratch (kernel path) or None (pure-JAX reference).
    Returns (Tq, D) f32 (out-projection bias NOT added here).
    """
    tq, d = q.shape
    dh = d // H
    kt = k.T                                            # ONE transpose per attention
    heads = [] if ctx_ref is None else None
    for h in range(H):                                  # static head loop
        sl = slice(h * dh, (h + 1) * dh)
        s = jnp.dot(q[:, sl], kt[sl, :], preferred_element_type=jnp.float32)
        if bias is not None:
            s = s + bias                                # full-shape add, no re-broadcast
        s = s - jnp.max(s, axis=-1, keepdims=True)
        p = jnp.exp(s)
        denom = jnp.sum(p, axis=-1, keepdims=True)
        if approx_recip:
            p = p * pl.reciprocal(denom, approx=True)   # EUP slot, frees the VALU
        else:
            p = p / denom
        a = jnp.dot(p, v[:, sl], preferred_element_type=jnp.float32)   # (Tq, DH)
        if ctx_ref is None:
            heads.append(a)
        else:
            ctx_ref[:, sl] = a                          # fill head's lane slice
    ctx = jnp.concatenate(heads, axis=-1) if ctx_ref is None else ctx_ref[...]
    return _dotw(ctx, w_out)                            # single K=D out-projection


def _block_core(x, inter, cross_bias, self_bias, mats, vec, ctx_ref, approx_recip):
    """Full StandardBlock math on token-flattened operands.

    x: (Tq, D) f32 intra tokens, inter: (Tk, D) f32, returns (Tq, D) f32.
    """
    xq_w, xkv_w, xo_w, sin_w, so_w, f1_w, f2_w = mats
    d = x.shape[-1]

    # ---- 1) cross attention (query=intra, key=value=inter) + residual + LN1
    q = _dotw(x, xq_w) + _row(vec, _XQ_B)
    kv = _dotw(inter, xkv_w)
    k = kv[:, :d] + _row(vec, _XK_B)
    v = kv[:, d:] + _row(vec, _XV_B)
    a = _mha(q, k, v, cross_bias, xo_w, ctx_ref, approx_recip) + _row(vec, _XO_B)
    x = _layer_norm(x + a, _row(vec, _N1_G), _row(vec, _N1_B))

    # ---- 2) self attention (PyTorch reuses inter_mask here) + residual + LN2
    qkv = _dotw(x, sin_w)
    q = qkv[:, :d] + _row(vec, _SQ_B)
    k = qkv[:, d:2 * d] + _row(vec, _SK_B)
    v = qkv[:, 2 * d:] + _row(vec, _SV_B)
    a = _mha(q, k, v, self_bias, so_w, ctx_ref, approx_recip) + _row(vec, _SO_B)
    x = _layer_norm(x + a, _row(vec, _N2_G), _row(vec, _N2_B))

    # ---- 3) ff2(relu(ff1(x))) + residual + LN3   (dropout = identity, eval mode)
    hdn = jnp.maximum(_dotw(x, f1_w) + _row(vec, _F1_B), 0.0)
    x = _layer_norm(x + _dotw(hdn, f2_w) + _row(vec, _F2_B),
                    _row(vec, _N3_G), _row(vec, _N3_B))
    return x


# --------------------------------- kernel ------------------------------------
def _make_kernel(use_bias, b_block, lq, lk, d):
    tq = b_block * lq
    tk = b_block * lk

    def kernel(*refs):
        if use_bias:
            (intra_ref, inter_ref, cbias_ref, sbias_ref,
             xq_w, xkv_w, xo_w, sin_w, so_w, f1_w, f2_w, vec_ref,
             out_ref, ctx_ref) = refs
            cross_bias = cbias_ref[...]
            self_bias = sbias_ref[...]
        else:
            (intra_ref, inter_ref,
             xq_w, xkv_w, xo_w, sin_w, so_w, f1_w, f2_w, vec_ref,
             out_ref, ctx_ref) = refs
            cross_bias = None
            self_bias = None

        x = intra_ref[...].reshape(tq, d)
        inter = inter_ref[...].reshape(tk, d)
        mats = (xq_w[...], xkv_w[...], xo_w[...], sin_w[...], so_w[...],
                f1_w[...], f2_w[...])
        y = _block_core(x, inter, cross_bias, self_bias, mats, vec_ref[...],
                        ctx_ref, approx_recip=True)
        out_ref[...] = y.reshape(b_block, lq, d)

    return kernel


# ------------------------- host-side parameter prep --------------------------
def _prepare_weights(params, d):
    """Fold the 1/sqrt(d_head) query scale into the q projections, split the
    cross-attention in_proj into W_q / W_kv, cast matmul weights to bf16
    (f32 accumulation in-kernel), and pack every (1, D)-sized bias / LayerNorm
    parameter into one (16, D) f32 slab."""
    dh = d // H
    inv = 1.0 / math.sqrt(dh)
    wdt = jnp.bfloat16

    xq_w = (params["cross_in_w"][:, :d] * inv).astype(wdt)
    xkv_w = params["cross_in_w"][:, d:].astype(wdt)
    qscale = jnp.concatenate(
        [jnp.full((1, d), inv, jnp.float32), jnp.ones((1, 2 * d), jnp.float32)],
        axis=1)
    sin_w = (params["self_in_w"] * qscale).astype(wdt)

    mats = (xq_w, xkv_w,
            params["cross_out_w"].astype(wdt),
            sin_w,
            params["self_out_w"].astype(wdt),
            params["ff1_w"].astype(wdt),
            params["ff2_w"].astype(wdt))

    cib = params["cross_in_b"]        # (1, 3D)
    sib = params["self_in_b"]         # (1, 3D)
    rows = [
        cib[:, :d] * inv,             # _XQ_B (scaled like W_q)
        cib[:, d:2 * d],              # _XK_B
        cib[:, 2 * d:],               # _XV_B
        params["cross_out_b"],        # _XO_B
        sib[:, :d] * inv,             # _SQ_B
        sib[:, d:2 * d],              # _SK_B
        sib[:, 2 * d:],               # _SV_B
        params["self_out_b"],         # _SO_B
        params["ff1_b"],              # _F1_B
        params["ff2_b"],              # _F2_B
        params["norm1_g"], params["norm1_b"],
        params["norm2_g"], params["norm2_b"],
        params["norm3_g"], params["norm3_b"],
    ]
    vec = jnp.concatenate(rows, axis=0).astype(jnp.float32)   # (16, D)
    assert vec.shape == (_VEC_ROWS, d)
    return mats, vec


def _build_attn_biases(inter_mask, b, lq, lk, b_block):
    """Additive attention biases for batch-folded scores.

    Combines the block-diagonal cross-batch mask (tokens only attend within
    their own batch element) with the optional key_padding_mask.  Returns
    (nblk*Tq, Tk_cross) and (nblk*Tq, Tq) f32 arrays."""
    nblk = b // b_block
    tq = b_block * lq
    tk = b_block * lk
    row_b = jnp.repeat(jnp.arange(b_block), lq)      # batch id per query row
    colk_b = jnp.repeat(jnp.arange(b_block), lk)     # batch id per cross key col
    cross_bd = jnp.where(row_b[:, None] == colk_b[None, :],
                         0.0, NEG_INF).astype(jnp.float32)
    self_bd = jnp.where(row_b[:, None] == row_b[None, :],
                        0.0, NEG_INF).astype(jnp.float32)
    if inter_mask is None:
        cross = jnp.broadcast_to(cross_bd[None], (nblk, tq, tk))
        self_ = jnp.broadcast_to(self_bd[None], (nblk, tq, tq))
    else:
        # PyTorch applies the same inter key_padding_mask to the self-attention
        # keys (length Lq) — only well-defined when Lq == Lk.
        assert lq == lk, "inter_mask reuse in self-attention requires Lq == Lk"
        pad = jnp.where(inter_mask, NEG_INF, 0.0).astype(jnp.float32)  # (B, Lk)
        pad = pad.reshape(nblk, 1, tk)               # keys flattened per block
        cross = cross_bd[None] + pad
        self_ = self_bd[None] + pad
    return cross.reshape(nblk * tq, tk), self_.reshape(nblk * tq, tq)


# ---------------------------- pallas_call wrapper -----------------------------
def standard_block(intra, inter, params, inter_mask=None, *, batch_block=None,
                   interpret=False):
    """StandardBlock forward (eval mode).

    intra: (B, Lq, D) f32, inter: (B, Lk, D) f32, inter_mask: optional (B, Lk)
    bool key_padding_mask (True = ignore key).  Returns (B, Lq, D) f32.

    batch_block=None processes the whole batch in a single grid step (best for
    small B*L); at production B*L set batch_block < B to pipeline activation
    DMAs against compute and (on v7x) use both TensorCores.
    """
    b, lq, d = intra.shape
    lk = inter.shape[1]
    assert d % H == 0 and d % 128 == 0, "model dim must be lane-aligned"
    if batch_block is None:
        batch_block = b
    assert b % batch_block == 0
    nblk = b // batch_block
    tq = batch_block * lq
    tk = batch_block * lk
    assert nblk == 1 or (tq % 8 == 0 and tk % 8 == 0), \
        "per-block token counts must be sublane-aligned when using a grid"

    # Static specialization: no bias inputs / adds at all when nothing is masked
    # and the batch dim is not folded across multiple elements.
    use_bias = (inter_mask is not None) or (batch_block > 1)

    mats, vec = _prepare_weights(params, d)

    def act_spec(seq):
        return pl.BlockSpec((batch_block, seq, d), lambda i: (i, 0, 0))

    def bias_spec(cols):
        return pl.BlockSpec((tq, cols), lambda i: (i, 0))

    def rep_spec(shape):
        nd = len(shape)
        return pl.BlockSpec(tuple(shape), lambda i: (0,) * nd)

    inputs = [intra, inter]
    in_specs = [act_spec(lq), act_spec(lk)]
    if use_bias:
        cross_bias, self_bias = _build_attn_biases(inter_mask, b, lq, lk,
                                                   batch_block)
        inputs += [cross_bias, self_bias]
        in_specs += [bias_spec(tk), bias_spec(tq)]
    inputs += list(mats) + [vec]
    in_specs += [rep_spec(m.shape) for m in mats] + [rep_spec(vec.shape)]

    kernel = _make_kernel(use_bias, batch_block, lq, lk, d)

    return pl.pallas_call(
        kernel,
        grid=(nblk,),
        in_specs=in_specs,
        out_specs=act_spec(lq),
        out_shape=jax.ShapeDtypeStruct((b, lq, d), jnp.float32),
        scratch_shapes=[pltpu.VMEM((tq, d), jnp.float32)],   # per-head ctx buffer
        compiler_params=pltpu.CompilerParams(
            dimension_semantics=("parallel",)),
        interpret=interpret,
    )(*inputs)


# ------------------------------ pure-JAX reference ----------------------------
def standard_block_reference(intra, inter, params, inter_mask=None):
    """Same math as the kernel (bf16 weights, f32 accumulation, same batch
    folding / masks), exact softmax divide instead of the approximate
    reciprocal, and jnp.concatenate instead of the VMEM context buffer."""
    b, lq, d = intra.shape
    lk = inter.shape[1]
    mats, vec = _prepare_weights(params, d)
    if (inter_mask is not None) or (b > 1):
        cross_bias, self_bias = _build_attn_biases(inter_mask, b, lq, lk, b)
    else:
        cross_bias = self_bias = None
    x = intra.reshape(b * lq, d)
    it = inter.reshape(b * lk, d)
    y = _block_core(x, it, cross_bias, self_bias, mats, vec, None,
                    approx_recip=False)
    return y.reshape(b, lq, d)


# --------------------------------- parameters ---------------------------------
def init_params(key, d=D):
    """Weights pre-transposed to (in, out); maps to nn.MultiheadAttention
    in_proj_weight^T / out_proj.weight^T and nn.Linear weight^T."""
    ks = jax.random.split(key, 12)
    s = 1.0 / math.sqrt(d)
    bs = 0.02
    p = {
        "cross_in_w": jax.random.normal(ks[0], (d, 3 * d), jnp.float32) * s,
        "cross_in_b": jax.random.normal(ks[1], (1, 3 * d), jnp.float32) * bs,
        "cross_out_w": jax.random.normal(ks[2], (d, d), jnp.float32) * s,
        "cross_out_b": jax.random.normal(ks[3], (1, d), jnp.float32) * bs,
        "self_in_w": jax.random.normal(ks[4], (d, 3 * d), jnp.float32) * s,
        "self_in_b": jax.random.normal(ks[5], (1, 3 * d), jnp.float32) * bs,
        "self_out_w": jax.random.normal(ks[6], (d, d), jnp.float32) * s,
        "self_out_b": jax.random.normal(ks[7], (1, d), jnp.float32) * bs,
        "ff1_w": jax.random.normal(ks[8], (d, d), jnp.float32) * s,
        "ff1_b": jax.random.normal(ks[9], (1, d), jnp.float32) * bs,
        "ff2_w": jax.random.normal(ks[10], (d, d), jnp.float32) * s,
        "ff2_b": jax.random.normal(ks[11], (1, d), jnp.float32) * bs,
    }
    for i in (1, 2, 3):
        p[f"norm{i}_g"] = jnp.ones((1, d), jnp.float32)
        p[f"norm{i}_b"] = jnp.zeros((1, d), jnp.float32)
    return p


# ------------------------------------ main ------------------------------------
if __name__ == "__main__":
    key = jax.random.PRNGKey(0)
    k_intra, k_inter, k_params = jax.random.split(key, 3)

    intra = jax.random.normal(k_intra, (B, LQ, D), jnp.float32)
    inter = jax.random.normal(k_inter, (B, LK, D), jnp.float32)
    params = init_params(k_params, D)

    out = standard_block(intra, inter, params)          # eval mode, inter_mask=None
    out = jax.block_until_ready(out)
    assert out.shape == (B, LQ, D) and out.dtype == jnp.float32

    ref = jax.block_until_ready(standard_block_reference(intra, inter, params))
    max_err = float(jnp.max(jnp.abs(out - ref)))
    assert max_err < 5e-2, f"kernel/reference mismatch: max |err| = {max_err}"

    # Also exercise the masked path (padding on the last two inter tokens).
    mask = jnp.zeros((B, LK), bool).at[:, -2:].set(True)
    out_m = jax.block_until_ready(standard_block(intra, inter, params, mask))
    ref_m = jax.block_until_ready(
        standard_block_reference(intra, inter, params, mask))
    max_err_m = float(jnp.max(jnp.abs(out_m - ref_m)))
    assert max_err_m < 5e-2, f"masked mismatch: max |err| = {max_err_m}"

    print("KERNEL_OK")
</pallas_src>

<mosaic_0001>
module attributes {stable_mosaic.version = 11 : i64} {
  func.func @kernel(%arg0: i32, %arg1: memref<2x8x128xf32, #tpu.memory_space<vmem>>, %arg2: memref<2x8x128xf32, #tpu.memory_space<vmem>>, %arg3: memref<16x16xf32, #tpu.memory_space<vmem>>, %arg4: memref<16x16xf32, #tpu.memory_space<vmem>>, %arg5: memref<128x128xbf16, #tpu.memory_space<vmem>>, %arg6: memref<128x256xbf16, #tpu.memory_space<vmem>>, %arg7: memref<128x128xbf16, #tpu.memory_space<vmem>>, %arg8: memref<128x384xbf16, #tpu.memory_space<vmem>>, %arg9: memref<128x128xbf16, #tpu.memory_space<vmem>>, %arg10: memref<128x128xbf16, #tpu.memory_space<vmem>>, %arg11: memref<128x128xbf16, #tpu.memory_space<vmem>>, %arg12: memref<16x128xf32, #tpu.memory_space<vmem>>, %arg13: memref<2x8x128xf32, #tpu.memory_space<vmem>>, %arg14: memref<16x128xf32, #tpu.memory_space<vmem>>) attributes {dimension_semantics = [#tpu.dimension_semantics<parallel>], iteration_bounds = array<i64: 1>, scalar_prefetch = 0 : i64, scratch_operands = 1 : i64, tpu.core_type = #tpu.core_type<tc>, window_params = [{transform_indices = @transform_0, window_bounds = array<i64: 2, 8, 128>}, {transform_indices = @transform_1, window_bounds = array<i64: 2, 8, 128>}, {transform_indices = @transform_2, window_bounds = array<i64: 16, 16>}, {transform_indices = @transform_3, window_bounds = array<i64: 16, 16>}, {pipeline_mode = #tpu.pipeline_mode<synchronous>, transform_indices = @transform_4, window_bounds = array<i64: 128, 128>}, {pipeline_mode = #tpu.pipeline_mode<synchronous>, transform_indices = @transform_5, window_bounds = array<i64: 128, 256>}, {pipeline_mode = #tpu.pipeline_mode<synchronous>, transform_indices = @transform_6, window_bounds = array<i64: 128, 128>}, {pipeline_mode = #tpu.pipeline_mode<synchronous>, transform_indices = @transform_7, window_bounds = array<i64: 128, 384>}, {pipeline_mode = #tpu.pipeline_mode<synchronous>, transform_indices = @transform_8, window_bounds = array<i64: 128, 128>}, {pipeline_mode = #tpu.pipeline_mode<synchronous>, transform_indices = @transform_9, window_bounds = array<i64: 128, 128>}, {pipeline_mode = #tpu.pipeline_mode<synchronous>, transform_indices = @transform_10, window_bounds = array<i64: 128, 128>}, {pipeline_mode = #tpu.pipeline_mode<synchronous>, transform_indices = @transform_11, window_bounds = array<i64: 16, 128>}, {transform_indices = @transform_12, window_bounds = array<i64: 2, 8, 128>}]} {
    %c0 = arith.constant 0 : index
    %c0_0 = arith.constant 0 : index
    %0 = vector.load %arg3[%c0, %c0_0] : memref<16x16xf32, #tpu.memory_space<vmem>>, vector<16x16xf32>
    %c0_1 = arith.constant 0 : index
    %c0_2 = arith.constant 0 : index
    %1 = vector.load %arg4[%c0_1, %c0_2] : memref<16x16xf32, #tpu.memory_space<vmem>>, vector<16x16xf32>
    %c0_3 = arith.constant 0 : index
    %c0_4 = arith.constant 0 : index
    %c0_5 = arith.constant 0 : index
    %2 = vector.load %arg1[%c0_3, %c0_4, %c0_5] : memref<2x8x128xf32, #tpu.memory_space<vmem>>, vector<2x8x128xf32>
    %3 = vector.shape_cast %2 : vector<2x8x128xf32> to vector<16x128xf32>
    %c0_6 = arith.constant 0 : index
    %c0_7 = arith.constant 0 : index
    %c0_8 = arith.constant 0 : index
    %4 = vector.load %arg2[%c0_6, %c0_7, %c0_8] : memref<2x8x128xf32, #tpu.memory_space<vmem>>, vector<2x8x128xf32>
    %5 = vector.shape_cast %4 : vector<2x8x128xf32> to vector<16x128xf32>
    %c0_9 = arith.constant 0 : index
    %c0_10 = arith.constant 0 : index
    %6 = vector.load %arg5[%c0_9, %c0_10] : memref<128x128xbf16, #tpu.memory_space<vmem>>, vector<128x128xbf16>
    %c0_11 = arith.constant 0 : index
    %c0_12 = arith.constant 0 : index
    %7 = vector.load %arg6[%c0_11, %c0_12] : memref<128x256xbf16, #tpu.memory_space<vmem>>, vector<128x256xbf16>
    %c0_13 = arith.constant 0 : index
    %c0_14 = arith.constant 0 : index
    %8 = vector.load %arg7[%c0_13, %c0_14] : memref<128x128xbf16, #tpu.memory_space<vmem>>, vector<128x128xbf16>
    %c0_15 = arith.constant 0 : index
    %c0_16 = arith.constant 0 : index
    %9 = vector.load %arg8[%c0_15, %c0_16] : memref<128x384xbf16, #tpu.memory_space<vmem>>, vector<128x384xbf16>
    %c0_17 = arith.constant 0 : index
    %c0_18 = arith.constant 0 : index
    %10 = vector.load %arg9[%c0_17, %c0_18] : memref<128x128xbf16, #tpu.memory_space<vmem>>, vector<128x128xbf16>
    %c0_19 = arith.constant 0 : index
    %c0_20 = arith.constant 0 : index
    %11 = vector.load %arg10[%c0_19, %c0_20] : memref<128x128xbf16, #tpu.memory_space<vmem>>, vector<128x128xbf16>
    %c0_21 = arith.constant 0 : index
    %c0_22 = arith.constant 0 : index
    %12 = vector.load %arg11[%c0_21, %c0_22] : memref<128x128xbf16, #tpu.memory_space<vmem>>, vector<128x128xbf16>
    %c0_23 = arith.constant 0 : index
    %c0_24 = arith.constant 0 : index
    %13 = vector.load %arg12[%c0_23, %c0_24] : memref<16x128xf32, #tpu.memory_space<vmem>>, vector<16x128xf32>
    %14 = arith.truncf %3 : vector<16x128xf32> to vector<16x128xbf16>
    %cst = arith.constant dense<0.000000e+00> : vector<16x128xf32>
    %15 = tpu.matmul %14, %6, %cst {dimension_numbers = #tpu.dot_dimension_numbers<[1], [0], [0], [1], [0, 0, 1, 1], [], []>} : vector<16x128xbf16>, vector<128x128xbf16>, vector<16x128xf32> -> vector<16x128xf32>
    %16 = vector.extract_strided_slice %13 {offsets = [0, 0], sizes = [1, 128], strides = [1, 1]} : vector<16x128xf32> to vector<1x128xf32>
    %17 = vector.broadcast %16 : vector<1x128xf32> to vector<16x128xf32>
    %18 = arith.addf %15, %17 : vector<16x128xf32>
    %19 = arith.truncf %5 : vector<16x128xf32> to vector<16x128xbf16>
    %cst_25 = arith.constant dense<0.000000e+00> : vector<16x256xf32>
    %20 = tpu.matmul %19, %7, %cst_25 {dimension_numbers = #tpu.dot_dimension_numbers<[1], [0], [0], [1], [0, 0, 1, 1], [], []>} : vector<16x128xbf16>, vector<128x256xbf16>, vector<16x256xf32> -> vector<16x256xf32>
    %21 = vector.extract_strided_slice %20 {offsets = [0, 0], sizes = [16, 128], strides = [1, 1]} : vector<16x256xf32> to vector<16x128xf32>
    %22 = vector.extract_strided_slice %13 {offsets = [1, 0], sizes = [1, 128], strides = [1, 1]} : vector<16x128xf32> to vector<1x128xf32>
    %23 = vector.broadcast %22 : vector<1x128xf32> to vector<16x128xf32>
    %24 = arith.addf %21, %23 : vector<16x128xf32>
    %25 = vector.extract_strided_slice %20 {offsets = [0, 128], sizes = [16, 128], strides = [1, 1]} : vector<16x256xf32> to vector<16x128xf32>
    %26 = vector.extract_strided_slice %13 {offsets = [2, 0], sizes = [1, 128], strides = [1, 1]} : vector<16x128xf32> to vector<1x128xf32>
    %27 = vector.broadcast %26 : vector<1x128xf32> to vector<16x128xf32>
    %28 = arith.addf %25, %27 : vector<16x128xf32>
    %29 = tpu.transpose %24, [1, 0] : vector<16x128xf32> -> vector<128x16xf32>
    %30 = vector.extract_strided_slice %18 {offsets = [0, 0], sizes = [16, 16], strides = [1, 1]} : vector<16x128xf32> to vector<16x16xf32>
    %31 = vector.extract_strided_slice %29 {offsets = [0, 0], sizes = [16, 16], strides = [1, 1]} : vector<128x16xf32> to vector<16x16xf32>
    %cst_26 = arith.constant dense<0.000000e+00> : vector<16x16xf32>
    %32 = tpu.matmul %30, %31, %cst_26 {dimension_numbers = #tpu.dot_dimension_numbers<[1], [0], [0], [1], [0, 0, 1, 1], [], []>} : vector<16x16xf32>, vector<16x16xf32>, vector<16x16xf32> -> vector<16x16xf32>
    %33 = arith.addf %32, %0 : vector<16x16xf32>
    %cst_27 = arith.constant dense<0xFF800000> : vector<16xf32>
    %34 = vector.multi_reduction <maximumf>, %33, %cst_27 [1] : vector<16x16xf32> to vector<16xf32>
    %35 = vector.shape_cast %34 : vector<16xf32> to vector<16x1xf32>
    %36 = vector.broadcast %35 : vector<16x1xf32> to vector<16x16xf32>
    %37 = arith.subf %33, %36 : vector<16x16xf32>
    %38 = math.exp %37 : vector<16x16xf32>
    %cst_28 = arith.constant dense<0.000000e+00> : vector<16xf32>
    %39 = vector.multi_reduction <add>, %38, %cst_28 [1] : vector<16x16xf32> to vector<16xf32>
    %40 = vector.shape_cast %39 : vector<16xf32> to vector<16x1xf32>
    %41 = tpu.reciprocal %40 {approx = true} : vector<16x1xf32> -> vector<16x1xf32>
    %42 = vector.broadcast %41 : vector<16x1xf32> to vector<16x16xf32>
    %43 = arith.mulf %38, %42 : vector<16x16xf32>
    %44 = vector.extract_strided_slice %28 {offsets = [0, 0], sizes = [16, 16], strides = [1, 1]} : vector<16x128xf32> to vector<16x16xf32>
    %cst_29 = arith.constant dense<0.000000e+00> : vector<16x16xf32>
    %45 = tpu.matmul %43, %44, %cst_29 {dimension_numbers = #tpu.dot_dimension_numbers<[1], [0], [0], [1], [0, 0, 1, 1], [], []>} : vector<16x16xf32>, vector<16x16xf32>, vector<16x16xf32> -> vector<16x16xf32>
    %c0_30 = arith.constant 0 : index
    %c0_31 = arith.constant 0 : index
    %46 = vector.load %arg14[%c0_30, %c0_31] : memref<16x128xf32, #tpu.memory_space<vmem>>, vector<16x16xf32>
    tpu.vector_store %arg14[%c0_30, %c0_31], %45 {strides = array<i32>} : memref<16x128xf32, #tpu.memory_space<vmem>>, vector<16x16xf32>,
    %47 = vector.extract_strided_slice %18 {offsets = [0, 16], sizes = [16, 16], strides = [1, 1]} : vector<16x128xf32> to vector<16x16xf32>
    %48 = vector.extract_strided_slice %29 {offsets = [16, 0], sizes = [16, 16], strides = [1, 1]} : vector<128x16xf32> to vector<16x16xf32>
    %cst_32 = arith.constant dense<0.000000e+00> : vector<16x16xf32>
    %49 = tpu.matmul %47, %48, %cst_32 {dimension_numbers = #tpu.dot_dimension_numbers<[1], [0], [0], [1], [0, 0, 1, 1], [], []>} : vector<16x16xf32>, vector<16x16xf32>, vector<16x16xf32> -> vector<16x16xf32>
    %50 = arith.addf %49, %0 : vector<16x16xf32>
    %cst_33 = arith.constant dense<0xFF800000> : vector<16xf32>
    %51 = vector.multi_reduction <maximumf>, %50, %cst_33 [1] : vector<16x16xf32> to vector<16xf32>
    %52 = vector.shape_cast %51 : vector<16xf32> to vector<16x1xf32>
    %53 = vector.broadcast %52 : vector<16x1xf32> to vector<16x16xf32>
    %54 = arith.subf %50, %53 : vector<16x16xf32>
    %55 = math.exp %54 : vector<16x16xf32>
    %cst_34 = arith.constant dense<0.000000e+00> : vector<16xf32>
    %56 = vector.multi_reduction <add>, %55, %cst_34 [1] : vector<16x16xf32> to vector<16xf32>
    %57 = vector.shape_cast %56 : vector<16xf32> to vector<16x1xf32>
    %58 = tpu.reciprocal %57 {approx = true} : vector<16x1xf32> -> vector<16x1xf32>
    %59 = vector.broadcast %58 : vector<16x1xf32> to vector<16x16xf32>
    %60 = arith.mulf %55, %59 : vector<16x16xf32>
    %61 = vector.extract_strided_slice %28 {offsets = [0, 16], sizes = [16, 16], strides = [1, 1]} : vector<16x128xf32> to vector<16x16xf32>
    %cst_35 = arith.constant dense<0.000000e+00> : vector<16x16xf32>
    %62 = tpu.matmul %60, %61, %cst_35 {dimension_numbers = #tpu.dot_dimension_numbers<[1], [0], [0], [1], [0, 0, 1, 1], [], []>} : vector<16x16xf32>, vector<16x16xf32>, vector<16x16xf32> -> vector<16x16xf32>
    %c0_36 = arith.constant 0 : index
    %c16 = arith.constant 16 : index
    %63 = vector.load %arg14[%c0_36, %c16] : memref<16x128xf32, #tpu.memory_space<vmem>>, vector<16x16xf32>
    tpu.vector_store %arg14[%c0_36, %c16], %62 {strides = array<i32>} : memref<16x128xf32, #tpu.memory_space<vmem>>, vector<16x16xf32>,
    %64 = vector.extract_strided_slice %18 {offsets = [0, 32], sizes = [16, 16], strides = [1, 1]} : vector<16x128xf32> to vector<16x16xf32>
    %65 = vector.extract_strided_slice %29 {offsets = [32, 0], sizes = [16, 16], strides = [1, 1]} : vector<128x16xf32> to vector<16x16xf32>
    %cst_37 = arith.constant dense<0.000000e+00> : vector<16x16xf32>
    %66 = tpu.matmul %64, %65, %cst_37 {dimension_numbers = #tpu.dot_dimension_numbers<[1], [0], [0], [1], [0, 0, 1, 1], [], []>} : vector<16x16xf32>, vector<16x16xf32>, vector<16x16xf32> -> vector<16x16xf32>
    %67 = arith.addf %66, %0 : vector<16x16xf32>
    %cst_38 = arith.constant dense<0xFF800000> : vector<16xf32>
    %68 = vector.multi_reduction <maximumf>, %67, %cst_38 [1] : vector<16x16xf32> to vector<16xf32>
    %69 = vector.shape_cast %68 : vector<16xf32> to vector<16x1xf32>
    %70 = vector.broadcast %69 : vector<16x1xf32> to vector<16x16xf32>
    %71 = arith.subf %67, %70 : vector<16x16xf32>
    %72 = math.exp %71 : vector<16x16xf32>
    %cst_39 = arith.constant dense<0.000000e+00> : vector<16xf32>
    %73 = vector.multi_reduction <add>, %72, %cst_39 [1] : vector<16x16xf32> to vector<16xf32>
    %74 = vector.shape_cast %73 : vector<16xf32> to vector<16x1xf32>
    %75 = tpu.reciprocal %74 {approx = true} : vector<16x1xf32> -> vector<16x1xf32>
    %76 = vector.broadcast %75 : vector<16x1xf32> to vector<16x16xf32>
    %77 = arith.mulf %72, %76 : vector<16x16xf32>
    %78 = vector.extract_strided_slice %28 {offsets = [0, 32], sizes = [16, 16], strides = [1, 1]} : vector<16x128xf32> to vector<16x16xf32>
    %cst_40 = arith.constant dense<0.000000e+00> : vector<16x16xf32>
    %79 = tpu.matmul %77, %78, %cst_40 {dimension_numbers = #tpu.dot_dimension_numbers<[1], [0], [0], [1], [0, 0, 1, 1], [], []>} : vector<16x16xf32>, vector<16x16xf32>, vector<16x16xf32> -> vector<16x16xf32>
    %c0_41 = arith.constant 0 : index
    %c32 = arith.constant 32 : index
    %80 = vector.load %arg14[%c0_41, %c32] : memref<16x128xf32, #tpu.memory_space<vmem>>, vector<16x16xf32>
    tpu.vector_store %arg14[%c0_41, %c32], %79 {strides = array<i32>} : memref<16x128xf32, #tpu.memory_space<vmem>>, vector<16x16xf32>,
    %81 = vector.extract_strided_slice %18 {offsets = [0, 48], sizes = [16, 16], strides = [1, 1]} : vector<16x128xf32> to vector<16x16xf32>
    %82 = vector.extract_strided_slice %29 {offsets = [48, 0], sizes = [16, 16], strides = [1, 1]} : vector<128x16xf32> to vector<16x16xf32>
    %cst_42 = arith.constant dense<0.000000e+00> : vector<16x16xf32>
    %83 = tpu.matmul %81, %82, %cst_42 {dimension_numbers = #tpu.dot_dimension_numbers<[1], [0], [0], [1], [0, 0, 1, 1], [], []>} : vector<16x16xf32>, vector<16x16xf32>, vector<16x16xf32> -> vector<16x16xf32>
    %84 = arith.addf %83, %0 : vector<16x16xf32>
    %cst_43 = arith.constant dense<0xFF800000> : vector<16xf32>
    %85 = vector.multi_reduction <maximumf>, %84, %cst_43 [1] : vector<16x16xf32> to vector<16xf32>
    %86 = vector.shape_cast %85 : vector<16xf32> to vector<16x1xf32>
    %87 = vector.broadcast %86 : vector<16x1xf32> to vector<16x16xf32>
    %88 = arith.subf %84, %87 : vector<16x16xf32>
    %89 = math.exp %88 : vector<16x16xf32>
    %cst_44 = arith.constant dense<0.000000e+00> : vector<16xf32>
    %90 = vector.multi_reduction <add>, %89, %cst_44 [1] : vector<16x16xf32> to vector<16xf32>
    %91 = vector.shape_cast %90 : vector<16xf32> to vector<16x1xf32>
    %92 = tpu.reciprocal %91 {approx = true} : vector<16x1xf32> -> vector<16x1xf32>
    %93 = vector.broadcast %92 : vector<16x1xf32> to vector<16x16xf32>
    %94 = arith.mulf %89, %93 : vector<16x16xf32>
    %95 = vector.extract_strided_slice %28 {offsets = [0, 48], sizes = [16, 16], strides = [1, 1]} : vector<16x128xf32> to vector<16x16xf32>
    %cst_45 = arith.constant dense<0.000000e+00> : vector<16x16xf32>
    %96 = tpu.matmul %94, %95, %cst_45 {dimension_numbers = #tpu.dot_dimension_numbers<[1], [0], [0], [1], [0, 0, 1, 1], [], []>} : vector<16x16xf32>, vector<16x16xf32>, vector<16x16xf32> -> vector<16x16xf32>
    %c0_46 = arith.constant 0 : index
    %c48 = arith.constant 48 : index
    %97 = vector.load %arg14[%c0_46, %c48] : memref<16x128xf32, #tpu.memory_space<vmem>>, vector<16x16xf32>
    tpu.vector_store %arg14[%c0_46, %c48], %96 {strides = array<i32>} : memref<16x128xf32, #tpu.memory_space<vmem>>, vector<16x16xf32>,
    %98 = vector.extract_strided_slice %18 {offsets = [0, 64], sizes = [16, 16], strides = [1, 1]} : vector<16x128xf32> to vector<16x16xf32>
    %99 = vector.extract_strided_slice %29 {offsets = [64, 0], sizes = [16, 16], strides = [1, 1]} : vector<128x16xf32> to vector<16x16xf32>
    %cst_47 = arith.constant dense<0.000000e+00> : vector<16x16xf32>
    %100 = tpu.matmul %98, %99, %cst_47 {dimension_numbers = #tpu.dot_dimension_numbers<[1], [0], [0], [1], [0, 0, 1, 1], [], []>} : vector<16x16xf32>, vector<16x16xf32>, vector<16x16xf32> -> vector<16x16xf32>
    %101 = arith.addf %100, %0 : vector<16x16xf32>
    %cst_48 = arith.constant dense<0xFF800000> : vector<16xf32>
    %102 = vector.multi_reduction <maximumf>, %101, %cst_48 [1] : vector<16x16xf32> to vector<16xf32>
    %103 = vector.shape_cast %102 : vector<16xf32> to vector<16x1xf32>
    %104 = vector.broadcast %103 : vector<16x1xf32> to vector<16x16xf32>
    %105 = arith.subf %101, %104 : vector<16x16xf32>
    %106 = math.exp %105 : vector<16x16xf32>
    %cst_49 = arith.constant dense<0.000000e+00> : vector<16xf32>
    %107 = vector.multi_reduction <add>, %106, %cst_49 [1] : vector<16x16xf32> to vector<16xf32>
    %108 = vector.shape_cast %107 : vector<16xf32> to vector<16x1xf32>
    %109 = tpu.reciprocal %108 {approx = true} : vector<16x1xf32> -> vector<16x1xf32>
    %110 = vector.broadcast %109 : vector<16x1xf32> to vector<16x16xf32>
    %111 = arith.mulf %106, %110 : vector<16x16xf32>
    %112 = vector.extract_strided_slice %28 {offsets = [0, 64], sizes = [16, 16], strides = [1, 1]} : vector<16x128xf32> to vector<16x16xf32>
    %cst_50 = arith.constant dense<0.000000e+00> : vector<16x16xf32>
    %113 = tpu.matmul %111, %112, %cst_50 {dimension_numbers = #tpu.dot_dimension_numbers<[1], [0], [0], [1], [0, 0, 1, 1], [], []>} : vector<16x16xf32>, vector<16x16xf32>, vector<16x16xf32> -> vector<16x16xf32>
    %c0_51 = arith.constant 0 : index
    %c64 = arith.constant 64 : index
    %114 = vector.load %arg14[%c0_51, %c64] : memref<16x128xf32, #tpu.memory_space<vmem>>, vector<16x16xf32>
    tpu.vector_store %arg14[%c0_51, %c64], %113 {strides = array<i32>} : memref<16x128xf32, #tpu.memory_space<vmem>>, vector<16x16xf32>,
    %115 = vector.extract_strided_slice %18 {offsets = [0, 80], sizes = [16, 16], strides = [1, 1]} : vector<16x128xf32> to vector<16x16xf32>
    %116 = vector.extract_strided_slice %29 {offsets = [80, 0], sizes = [16, 16], strides = [1, 1]} : vector<128x16xf32> to vector<16x16xf32>
    %cst_52 = arith.constant dense<0.000000e+00> : vector<16x16xf32>
    %117 = tpu.matmul %115, %116, %cst_52 {dimension_numbers = #tpu.dot_dimension_numbers<[1], [0], [0], [1], [0, 0, 1, 1], [], []>} : vector<16x16xf32>, vector<16x16xf32>, vector<16x16xf32> -> vector<16x16xf32>
    %118 = arith.addf %117, %0 : vector<16x16xf32>
    %cst_53 = arith.constant dense<0xFF800000> : vector<16xf32>
    %119 = vector.multi_reduction <maximumf>, %118, %cst_53 [1] : vector<16x16xf32> to vector<16xf32>
    %120 = vector.shape_cast %119 : vector<16xf32> to vector<16x1xf32>
    %121 = vector.broadcast %120 : vector<16x1xf32> to vector<16x16xf32>
    %122 = arith.subf %118, %121 : vector<16x16xf32>
    %123 = math.exp %122 : vector<16x16xf32>
    %cst_54 = arith.constant dense<0.000000e+00> : vector<16xf32>
    %124 = vector.multi_reduction <add>, %123, %cst_54 [1] : vector<16x16xf32> to vector<16xf32>
    %125 = vector.shape_cast %124 : vector<16xf32> to vector<16x1xf32>
    %126 = tpu.reciprocal %125 {approx = true} : vector<16x1xf32> -> vector<16x1xf32>
    %127 = vector.broadcast %126 : vector<16x1xf32> to vector<16x16xf32>
    %128 = arith.mulf %123, %127 : vector<16x16xf32>
    %129 = vector.extract_strided_slice %28 {offsets = [0, 80], sizes = [16, 16], strides = [1, 1]} : vector<16x128xf32> to vector<16x16xf32>
    %cst_55 = arith.constant dense<0.000000e+00> : vector<16x16xf32>
    %130 = tpu.matmul %128, %129, %cst_55 {dimension_numbers = #tpu.dot_dimension_numbers<[1], [0], [0], [1], [0, 0, 1, 1], [], []>} : vector<16x16xf32>, vector<16x16xf32>, vector<16x16xf32> -> vector<16x16xf32>
    %c0_56 = arith.constant 0 : index
    %c80 = arith.constant 80 : index
    %131 = vector.load %arg14[%c0_56, %c80] : memref<16x128xf32, #tpu.memory_space<vmem>>, vector<16x16xf32>
    tpu.vector_store %arg14[%c0_56, %c80], %130 {strides = array<i32>} : memref<16x128xf32, #tpu.memory_space<vmem>>, vector<16x16xf32>,
    %132 = vector.extract_strided_slice %18 {offsets = [0, 96], sizes = [16, 16], strides = [1, 1]} : vector<16x128xf32> to vector<16x16xf32>
    %133 = vector.extract_strided_slice %29 {offsets = [96, 0], sizes = [16, 16], strides = [1, 1]} : vector<128x16xf32> to vector<16x16xf32>
    %cst_57 = arith.constant dense<0.000000e+00> : vector<16x16xf32>
    %134 = tpu.matmul %132, %133, %cst_57 {dimension_numbers = #tpu.dot_dimension_numbers<[1], [0], [0], [1], [0, 0, 1, 1], [], []>} : vector<16x16xf32>, vector<16x16xf32>, vector<16x16xf32> -> vector<16x16xf32>
    %135 = arith.addf %134, %0 : vector<16x16xf32>
    %cst_58 = arith.constant dense<0xFF800000> : vector<16xf32>
    %136 = vector.multi_reduction <maximumf>, %135, %cst_58 [1] : vector<16x16xf32> to vector<16xf32>
    %137 = vector.shape_cast %136 : vector<16xf32> to vector<16x1xf32>
    %138 = vector.broadcast %137 : vector<16x1xf32> to vector<16x16xf32>
    %139 = arith.subf %135, %138 : vector<16x16xf32>
    %140 = math.exp %139 : vector<16x16xf32>
    %cst_59 = arith.constant dense<0.000000e+00> : vector<16xf32>
    %141 = vector.multi_reduction <add>, %140, %cst_59 [1] : vector<16x16xf32> to vector<16xf32>
    %142 = vector.shape_cast %141 : vector<16xf32> to vector<16x1xf32>
    %143 = tpu.reciprocal %142 {approx = true} : vector<16x1xf32> -> vector<16x1xf32>
    %144 = vector.broadcast %143 : vector<16x1xf32> to vector<16x16xf32>
    %145 = arith.mulf %140, %144 : vector<16x16xf32>
    %146 = vector.extract_strided_slice %28 {offsets = [0, 96], sizes = [16, 16], strides = [1, 1]} : vector<16x128xf32> to vector<16x16xf32>
    %cst_60 = arith.constant dense<0.000000e+00> : vector<16x16xf32>
    %147 = tpu.matmul %145, %146, %cst_60 {dimension_numbers = #tpu.dot_dimension_numbers<[1], [0], [0], [1], [0, 0, 1, 1], [], []>} : vector<16x16xf32>, vector<16x16xf32>, vector<16x16xf32> -> vector<16x16xf32>
    %c0_61 = arith.constant 0 : index
    %c96 = arith.constant 96 : index
    %148 = vector.load %arg14[%c0_61, %c96] : memref<16x128xf32, #tpu.memory_space<vmem>>, vector<16x16xf32>
    tpu.vector_store %arg14[%c0_61, %c96], %147 {strides = array<i32>} : memref<16x128xf32, #tpu.memory_space<vmem>>, vector<16x16xf32>,
    %149 = vector.extract_strided_slice %18 {offsets = [0, 112], sizes = [16, 16], strides = [1, 1]} : vector<16x128xf32> to vector<16x16xf32>
    %150 = vector.extract_strided_slice %29 {offsets = [112, 0], sizes = [16, 16], strides = [1, 1]} : vector<128x16xf32> to vector<16x16xf32>
    %cst_62 = arith.constant dense<0.000000e+00> : vector<16x16xf32>
    %151 = tpu.matmul %149, %150, %cst_62 {dimension_numbers = #tpu.dot_dimension_numbers<[1], [0], [0], [1], [0, 0, 1, 1], [], []>} : vector<16x16xf32>, vector<16x16xf32>, vector<16x16xf32> -> vector<16x16xf32>
    %152 = arith.addf %151, %0 : vector<16x16xf32>
    %cst_63 = arith.constant dense<0xFF800000> : vector<16xf32>
    %153 = vector.multi_reduction <maximumf>, %152, %cst_63 [1] : vector<16x16xf32> to vector<16xf32>
    %154 = vector.shape_cast %153 : vector<16xf32> to vector<16x1xf32>
    %155 = vector.broadcast %154 : vector<16x1xf32> to vector<16x16xf32>
    %156 = arith.subf %152, %155 : vector<16x16xf32>
    %157 = math.exp %156 : vector<16x16xf32>
    %cst_64 = arith.constant dense<0.000000e+00> : vector<16xf32>
    %158 = vector.multi_reduction <add>, %157, %cst_64 [1] : vector<16x16xf32> to vector<16xf32>
    %159 = vector.shape_cast %158 : vector<16xf32> to vector<16x1xf32>
    %160 = tpu.reciprocal %159 {approx = true} : vector<16x1xf32> -> vector<16x1xf32>
    %161 = vector.broadcast %160 : vector<16x1xf32> to vector<16x16xf32>
    %162 = arith.mulf %157, %161 : vector<16x16xf32>
    %163 = vector.extract_strided_slice %28 {offsets = [0, 112], sizes = [16, 16], strides = [1, 1]} : vector<16x128xf32> to vector<16x16xf32>
    %cst_65 = arith.constant dense<0.000000e+00> : vector<16x16xf32>
    %164 = tpu.matmul %162, %163, %cst_65 {dimension_numbers = #tpu.dot_dimension_numbers<[1], [0], [0], [1], [0, 0, 1, 1], [], []>} : vector<16x16xf32>, vector<16x16xf32>, vector<16x16xf32> -> vector<16x16xf32>
    %c0_66 = arith.constant 0 : index
    %c112 = arith.constant 112 : index
    %165 = vector.load %arg14[%c0_66, %c112] : memref<16x128xf32, #tpu.memory_space<vmem>>, vector<16x16xf32>
    tpu.vector_store %arg14[%c0_66, %c112], %164 {strides = array<i32>} : memref<16x128xf32, #tpu.memory_space<vmem>>, vector<16x16xf32>,
    %c0_67 = arith.constant 0 : index
    %c0_68 = arith.constant 0 : index
    %166 = vector.load %arg14[%c0_67, %c0_68] : memref<16x128xf32, #tpu.memory_space<vmem>>, vector<16x128xf32>
    %167 = arith.truncf %166 : vector<16x128xf32> to vector<16x128xbf16>
    %cst_69 = arith.constant dense<0.000000e+00> : vector<16x128xf32>
    %168 = tpu.matmul %167, %8, %cst_69 {dimension_numbers = #tpu.dot_dimension_numbers<[1], [0], [0], [1], [0, 0, 1, 1], [], []>} : vector<16x128xbf16>, vector<128x128xbf16>, vector<16x128xf32> -> vector<16x128xf32>
    %169 = vector.extract_strided_slice %13 {offsets = [3, 0], sizes = [1, 128], strides = [1, 1]} : vector<16x128xf32> to vector<1x128xf32>
    %170 = vector.broadcast %169 : vector<1x128xf32> to vector<16x128xf32>
    %171 = arith.addf %168, %170 : vector<16x128xf32>
    %172 = arith.addf %3, %171 : vector<16x128xf32>
    %173 = vector.extract_strided_slice %13 {offsets = [10, 0], sizes = [1, 128], strides = [1, 1]} : vector<16x128xf32> to vector<1x128xf32>
    %174 = vector.extract_strided_slice %13 {offsets = [11, 0], sizes = [1, 128], strides = [1, 1]} : vector<16x128xf32> to vector<1x128xf32>
    %cst_70 = arith.constant dense<0.000000e+00> : vector<16xf32>
    %175 = vector.multi_reduction <add>, %172, %cst_70 [1] : vector<16x128xf32> to vector<16xf32>
    %176 = vector.shape_cast %175 : vector<16xf32> to vector<16x1xf32>
    %cst_71 = arith.constant 1.280000e+02 : f32
    %177 = vector.broadcast %cst_71 : f32 to vector<16x1xf32>
    %178 = arith.divf %176, %177 : vector<16x1xf32>
    %179 = vector.broadcast %178 : vector<16x1xf32> to vector<16x128xf32>
    %180 = arith.subf %172, %179 : vector<16x128xf32>
    %181 = arith.mulf %180, %180 : vector<16x128xf32>
    %cst_72 = arith.constant dense<0.000000e+00> : vector<16xf32>
    %182 = vector.multi_reduction <add>, %181, %cst_72 [1] : vector<16x128xf32> to vector<16xf32>
    %183 = vector.shape_cast %182 : vector<16xf32> to vector<16x1xf32>
    %cst_73 = arith.constant 1.280000e+02 : f32
    %184 = vector.broadcast %cst_73 : f32 to vector<16x1xf32>
    %185 = arith.divf %183, %184 : vector<16x1xf32>
    %cst_74 = arith.constant 9.99999974E-6 : f32
    %186 = vector.broadcast %cst_74 : f32 to vector<16x1xf32>
    %187 = arith.addf %185, %186 : vector<16x1xf32>
    %188 = math.rsqrt %187 : vector<16x1xf32>
    %189 = vector.broadcast %188 : vector<16x1xf32> to vector<16x128xf32>
    %190 = arith.mulf %180, %189 : vector<16x128xf32>
    %191 = vector.broadcast %173 : vector<1x128xf32> to vector<16x128xf32>
    %192 = arith.mulf %190, %191 : vector<16x128xf32>
    %193 = vector.broadcast %174 : vector<1x128xf32> to vector<16x128xf32>
    %194 = arith.addf %192, %193 : vector<16x128xf32>
    %195 = arith.truncf %194 : vector<16x128xf32> to vector<16x128xbf16>
    %cst_75 = arith.constant dense<0.000000e+00> : vector<16x384xf32>
    %196 = tpu.matmul %195, %9, %cst_75 {dimension_numbers = #tpu.dot_dimension_numbers<[1], [0], [0], [1], [0, 0, 1, 1], [], []>} : vector<16x128xbf16>, vector<128x384xbf16>, vector<16x384xf32> -> vector<16x384xf32>
    %197 = vector.extract_strided_slice %196 {offsets = [0, 0], sizes = [16, 128], strides = [1, 1]} : vector<16x384xf32> to vector<16x128xf32>
    %198 = vector.extract_strided_slice %13 {offsets = [4, 0], sizes = [1, 128], strides = [1, 1]} : vector<16x128xf32> to vector<1x128xf32>
    %199 = vector.broadcast %198 : vector<1x128xf32> to vector<16x128xf32>
    %200 = arith.addf %197, %199 : vector<16x128xf32>
    %201 = vector.extract_strided_slice %196 {offsets = [0, 128], sizes = [16, 128], strides = [1, 1]} : vector<16x384xf32> to vector<16x128xf32>
    %202 = vector.extract_strided_slice %13 {offsets = [5, 0], sizes = [1, 128], strides = [1, 1]} : vector<16x128xf32> to vector<1x128xf32>
    %203 = vector.broadcast %202 : vector<1x128xf32> to vector<16x128xf32>
    %204 = arith.addf %201, %203 : vector<16x128xf32>
    %205 = vector.extract_strided_slice %196 {offsets = [0, 256], sizes = [16, 128], strides = [1, 1]} : vector<16x384xf32> to vector<16x128xf32>
    %206 = vector.extract_strided_slice %13 {offsets = [6, 0], sizes = [1, 128], strides = [1, 1]} : vector<16x128xf32> to vector<1x128xf32>
    %207 = vector.broadcast %206 : vector<1x128xf32> to vector<16x128xf32>
    %208 = arith.addf %205, %207 : vector<16x128xf32>
    %209 = tpu.transpose %204, [1, 0] : vector<16x128xf32> -> vector<128x16xf32>
    %210 = vector.extract_strided_slice %200 {offsets = [0, 0], sizes = [16, 16], strides = [1, 1]} : vector<16x128xf32> to vector<16x16xf32>
    %211 = vector.extract_strided_slice %209 {offsets = [0, 0], sizes = [16, 16], strides = [1, 1]} : vector<128x16xf32> to vector<16x16xf32>
    %cst_76 = arith.constant dense<0.000000e+00> : vector<16x16xf32>
    %212 = tpu.matmul %210, %211, %cst_76 {dimension_numbers = #tpu.dot_dimension_numbers<[1], [0], [0], [1], [0, 0, 1, 1], [], []>} : vector<16x16xf32>, vector<16x16xf32>, vector<16x16xf32> -> vector<16x16xf32>
    %213 = arith.addf %212, %1 : vector<16x16xf32>
    %cst_77 = arith.constant dense<0xFF800000> : vector<16xf32>
    %214 = vector.multi_reduction <maximumf>, %213, %cst_77 [1] : vector<16x16xf32> to vector<16xf32>
    %215 = vector.shape_cast %214 : vector<16xf32> to vector<16x1xf32>
    %216 = vector.broadcast %215 : vector<16x1xf32> to vector<16x16xf32>
    %217 = arith.subf %213, %216 : vector<16x16xf32>
    %218 = math.exp %217 : vector<16x16xf32>
    %cst_78 = arith.constant dense<0.000000e+00> : vector<16xf32>
    %219 = vector.multi_reduction <add>, %218, %cst_78 [1] : vector<16x16xf32> to vector<16xf32>
    %220 = vector.shape_cast %219 : vector<16xf32> to vector<16x1xf32>
    %221 = tpu.reciprocal %220 {approx = true} : vector<16x1xf32> -> vector<16x1xf32>
    %222 = vector.broadcast %221 : vector<16x1xf32> to vector<16x16xf32>
    %223 = arith.mulf %218, %222 : vector<16x16xf32>
    %224 = vector.extract_strided_slice %208 {offsets = [0, 0], sizes = [16, 16], strides = [1, 1]} : vector<16x128xf32> to vector<16x16xf32>
    %cst_79 = arith.constant dense<0.000000e+00> : vector<16x16xf32>
    %225 = tpu.matmul %223, %224, %cst_79 {dimension_numbers = #tpu.dot_dimension_numbers<[1], [0], [0], [1], [0, 0, 1, 1], [], []>} : vector<16x16xf32>, vector<16x16xf32>, vector<16x16xf32> -> vector<16x16xf32>
    %c0_80 = arith.constant 0 : index
    %c0_81 = arith.constant 0 : index
    %226 = vector.load %arg14[%c0_80, %c0_81] : memref<16x128xf32, #tpu.memory_space<vmem>>, vector<16x16xf32>
    tpu.vector_store %arg14[%c0_80, %c0_81], %225 {strides = array<i32>} : memref<16x128xf32, #tpu.memory_space<vmem>>, vector<16x16xf32>,
    %227 = vector.extract_strided_slice %200 {offsets = [0, 16], sizes = [16, 16], strides = [1, 1]} : vector<16x128xf32> to vector<16x16xf32>
    %228 = vector.extract_strided_slice %209 {offsets = [16, 0], sizes = [16, 16], strides = [1, 1]} : vector<128x16xf32> to vector<16x16xf32>
    %cst_82 = arith.constant dense<0.000000e+00> : vector<16x16xf32>
    %229 = tpu.matmul %227, %228, %cst_82 {dimension_numbers = #tpu.dot_dimension_numbers<[1], [0], [0], [1], [0, 0, 1, 1], [], []>} : vector<16x16xf32>, vector<16x16xf32>, vector<16x16xf32> -> vector<16x16xf32>
    %230 = arith.addf %229, %1 : vector<16x16xf32>
    %cst_83 = arith.constant dense<0xFF800000> : vector<16xf32>
    %231 = vector.multi_reduction <maximumf>, %230, %cst_83 [1] : vector<16x16xf32> to vector<16xf32>
    %232 = vector.shape_cast %231 : vector<16xf32> to vector<16x1xf32>
    %233 = vector.broadcast %232 : vector<16x1xf32> to vector<16x16xf32>
    %234 = arith.subf %230, %233 : vector<16x16xf32>
    %235 = math.exp %234 : vector<16x16xf32>
    %cst_84 = arith.constant dense<0.000000e+00> : vector<16xf32>
    %236 = vector.multi_reduction <add>, %235, %cst_84 [1] : vector<16x16xf32> to vector<16xf32>
    %237 = vector.shape_cast %236 : vector<16xf32> to vector<16x1xf32>
    %238 = tpu.reciprocal %237 {approx = true} : vector<16x1xf32> -> vector<16x1xf32>
    %239 = vector.broadcast %238 : vector<16x1xf32> to vector<16x16xf32>
    %240 = arith.mulf %235, %239 : vector<16x16xf32>
    %241 = vector.extract_strided_slice %208 {offsets = [0, 16], sizes = [16, 16], strides = [1, 1]} : vector<16x128xf32> to vector<16x16xf32>
    %cst_85 = arith.constant dense<0.000000e+00> : vector<16x16xf32>
    %242 = tpu.matmul %240, %241, %cst_85 {dimension_numbers = #tpu.dot_dimension_numbers<[1], [0], [0], [1], [0, 0, 1, 1], [], []>} : vector<16x16xf32>, vector<16x16xf32>, vector<16x16xf32> -> vector<16x16xf32>
    %c0_86 = arith.constant 0 : index
    %c16_87 = arith.constant 16 : index
    %243 = vector.load %arg14[%c0_86, %c16_87] : memref<16x128xf32, #tpu.memory_space<vmem>>, vector<16x16xf32>
    tpu.vector_store %arg14[%c0_86, %c16_87], %242 {strides = array<i32>} : memref<16x128xf32, #tpu.memory_space<vmem>>, vector<16x16xf32>,
    %244 = vector.extract_strided_slice %200 {offsets = [0, 32], sizes = [16, 16], strides = [1, 1]} : vector<16x128xf32> to vector<16x16xf32>
    %245 = vector.extract_strided_slice %209 {offsets = [32, 0], sizes = [16, 16], strides = [1, 1]} : vector<128x16xf32> to vector<16x16xf32>
    %cst_88 = arith.constant dense<0.000000e+00> : vector<16x16xf32>
    %246 = tpu.matmul %244, %245, %cst_88 {dimension_numbers = #tpu.dot_dimension_numbers<[1], [0], [0], [1], [0, 0, 1, 1], [], []>} : vector<16x16xf32>, vector<16x16xf32>, vector<16x16xf32> -> vector<16x16xf32>
    %247 = arith.addf %246, %1 : vector<16x16xf32>
    %cst_89 = arith.constant dense<0xFF800000> : vector<16xf32>
    %248 = vector.multi_reduction <maximumf>, %247, %cst_89 [1] : vector<16x16xf32> to vector<16xf32>
    %249 = vector.shape_cast %248 : vector<16xf32> to vector<16x1xf32>
    %250 = vector.broadcast %249 : vector<16x1xf32> to vector<16x16xf32>
    %251 = arith.subf %247, %250 : vector<16x16xf32>
    %252 = math.exp %251 : vector<16x16xf32>
    %cst_90 = arith.constant dense<0.000000e+00> : vector<16xf32>
    %253 = vector.multi_reduction <add>, %252, %cst_90 [1] : vector<16x16xf32> to vector<16xf32>
    %254 = vector.shape_cast %253 : vector<16xf32> to vector<16x1xf32>
    %255 = tpu.reciprocal %254 {approx = true} : vector<16x1xf32> -> vector<16x1xf32>
    %256 = vector.broadcast %255 : vector<16x1xf32> to vector<16x16xf32>
    %257 = arith.mulf %252, %256 : vector<16x16xf32>
    %258 = vector.extract_strided_slice %208 {offsets = [0, 32], sizes = [16, 16], strides = [1, 1]} : vector<16x128xf32> to vector<16x16xf32>
    %cst_91 = arith.constant dense<0.000000e+00> : vector<16x16xf32>
    %259 = tpu.matmul %257, %258, %cst_91 {dimension_numbers = #tpu.dot_dimension_numbers<[1], [0], [0], [1], [0, 0, 1, 1], [], []>} : vector<16x16xf32>, vector<16x16xf32>, vector<16x16xf32> -> vector<16x16xf32>
    %c0_92 = arith.constant 0 : index
    %c32_93 = arith.constant 32 : index
    %260 = vector.load %arg14[%c0_92, %c32_93] : memref<16x128xf32, #tpu.memory_space<vmem>>, vector<16x16xf32>
    tpu.vector_store %arg14[%c0_92, %c32_93], %259 {strides = array<i32>} : memref<16x128xf32, #tpu.memory_space<vmem>>, vector<16x16xf32>,
    %261 = vector.extract_strided_slice %200 {offsets = [0, 48], sizes = [16, 16], strides = [1, 1]} : vector<16x128xf32> to vector<16x16xf32>
    %262 = vector.extract_strided_slice %209 {offsets = [48, 0], sizes = [16, 16], strides = [1, 1]} : vector<128x16xf32> to vector<16x16xf32>
    %cst_94 = arith.constant dense<0.000000e+00> : vector<16x16xf32>
    %263 = tpu.matmul %261, %262, %cst_94 {dimension_numbers = #tpu.dot_dimension_numbers<[1], [0], [0], [1], [0, 0, 1, 1], [], []>} : vector<16x16xf32>, vector<16x16xf32>, vector<16x16xf32> -> vector<16x16xf32>
    %264 = arith.addf %263, %1 : vector<16x16xf32>
    %cst_95 = arith.constant dense<0xFF800000> : vector<16xf32>
    %265 = vector.multi_reduction <maximumf>, %264, %cst_95 [1] : vector<16x16xf32> to vector<16xf32>
    %266 = vector.shape_cast %265 : vector<16xf32> to vector<16x1xf32>
    %267 = vector.broadcast %266 : vector<16x1xf32> to vector<16x16xf32>
    %268 = arith.subf %264, %267 : vector<16x16xf32>
    %269 = math.exp %268 : vector<16x16xf32>
    %cst_96 = arith.constant dense<0.000000e+00> : vector<16xf32>
    %270 = vector.multi_reduction <add>, %269, %cst_96 [1] : vector<16x16xf32> to vector<16xf32>
    %271 = vector.shape_cast %270 : vector<16xf32> to vector<16x1xf32>
    %272 = tpu.reciprocal %271 {approx = true} : vector<16x1xf32> -> vector<16x1xf32>
    %273 = vector.broadcast %272 : vector<16x1xf32> to vector<16x16xf32>
    %274 = arith.mulf %269, %273 : vector<16x16xf32>
    %275 = vector.extract_strided_slice %208 {offsets = [0, 48], sizes = [16, 16], strides = [1, 1]} : vector<16x128xf32> to vector<16x16xf32>
    %cst_97 = arith.constant dense<0.000000e+00> : vector<16x16xf32>
    %276 = tpu.matmul %274, %275, %cst_97 {dimension_numbers = #tpu.dot_dimension_numbers<[1], [0], [0], [1], [0, 0, 1, 1], [], []>} : vector<16x16xf32>, vector<16x16xf32>, vector<16x16xf32> -> vector<16x16xf32>
    %c0_98 = arith.constant 0 : index
    %c48_99 = arith.constant 48 : index
    %277 = vector.load %arg14[%c0_98, %c48_99] : memref<16x128xf32, #tpu.memory_space<vmem>>, vector<16x16xf32>
    tpu.vector_store %arg14[%c0_98, %c48_99], %276 {strides = array<i32>} : memref<16x128xf32, #tpu.memory_space<vmem>>, vector<16x16xf32>,
    %278 = vector.extract_strided_slice %200 {offsets = [0, 64], sizes = [16, 16], strides = [1, 1]} : vector<16x128xf32> to vector<16x16xf32>
    %279 = vector.extract_strided_slice %209 {offsets = [64, 0], sizes = [16, 16], strides = [1, 1]} : vector<128x16xf32> to vector<16x16xf32>
    %cst_100 = arith.constant dense<0.000000e+00> : vector<16x16xf32>
    %280 = tpu.matmul %278, %279, %cst_100 {dimension_numbers = #tpu.dot_dimension_numbers<[1], [0], [0], [1], [0, 0, 1, 1], [], []>} : vector<16x16xf32>, vector<16x16xf32>, vector<16x16xf32> -> vector<16x16xf32>
    %281 = arith.addf %280, %1 : vector<16x16xf32>
    %cst_101 = arith.constant dense<0xFF800000> : vector<16xf32>
    %282 = vector.multi_reduction <maximumf>, %281, %cst_101 [1] : vector<16x16xf32> to vector<16xf32>
    %283 = vector.shape_cast %282 : vector<16xf32> to vector<16x1xf32>
    %284 = vector.broadcast %283 : vector<16x1xf32> to vector<16x16xf32>
    %285 = arith.subf %281, %284 : vector<16x16xf32>
    %286 = math.exp %285 : vector<16x16xf32>
    %cst_102 = arith.constant dense<0.000000e+00> : vector<16xf32>
    %287 = vector.multi_reduction <add>, %286, %cst_102 [1] : vector<16x16xf32> to vector<16xf32>
    %288 = vector.shape_cast %287 : vector<16xf32> to vector<16x1xf32>
    %289 = tpu.reciprocal %288 {approx = true} : vector<16x1xf32> -> vector<16x1xf32>
    %290 = vector.broadcast %289 : vector<16x1xf32> to vector<16x16xf32>
    %291 = arith.mulf %286, %290 : vector<16x16xf32>
    %292 = vector.extract_strided_slice %208 {offsets = [0, 64], sizes = [16, 16], strides = [1, 1]} : vector<16x128xf32> to vector<16x16xf32>
    %cst_103 = arith.constant dense<0.000000e+00> : vector<16x16xf32>
    %293 = tpu.matmul %291, %292, %cst_103 {dimension_numbers = #tpu.dot_dimension_numbers<[1], [0], [0], [1], [0, 0, 1, 1], [], []>} : vector<16x16xf32>, vector<16x16xf32>, vector<16x16xf32> -> vector<16x16xf32>
    %c0_104 = arith.constant 0 : index
    %c64_105 = arith.constant 64 : index
    %294 = vector.load %arg14[%c0_104, %c64_105] : memref<16x128xf32, #tpu.memory_space<vmem>>, vector<16x16xf32>
    tpu.vector_store %arg14[%c0_104, %c64_105], %293 {strides = array<i32>} : memref<16x128xf32, #tpu.memory_space<vmem>>, vector<16x16xf32>,
    %295 = vector.extract_strided_slice %200 {offsets = [0, 80], sizes = [16, 16], strides = [1, 1]} : vector<16x128xf32> to vector<16x16xf32>
    %296 = vector.extract_strided_slice %209 {offsets = [80, 0], sizes = [16, 16], strides = [1, 1]} : vector<128x16xf32> to vector<16x16xf32>
    %cst_106 = arith.constant dense<0.000000e+00> : vector<16x16xf32>
    %297 = tpu.matmul %295, %296, %cst_106 {dimension_numbers = #tpu.dot_dimension_numbers<[1], [0], [0], [1], [0, 0, 1, 1], [], []>} : vector<16x16xf32>, vector<16x16xf32>, vector<16x16xf32> -> vector<16x16xf32>
    %298 = arith.addf %297, %1 : vector<16x16xf32>
    %cst_107 = arith.constant dense<0xFF800000> : vector<16xf32>
    %299 = vector.multi_reduction <maximumf>, %298, %cst_107 [1] : vector<16x16xf32> to vector<16xf32>
    %300 = vector.shape_cast %299 : vector<16xf32> to vector<16x1xf32>
    %301 = vector.broadcast %300 : vector<16x1xf32> to vector<16x16xf32>
    %302 = arith.subf %298, %301 : vector<16x16xf32>
    %303 = math.exp %302 : vector<16x16xf32>
    %cst_108 = arith.constant dense<0.000000e+00> : vector<16xf32>
    %304 = vector.multi_reduction <add>, %303, %cst_108 [1] : vector<16x16xf32> to vector<16xf32>
    %305 = vector.shape_cast %304 : vector<16xf32> to vector<16x1xf32>
    %306 = tpu.reciprocal %305 {approx = true} : vector<16x1xf32> -> vector<16x1xf32>
    %307 = vector.broadcast %306 : vector<16x1xf32> to vector<16x16xf32>
    %308 = arith.mulf %303, %307 : vector<16x16xf32>
    %309 = vector.extract_strided_slice %208 {offsets = [0, 80], sizes = [16, 16], strides = [1, 1]} : vector<16x128xf32> to vector<16x16xf32>
    %cst_109 = arith.constant dense<0.000000e+00> : vector<16x16xf32>
    %310 = tpu.matmul %308, %309, %cst_109 {dimension_numbers = #tpu.dot_dimension_numbers<[1], [0], [0], [1], [0, 0, 1, 1], [], []>} : vector<16x16xf32>, vector<16x16xf32>, vector<16x16xf32> -> vector<16x16xf32>
    %c0_110 = arith.constant 0 : index
    %c80_111 = arith.constant 80 : index
    %311 = vector.load %arg14[%c0_110, %c80_111] : memref<16x128xf32, #tpu.memory_space<vmem>>, vector<16x16xf32>
    tpu.vector_store %arg14[%c0_110, %c80_111], %310 {strides = array<i32>} : memref<16x128xf32, #tpu.memory_space<vmem>>, vector<16x16xf32>,
    %312 = vector.extract_strided_slice %200 {offsets = [0, 96], sizes = [16, 16], strides = [1, 1]} : vector<16x128xf32> to vector<16x16xf32>
    %313 = vector.extract_strided_slice %209 {offsets = [96, 0], sizes = [16, 16], strides = [1, 1]} : vector<128x16xf32> to vector<16x16xf32>
    %cst_112 = arith.constant dense<0.000000e+00> : vector<16x16xf32>
    %314 = tpu.matmul %312, %313, %cst_112 {dimension_numbers = #tpu.dot_dimension_numbers<[1], [0], [0], [1], [0, 0, 1, 1], [], []>} : vector<16x16xf32>, vector<16x16xf32>, vector<16x16xf32> -> vector<16x16xf32>
    %315 = arith.addf %314, %1 : vector<16x16xf32>
    %cst_113 = arith.constant dense<0xFF800000> : vector<16xf32>
    %316 = vector.multi_reduction <maximumf>, %315, %cst_113 [1] : vector<16x16xf32> to vector<16xf32>
    %317 = vector.shape_cast %316 : vector<16xf32> to vector<16x1xf32>
    %318 = vector.broadcast %317 : vector<16x1xf32> to vector<16x16xf32>
    %319 = arith.subf %315, %318 : vector<16x16xf32>
    %320 = math.exp %319 : vector<16x16xf32>
    %cst_114 = arith.constant dense<0.000000e+00> : vector<16xf32>
    %321 = vector.multi_reduction <add>, %320, %cst_114 [1] : vector<16x16xf32> to vector<16xf32>
    %322 = vector.shape_cast %321 : vector<16xf32> to vector<16x1xf32>
    %323 = tpu.reciprocal %322 {approx = true} : vector<16x1xf32> -> vector<16x1xf32>
    %324 = vector.broadcast %323 : vector<16x1xf32> to vector<16x16xf32>
    %325 = arith.mulf %320, %324 : vector<16x16xf32>
    %326 = vector.extract_strided_slice %208 {offsets = [0, 96], sizes = [16, 16], strides = [1, 1]} : vector<16x128xf32> to vector<16x16xf32>
    %cst_115 = arith.constant dense<0.000000e+00> : vector<16x16xf32>
    %327 = tpu.matmul %325, %326, %cst_115 {dimension_numbers = #tpu.dot_dimension_numbers<[1], [0], [0], [1], [0, 0, 1, 1], [], []>} : vector<16x16xf32>, vector<16x16xf32>, vector<16x16xf32> -> vector<16x16xf32>
    %c0_116 = arith.constant 0 : index
    %c96_117 = arith.constant 96 : index
    %328 = vector.load %arg14[%c0_116, %c96_117] : memref<16x128xf32, #tpu.memory_space<vmem>>, vector<16x16xf32>
    tpu.vector_store %arg14[%c0_116, %c96_117], %327 {strides = array<i32>} : memref<16x128xf32, #tpu.memory_space<vmem>>, vector<16x16xf32>,
    %329 = vector.extract_strided_slice %200 {offsets = [0, 112], sizes = [16, 16], strides = [1, 1]} : vector<16x128xf32> to vector<16x16xf32>
    %330 = vector.extract_strided_slice %209 {offsets = [112, 0], sizes = [16, 16], strides = [1, 1]} : vector<128x16xf32> to vector<16x16xf32>
    %cst_118 = arith.constant dense<0.000000e+00> : vector<16x16xf32>
    %331 = tpu.matmul %329, %330, %cst_118 {dimension_numbers = #tpu.dot_dimension_numbers<[1], [0], [0], [1], [0, 0, 1, 1], [], []>} : vector<16x16xf32>, vector<16x16xf32>, vector<16x16xf32> -> vector<16x16xf32>
    %332 = arith.addf %331, %1 : vector<16x16xf32>
    %cst_119 = arith.constant dense<0xFF800000> : vector<16xf32>
    %333 = vector.multi_reduction <maximumf>, %332, %cst_119 [1] : vector<16x16xf32> to vector<16xf32>
    %334 = vector.shape_cast %333 : vector<16xf32> to vector<16x1xf32>
    %335 = vector.broadcast %334 : vector<16x1xf32> to vector<16x16xf32>
    %336 = arith.subf %332, %335 : vector<16x16xf32>
    %337 = math.exp %336 : vector<16x16xf32>
    %cst_120 = arith.constant dense<0.000000e+00> : vector<16xf32>
    %338 = vector.multi_reduction <add>, %337, %cst_120 [1] : vector<16x16xf32> to vector<16xf32>
    %339 = vector.shape_cast %338 : vector<16xf32> to vector<16x1xf32>
    %340 = tpu.reciprocal %339 {approx = true} : vector<16x1xf32> -> vector<16x1xf32>
    %341 = vector.broadcast %340 : vector<16x1xf32> to vector<16x16xf32>
    %342 = arith.mulf %337, %341 : vector<16x16xf32>
    %343 = vector.extract_strided_slice %208 {offsets = [0, 112], sizes = [16, 16], strides = [1, 1]} : vector<16x128xf32> to vector<16x16xf32>
    %cst_121 = arith.constant dense<0.000000e+00> : vector<16x16xf32>
    %344 = tpu.matmul %342, %343, %cst_121 {dimension_numbers = #tpu.dot_dimension_numbers<[1], [0], [0], [1], [0, 0, 1, 1], [], []>} : vector<16x16xf32>, vector<16x16xf32>, vector<16x16xf32> -> vector<16x16xf32>
    %c0_122 = arith.constant 0 : index
    %c112_123 = arith.constant 112 : index
    %345 = vector.load %arg14[%c0_122, %c112_123] : memref<16x128xf32, #tpu.memory_space<vmem>>, vector<16x16xf32>
    tpu.vector_store %arg14[%c0_122, %c112_123], %344 {strides = array<i32>} : memref<16x128xf32, #tpu.memory_space<vmem>>, vector<16x16xf32>,
    %c0_124 = arith.constant 0 : index
    %c0_125 = arith.constant 0 : index
    %346 = vector.load %arg14[%c0_124, %c0_125] : memref<16x128xf32, #tpu.memory_space<vmem>>, vector<16x128xf32>
    %347 = arith.truncf %346 : vector<16x128xf32> to vector<16x128xbf16>
    %cst_126 = arith.constant dense<0.000000e+00> : vector<16x128xf32>
    %348 = tpu.matmul %347, %10, %cst_126 {dimension_numbers = #tpu.dot_dimension_numbers<[1], [0], [0], [1], [0, 0, 1, 1], [], []>} : vector<16x128xbf16>, vector<128x128xbf16>, vector<16x128xf32> -> vector<16x128xf32>
    %349 = vector.extract_strided_slice %13 {offsets = [7, 0], sizes = [1, 128], strides = [1, 1]} : vector<16x128xf32> to vector<1x128xf32>
    %350 = vector.broadcast %349 : vector<1x128xf32> to vector<16x128xf32>
    %351 = arith.addf %348, %350 : vector<16x128xf32>
    %352 = arith.addf %194, %351 : vector<16x128xf32>
    %353 = vector.extract_strided_slice %13 {offsets = [12, 0], sizes = [1, 128], strides = [1, 1]} : vector<16x128xf32> to vector<1x128xf32>
    %354 = vector.extract_strided_slice %13 {offsets = [13, 0], sizes = [1, 128], strides = [1, 1]} : vector<16x128xf32> to vector<1x128xf32>
    %cst_127 = arith.constant dense<0.000000e+00> : vector<16xf32>
    %355 = vector.multi_reduction <add>, %352, %cst_127 [1] : vector<16x128xf32> to vector<16xf32>
    %356 = vector.shape_cast %355 : vector<16xf32> to vector<16x1xf32>
    %cst_128 = arith.constant 1.280000e+02 : f32
    %357 = vector.broadcast %cst_128 : f32 to vector<16x1xf32>
    %358 = arith.divf %356, %357 : vector<16x1xf32>
    %359 = vector.broadcast %358 : vector<16x1xf32> to vector<16x128xf32>
    %360 = arith.subf %352, %359 : vector<16x128xf32>
    %361 = arith.mulf %360, %360 : vector<16x128xf32>
    %cst_129 = arith.constant dense<0.000000e+00> : vector<16xf32>
    %362 = vector.multi_reduction <add>, %361, %cst_129 [1] : vector<16x128xf32> to vector<16xf32>
    %363 = vector.shape_cast %362 : vector<16xf32> to vector<16x1xf32>
    %cst_130 = arith.constant 1.280000e+02 : f32
    %364 = vector.broadcast %cst_130 : f32 to vector<16x1xf32>
    %365 = arith.divf %363, %364 : vector<16x1xf32>
    %cst_131 = arith.constant 9.99999974E-6 : f32
    %366 = vector.broadcast %cst_131 : f32 to vector<16x1xf32>
    %367 = arith.addf %365, %366 : vector<16x1xf32>
    %368 = math.rsqrt %367 : vector<16x1xf32>
    %369 = vector.broadcast %368 : vector<16x1xf32> to vector<16x128xf32>
    %370 = arith.mulf %360, %369 : vector<16x128xf32>
    %371 = vector.broadcast %353 : vector<1x128xf32> to vector<16x128xf32>
    %372 = arith.mulf %370, %371 : vector<16x128xf32>
    %373 = vector.broadcast %354 : vector<1x128xf32> to vector<16x128xf32>
    %374 = arith.addf %372, %373 : vector<16x128xf32>
    %375 = arith.truncf %374 : vector<16x128xf32> to vector<16x128xbf16>
    %cst_132 = arith.constant dense<0.000000e+00> : vector<16x128xf32>
    %376 = tpu.matmul %375, %11, %cst_132 {dimension_numbers = #tpu.dot_dimension_numbers<[1], [0], [0], [1], [0, 0, 1, 1], [], []>} : vector<16x128xbf16>, vector<128x128xbf16>, vector<16x128xf32> -> vector<16x128xf32>
    %377 = vector.extract_strided_slice %13 {offsets = [8, 0], sizes = [1, 128], strides = [1, 1]} : vector<16x128xf32> to vector<1x128xf32>
    %378 = vector.broadcast %377 : vector<1x128xf32> to vector<16x128xf32>
    %379 = arith.addf %376, %378 : vector<16x128xf32>
    %cst_133 = arith.constant 0.000000e+00 : f32
    %380 = vector.broadcast %cst_133 : f32 to vector<16x128xf32>
    %381 = arith.maximumf %379, %380 : vector<16x128xf32>
    %382 = arith.truncf %381 : vector<16x128xf32> to vector<16x128xbf16>
    %cst_134 = arith.constant dense<0.000000e+00> : vector<16x128xf32>
    %383 = tpu.matmul %382, %12, %cst_134 {dimension_numbers = #tpu.dot_dimension_numbers<[1], [0], [0], [1], [0, 0, 1, 1], [], []>} : vector<16x128xbf16>, vector<128x128xbf16>, vector<16x128xf32> -> vector<16x128xf32>
    %384 = arith.addf %374, %383 : vector<16x128xf32>
    %385 = vector.extract_strided_slice %13 {offsets = [9, 0], sizes = [1, 128], strides = [1, 1]} : vector<16x128xf32> to vector<1x128xf32>
    %386 = vector.broadcast %385 : vector<1x128xf32> to vector<16x128xf32>
    %387 = arith.addf %384, %386 : vector<16x128xf32>
    %388 = vector.extract_strided_slice %13 {offsets = [14, 0], sizes = [1, 128], strides = [1, 1]} : vector<16x128xf32> to vector<1x128xf32>
    %389 = vector.extract_strided_slice %13 {offsets = [15, 0], sizes = [1, 128], strides = [1, 1]} : vector<16x128xf32> to vector<1x128xf32>
    %cst_135 = arith.constant dense<0.000000e+00> : vector<16xf32>
    %390 = vector.multi_reduction <add>, %387, %cst_135 [1] : vector<16x128xf32> to vector<16xf32>
    %391 = vector.shape_cast %390 : vector<16xf32> to vector<16x1xf32>
    %cst_136 = arith.constant 1.280000e+02 : f32
    %392 = vector.broadcast %cst_136 : f32 to vector<16x1xf32>
    %393 = arith.divf %391, %392 : vector<16x1xf32>
    %394 = vector.broadcast %393 : vector<16x1xf32> to vector<16x128xf32>
    %395 = arith.subf %387, %394 : vector<16x128xf32>
    %396 = arith.mulf %395, %395 : vector<16x128xf32>
    %cst_137 = arith.constant dense<0.000000e+00> : vector<16xf32>
    %397 = vector.multi_reduction <add>, %396, %cst_137 [1] : vector<16x128xf32> to vector<16xf32>
    %398 = vector.shape_cast %397 : vector<16xf32> to vector<16x1xf32>
    %cst_138 = arith.constant 1.280000e+02 : f32
    %399 = vector.broadcast %cst_138 : f32 to vector<16x1xf32>
    %400 = arith.divf %398, %399 : vector<16x1xf32>
    %cst_139 = arith.constant 9.99999974E-6 : f32
    %401 = vector.broadcast %cst_139 : f32 to vector<16x1xf32>
    %402 = arith.addf %400, %401 : vector<16x1xf32>
    %403 = math.rsqrt %402 : vector<16x1xf32>
    %404 = vector.broadcast %403 : vector<16x1xf32> to vector<16x128xf32>
    %405 = arith.mulf %395, %404 : vector<16x128xf32>
    %406 = vector.broadcast %388 : vector<1x128xf32> to vector<16x128xf32>
    %407 = arith.mulf %405, %406 : vector<16x128xf32>
    %408 = vector.broadcast %389 : vector<1x128xf32> to vector<16x128xf32>
    %409 = arith.addf %407, %408 : vector<16x128xf32>
    %410 = vector.shape_cast %409 : vector<16x128xf32> to vector<2x8x128xf32>
    %c0_140 = arith.constant 0 : index
    %c0_141 = arith.constant 0 : index
    %c0_142 = arith.constant 0 : index
    %411 = vector.load %arg13[%c0_140, %c0_141, %c0_142] : memref<2x8x128xf32, #tpu.memory_space<vmem>>, vector<2x8x128xf32>
    tpu.vector_store %arg13[%c0_140, %c0_141, %c0_142], %410 {strides = array<i32>} : memref<2x8x128xf32, #tpu.memory_space<vmem>>, vector<2x8x128xf32>,
    return
  }
  func.func @transform_0(%arg0: i32) -> (i32, i32, i32) {
    %c0_i32 = arith.constant 0 : i32
    %c0_i32_0 = arith.constant 0 : i32
    %c0_i32_1 = arith.constant 0 : i32
    return %arg0, %c0_i32, %c0_i32_0 : i32, i32, i32
  }
  func.func @transform_1(%arg0: i32) -> (i32, i32, i32) {
    %c0_i32 = arith.constant 0 : i32
    %c0_i32_0 = arith.constant 0 : i32
    %c0_i32_1 = arith.constant 0 : i32
    return %arg0, %c0_i32, %c0_i32_0 : i32, i32, i32
  }
  func.func @transform_2(%arg0: i32) -> (i32, i32) {
    %c0_i32 = arith.constant 0 : i32
    %c0_i32_0 = arith.constant 0 : i32
    return %arg0, %c0_i32 : i32, i32
  }
  func.func @transform_3(%arg0: i32) -> (i32, i32) {
    %c0_i32 = arith.constant 0 : i32
    %c0_i32_0 = arith.constant 0 : i32
    return %arg0, %c0_i32 : i32, i32
  }
  func.func @transform_4(%arg0: i32) -> (i32, i32) {
    %c0_i32 = arith.constant 0 : i32
    %c0_i32_0 = arith.constant 0 : i32
    %c0_i32_1 = arith.constant 0 : i32
    return %c0_i32, %c0_i32_0 : i32, i32
  }
  func.func @transform_5(%arg0: i32) -> (i32, i32) {
    %c0_i32 = arith.constant 0 : i32
    %c0_i32_0 = arith.constant 0 : i32
    %c0_i32_1 = arith.constant 0 : i32
    return %c0_i32, %c0_i32_0 : i32, i32
  }
  func.func @transform_6(%arg0: i32) -> (i32, i32) {
    %c0_i32 = arith.constant 0 : i32
    %c0_i32_0 = arith.constant 0 : i32
    %c0_i32_1 = arith.constant 0 : i32
    return %c0_i32, %c0_i32_0 : i32, i32
  }
  func.func @transform_7(%arg0: i32) -> (i32, i32) {
    %c0_i32 = arith.constant 0 : i32
    %c0_i32_0 = arith.constant 0 : i32
    %c0_i32_1 = arith.constant 0 : i32
    return %c0_i32, %c0_i32_0 : i32, i32
  }
  func.func @transform_8(%arg0: i32) -> (i32, i32) {
    %c0_i32 = arith.constant 0 : i32
    %c0_i32_0 = arith.constant 0 : i32
    %c0_i32_1 = arith.constant 0 : i32
    return %c0_i32, %c0_i32_0 : i32, i32
  }
  func.func @transform_9(%arg0: i32) -> (i32, i32) {
    %c0_i32 = arith.constant 0 : i32
    %c0_i32_0 = arith.constant 0 : i32
    %c0_i32_1 = arith.constant 0 : i32
    return %c0_i32, %c0_i32_0 : i32, i32
  }
  func.func @transform_10(%arg0: i32) -> (i32, i32) {
    %c0_i32 = arith.constant 0 : i32
    %c0_i32_0 = arith.constant 0 : i32
    %c0_i32_1 = arith.constant 0 : i32
    return %c0_i32, %c0_i32_0 : i32, i32
  }
  func.func @transform_11(%arg0: i32) -> (i32, i32) {
    %c0_i32 = arith.constant 0 : i32
    %c0_i32_0 = arith.constant 0 : i32
    %c0_i32_1 = arith.constant 0 : i32
    return %c0_i32, %c0_i32_0 : i32, i32
  }
  func.func @transform_12(%arg0: i32) -> (i32, i32, i32) {
    %c0_i32 = arith.constant 0 : i32
    %c0_i32_0 = arith.constant 0 : i32
    %c0_i32_1 = arith.constant 0 : i32
    return %arg0, %c0_i32, %c0_i32_0 : i32, i32, i32
  }
}

</mosaic_0001>

<bundles_post_ra>
// kernel: tpu_custom_call.1
= control target key start
LH: loop header
LB: loop body
LE: loop exit
PB: predicated region body
PF: predicated region fallthrough
CT: control target
= control target key end

     0   :  { %17 = vsyncpa [#allocation4], 0  ;;  %s7140_s0 = inlined_call_operand.hbm [shape: f32[2,8,128], index: 0, kind: input, shape index: {}]   ;;  %s7141_s1 = inlined_call_operand.hbm [shape: f32[2,8,128], index: 1, kind: input, shape index: {}]   ;;  %s7142_s2 = inlined_call_operand.hbm [shape: f32[16,16], index: 2, kind: input, shape index: {}]   ;;  %s7143_s3 = inlined_call_operand.hbm [shape: f32[16,16], index: 3, kind: input, shape index: {}]   ;;  %s7144_s4 = inlined_call_operand.hbm [shape: bf16[128,128], index: 4, kind: input, shape index: {}]   ;;  %s7145_s5 = inlined_call_operand.hbm [shape: bf16[128,256], index: 5, kind: input, shape index: {}]   ;;  %s7146_s6 = inlined_call_operand.hbm [shape: bf16[128,128], index: 6, kind: input, shape index: {}]   ;;  %s7147_s7 = inlined_call_operand.hbm [shape: bf16[128,384], index: 7, kind: input, shape index: {}]   ;;  %s7148_s8 = inlined_call_operand.hbm [shape: bf16[128,128], index: 8, kind: input, shape index: {}]   ;;  %s7149_s9 = inlined_call_operand.hbm [shape: bf16[128,128], index: 9, kind: input, shape index: {}]   ;;  %s7150_s10 = inlined_call_operand.hbm [shape: bf16[128,128], index: 10, kind: input, shape index: {}]   ;;  %s7151_s11 = inlined_call_operand.vmem [shape: f32[16,128], index: 11, kind: input, shape index: {}]   ;;  %s7152_s12 = inlined_call_operand.hbm [shape: f32[2,8,128], index: 12, kind: output, shape index: {}]  }
   0x1   :  { %18 = vsyncpa [#allocation7], 0 }
   0x2   :  { %19 = vsyncpa [#allocation10], 0 }
   0x3   :  { %20 = vsyncpa [#allocation13], 0 }
   0x4   :  { %21 = vsyncpa [#allocation16], 0 }
   0x5   :  { %22 = vsyncpa [#allocation19], 0 }
   0x6   :  { %23 = vsyncpa [#allocation5], 0  ;;  %s6192_s21 = smov [#allocation6]   ;;  %s6193_s23 = smov [#allocation9]  }
   0x7   :  { %s41_s22 = sshll.u32 %s6192_s21, 4  ;;  %s65_s24 = sshll.u32 %s6193_s23, 4  ;;  %s42_s22 = int_to_ptr.vmem [resolvable:$true] %s41_s22  ;;  %s6284_s24 = int_to_ptr.vmem [resolvable:$true] %s65_s24 }
   0x8   :  { %s5914_s27 = scalar_lea.hbm %s7141_s1, 256 }
   0x9   :  { %p5915_p0 = scmp.ne.s32.totalorder %s7141_s1, %s5914_s27  ;;  %p5918_p1 = scmp.lt.u32.totalorder %s5914_s27, %s7141_s1 }
   0xb   :  { %p5920_p2 = pnand %p5918_p1, %p5915_p0 }
   0xd   :  { %5923 = shalt.err (!%p5920_p2)
}
   0xe   :  { %s5924_s14 = scalar_lea.vmem %s42_s22, 256  ;;  %p5929_p4 = scmp.lt.s32.totalorder %s42_s22, %s42_s22 }
   0xf   :  { %p5925_p3 = scmp.ne.s32.totalorder %s42_s22, %s5924_s14  ;;  %p5930_p5 = scmp.lt.s32.totalorder %s5924_s14, %s5924_s14 }
  0x11   :  { %p5931_p6 = por %p5930_p5, %p5929_p4 }
  0x13   :  { %p5932_p7 = pnand %p5931_p6, %p5925_p3 }
  0x15   :  { %5935 = shalt.err (!%p5932_p7)
}
  0x16   :  { %s6194_s15 = smov 128   ;;  %s6195_s16 = smov 8  }
  0x17   :  { %47 = dma.hbm_to_vmem [thread:$0]  %s7141_s1, 256, %s42_s22, [#allocation7], %s6194_s15, %s6194_s15, %s6195_s16  }
  0x18   :  { %s5936_s21 = scalar_lea.hbm %s7143_s3, 256 }
  0x19   :  { %p5937_p8 = scmp.ne.s32.totalorder %s7143_s3, %s5936_s21  ;;  %p5940_p9 = scmp.lt.u32.totalorder %s5936_s21, %s7143_s3 }
  0x1b   :  { %p5942_p10 = pnand %p5940_p9, %p5937_p8 }
  0x1d   :  { %5945 = shalt.err (!%p5942_p10)
}
  0x1e   :  { %s5946_s28 = scalar_lea.vmem %s6284_s24, 256  ;;  %p5951_p12 = scmp.lt.s32.totalorder %s6284_s24, %s6284_s24 }
  0x1f   :  { %p5947_p11 = scmp.ne.s32.totalorder %s6284_s24, %s5946_s28  ;;  %p5952_p13 = scmp.lt.s32.totalorder %s5946_s28, %s5946_s28 }
  0x21   :  { %p5953_p0 = por %p5952_p13, %p5951_p12 }
  0x23   :  { %p5954_p1 = pnand %p5953_p0, %p5947_p11 }
  0x25   :  { %5957 = shalt.err (!%p5954_p1)
}
  0x26   :  { %71 = dma.hbm_to_vmem [thread:$0]  %s7143_s3, 256, %s6284_s24, [#allocation10], %s6194_s15, %s6194_s15, %s6195_s16  }
  0x27   :  { %s6196_s29 = smov [#allocation12]   ;;  %s6197_s13 = smov [#allocation15]  }
  0x28   :  { %s89_s30 = sshll.u32 %s6196_s29, 4  ;;  %s113_s14 = sshll.u32 %s6197_s13, 4  ;;  %s90_s30 = int_to_ptr.vmem [resolvable:$true] %s89_s30  ;;  %s6321_s14 = int_to_ptr.vmem [resolvable:$true] %s113_s14 }
  0x29   :  { %s5958_s19 = scalar_lea.hbm %s7145_s5, 2048 }
  0x2a   :  { %p5959_p2 = scmp.ne.s32.totalorder %s7145_s5, %s5958_s19  ;;  %p5962_p3 = scmp.lt.u32.totalorder %s5958_s19, %s7145_s5 }
  0x2c   :  { %p5964_p4 = pnand %p5962_p3, %p5959_p2 }
  0x2e   :  { %5967 = shalt.err (!%p5964_p4)
}
  0x2f   :  { %s5968_s3 = scalar_lea.vmem %s90_s30, 2048  ;;  %p5973_p6 = scmp.lt.s32.totalorder %s90_s30, %s90_s30 }
  0x30   :  { %p5969_p5 = scmp.ne.s32.totalorder %s90_s30, %s5968_s3  ;;  %p5974_p7 = scmp.lt.s32.totalorder %s5968_s3, %s5968_s3 }
  0x32   :  { %p5975_p8 = por %p5974_p7, %p5973_p6 }
  0x34   :  { %p5976_p9 = pnand %p5975_p8, %p5969_p5 }
  0x36   :  { %5979 = shalt.err (!%p5976_p9)
}
  0x37   :  { %95 = dma.hbm_to_vmem [thread:$0]  %s7145_s5, 2048, %s90_s30, [#allocation13], %s6194_s15, %s6194_s15, %s6195_s16  }
  0x38   :  { %s5980_s1 = scalar_lea.hbm %s7147_s7, 3072 }
  0x39   :  { %p5981_p10 = scmp.ne.s32.totalorder %s7147_s7, %s5980_s1  ;;  %p5984_p11 = scmp.lt.u32.totalorder %s5980_s1, %s7147_s7 }
  0x3b   :  { %p5986_p12 = pnand %p5984_p11, %p5981_p10 }
  0x3d   :  { %5989 = shalt.err (!%p5986_p12)
}
  0x3e   :  { %s5990_s18 = scalar_lea.vmem %s6321_s14, 3072  ;;  %p5995_p0 = scmp.lt.s32.totalorder %s6321_s14, %s6321_s14 }
  0x3f   :  { %p5991_p13 = scmp.ne.s32.totalorder %s6321_s14, %s5990_s18  ;;  %p5996_p1 = scmp.lt.s32.totalorder %s5990_s18, %s5990_s18 }
  0x41   :  { %p5997_p2 = por %p5996_p1, %p5995_p0 }
  0x43   :  { %p5998_p3 = pnand %p5997_p2, %p5991_p13 }
  0x45   :  { %6001 = shalt.err (!%p5998_p3)
}
  0x46   :  { %s6198_s5 = smov 192   ;;  %s6199_s30 = smov 12  }
  0x47   :  { %119 = dma.hbm_to_vmem [thread:$0]  %s7147_s7, 3072, %s6321_s14, [#allocation16], %s6198_s5, %s6198_s5, %s6199_s30  }
  0x48   :  { %s6200_s21 = smov [#allocation18]   ;;  %s6201_s25 = smov [#allocation3]  }
  0x49   :  { %s137_s23 = sshll.u32 %s6200_s21, 4  ;;  %s29_s3 = sshll.u32 %s6201_s25, 4  ;;  %s138_s23 = int_to_ptr.vmem [resolvable:$true] %s137_s23  ;;  %s6355_s3 = int_to_ptr.vmem [resolvable:$true] %s29_s3 }
  0x4a   :  { %s6002_s27 = scalar_lea.hbm %s7149_s9, 1024 }
  0x4b   :  { %p6003_p4 = scmp.ne.s32.totalorder %s7149_s9, %s6002_s27  ;;  %p6006_p5 = scmp.lt.u32.totalorder %s6002_s27, %s7149_s9 }
  0x4d   :  { %p6008_p6 = pnand %p6006_p5, %p6003_p4 }
  0x4f   :  { %6011 = shalt.err (!%p6008_p6)
}
  0x50   :  { %s6012_s7 = scalar_lea.vmem %s138_s23, 1024  ;;  %p6017_p8 = scmp.lt.s32.totalorder %s138_s23, %s138_s23 }
  0x51   :  { %p6013_p7 = scmp.ne.s32.totalorder %s138_s23, %s6012_s7  ;;  %p6018_p9 = scmp.lt.s32.totalorder %s6012_s7, %s6012_s7 }
  0x53   :  { %p6019_p10 = por %p6018_p9, %p6017_p8 }
  0x55   :  { %p6020_p11 = pnand %p6019_p10, %p6013_p7 }
  0x57   :  { %6023 = shalt.err (!%p6020_p11)
}
  0x58   :  { %s6202_s14 = smov 64   ;;  %s6203_s13 = smov 4  }
  0x59   :  { %143 = dma.hbm_to_vmem [thread:$0]  %s7149_s9, 1024, %s138_s23, [#allocation19], %s6202_s14, %s6202_s14, %s6203_s13  }
  0x5a   :  { %s6024_s19 = scalar_lea.hbm %s7140_s0, 256 }
  0x5b   :  { %p6025_p12 = scmp.ne.s32.totalorder %s7140_s0, %s6024_s19  ;;  %p6028_p13 = scmp.lt.u32.totalorder %s6024_s19, %s7140_s0 }
  0x5d   :  { %p6030_p0 = pnand %p6028_p13, %p6025_p12 }
  0x5f   :  { %6033 = shalt.err (!%p6030_p0)
}
  0x60   :  { %s6034_s26 = scalar_lea.vmem %s6355_s3, 256  ;;  %p6039_p2 = scmp.lt.s32.totalorder %s6355_s3, %s6355_s3 }
  0x61   :  { %p6035_p1 = scmp.ne.s32.totalorder %s6355_s3, %s6034_s26  ;;  %p6040_p3 = scmp.lt.s32.totalorder %s6034_s26, %s6034_s26 }
  0x63   :  { %p6041_p4 = por %p6040_p3, %p6039_p2 }
  0x65   :  { %p6042_p5 = pnand %p6041_p4, %p6035_p1 }
  0x67   :  { %6045 = shalt.err (!%p6042_p5)
}
  0x68   :  { %35 = dma.hbm_to_vmem [thread:$0]  %s7140_s0, 256, %s6355_s3, [#allocation4], %s6194_s15, %s6194_s15, %s6195_s16  }
  0x69   :  { %s6204_s27 = smov [#allocation8]   ;;  %s6205_s1 = smov [#allocation11]  }
  0x6a   :  { %s53_s28 = sshll.u32 %s6204_s27, 4  ;;  %s77_s22 = sshll.u32 %s6205_s1, 4  ;;  %s54_s28 = int_to_ptr.vmem [resolvable:$true] %s53_s28  ;;  %s6392_s22 = int_to_ptr.vmem [resolvable:$true] %s77_s22 }
  0x6b   :  { %s6046_s17 = scalar_lea.hbm %s7142_s2, 256 }
  0x6c   :  { %p6047_p6 = scmp.ne.s32.totalorder %s7142_s2, %s6046_s17  ;;  %p6050_p7 = scmp.lt.u32.totalorder %s6046_s17, %s7142_s2 }
  0x6e   :  { %p6052_p8 = pnand %p6050_p7, %p6047_p6 }
  0x70   :  { %6055 = shalt.err (!%p6052_p8)
}
  0x71   :  { %s6056_s0 = scalar_lea.vmem %s54_s28, 256  ;;  %p6061_p10 = scmp.lt.s32.totalorder %s54_s28, %s54_s28 }
  0x72   :  { %p6057_p9 = scmp.ne.s32.totalorder %s54_s28, %s6056_s0  ;;  %p6062_p11 = scmp.lt.s32.totalorder %s6056_s0, %s6056_s0 }
  0x74   :  { %p6063_p12 = por %p6062_p11, %p6061_p10 }
  0x76   :  { %p6064_p13 = pnand %p6063_p12, %p6057_p9 }
  0x78   :  { %6067 = shalt.err (!%p6064_p13)
}
  0x79   :  { %59 = dma.hbm_to_vmem [thread:$0]  %s7142_s2, 256, %s54_s28, [#allocation7], %s6194_s15, %s6194_s15, %s6195_s16  }
  0x7a   :  { %s6068_s24 = scalar_lea.hbm %s7144_s4, 1024 }
  0x7b   :  { %p6069_p0 = scmp.ne.s32.totalorder %s7144_s4, %s6068_s24  ;;  %p6072_p1 = scmp.lt.u32.totalorder %s6068_s24, %s7144_s4 }
  0x7d   :  { %p6074_p2 = pnand %p6072_p1, %p6069_p0 }
  0x7f   :  { %6077 = shalt.err (!%p6074_p2)
}
  0x80   :  { %s6078_s1 = scalar_lea.vmem %s6392_s22, 1024  ;;  %p6083_p4 = scmp.lt.s32.totalorder %s6392_s22, %s6392_s22 }
  0x81   :  { %p6079_p3 = scmp.ne.s32.totalorder %s6392_s22, %s6078_s1  ;;  %p6084_p5 = scmp.lt.s32.totalorder %s6078_s1, %s6078_s1 }
  0x83   :  { %p6085_p6 = por %p6084_p5, %p6083_p4 }
  0x85   :  { %p6086_p7 = pnand %p6085_p6, %p6079_p3 }
  0x87   :  { %6089 = shalt.err (!%p6086_p7)
}
  0x88   :  { %83 = dma.hbm_to_vmem [thread:$0]  %s7144_s4, 1024, %s6392_s22, [#allocation10], %s6202_s14, %s6202_s14, %s6203_s13  }
  0x89   :  { %s6206_s29 = smov [#allocation14]   ;;  %s6207_s17 = smov [#allocation17]  }
  0x8a   :  { %s101_s7 = sshll.u32 %s6206_s29, 4  ;;  %s125_s18 = sshll.u32 %s6207_s17, 4  ;;  %s102_s7 = int_to_ptr.vmem [resolvable:$true] %s101_s7  ;;  %s6429_s18 = int_to_ptr.vmem [resolvable:$true] %s125_s18 }
  0x8b   :  { %s6090_s19 = scalar_lea.hbm %s7146_s6, 1024 }
  0x8c   :  { %p6091_p8 = scmp.ne.s32.totalorder %s7146_s6, %s6090_s19  ;;  %p6094_p9 = scmp.lt.u32.totalorder %s6090_s19, %s7146_s6 }
  0x8e   :  { %p6096_p10 = pnand %p6094_p9, %p6091_p8 }
  0x90   :  { %6099 = shalt.err (!%p6096_p10)
}
  0x91   :  { %s6100_s4 = scalar_lea.vmem %s102_s7, 1024  ;;  %p6105_p12 = scmp.lt.s32.totalorder %s102_s7, %s102_s7 }
  0x92   :  { %p6101_p11 = scmp.ne.s32.totalorder %s102_s7, %s6100_s4  ;;  %p6106_p13 = scmp.lt.s32.totalorder %s6100_s4, %s6100_s4 }
  0x94   :  { %p6107_p0 = por %p6106_p13, %p6105_p12 }
  0x96   :  { %p6108_p1 = pnand %p6107_p0, %p6101_p11 }
  0x98   :  { %6111 = shalt.err (!%p6108_p1)
}
  0x99   :  { %107 = dma.hbm_to_vmem [thread:$0]  %s7146_s6, 1024, %s102_s7, [#allocation13], %s6202_s14, %s6202_s14, %s6203_s13  }
  0x9a   :  { %s6112_s9 = scalar_lea.hbm %s7148_s8, 1024 }
  0x9b   :  { %p6113_p2 = scmp.ne.s32.totalorder %s7148_s8, %s6112_s9  ;;  %p6116_p3 = scmp.lt.u32.totalorder %s6112_s9, %s7148_s8 }
  0x9d   :  { %p6118_p4 = pnand %p6116_p3, %p6113_p2 }
  0x9f   :  { %6121 = shalt.err (!%p6118_p4)
}
  0xa0   :  { %s6122_s28 = scalar_lea.vmem %s6429_s18, 1024  ;;  %p6127_p6 = scmp.lt.s32.totalorder %s6429_s18, %s6429_s18 }
  0xa1   :  { %p6123_p5 = scmp.ne.s32.totalorder %s6429_s18, %s6122_s28  ;;  %p6128_p7 = scmp.lt.s32.totalorder %s6122_s28, %s6122_s28 }
  0xa3   :  { %p6129_p8 = por %p6128_p7, %p6127_p6 }
  0xa5   :  { %p6130_p9 = pnand %p6129_p8, %p6123_p5 }
  0xa7   :  { %6133 = shalt.err (!%p6130_p9)
}
  0xa8   :  { %131 = dma.hbm_to_vmem [thread:$0]  %s7148_s8, 1024, %s6429_s18, [#allocation16], %s6202_s14, %s6202_s14, %s6203_s13  }
  0xa9   :  { %s6208_s7 = smov [#allocation20]   ;;  %s6134_s19 = scalar_lea.hbm %s7150_s10, 1024 }
  0xaa   :  { %s149_s17 = sshll.u32 %s6208_s7, 4  ;;  %p6135_p10 = scmp.ne.s32.totalorder %s7150_s10, %s6134_s19  ;;  %s150_s17 = int_to_ptr.vmem [resolvable:$true] %s149_s17 }
  0xab   :  { %p6138_p11 = scmp.lt.u32.totalorder %s6134_s19, %s7150_s10 }
  0xad   :  { %p6140_p12 = pnand %p6138_p11, %p6135_p10 }
  0xaf   :  { %6143 = shalt.err (!%p6140_p12)
}
  0xb0   :  { %s6144_s4 = scalar_lea.vmem %s150_s17, 1024  ;;  %p6149_p0 = scmp.lt.s32.totalorder %s150_s17, %s150_s17 }
  0xb1   :  { %p6145_p13 = scmp.ne.s32.totalorder %s150_s17, %s6144_s4  ;;  %p6150_p1 = scmp.lt.s32.totalorder %s6144_s4, %s6144_s4 }
  0xb3   :  { %p6151_p2 = por %p6150_p1, %p6149_p0 }
  0xb5   :  { %p6152_p3 = pnand %p6151_p2, %p6145_p13 }
  0xb7   :  { %6155 = shalt.err (!%p6152_p3)
}
  0xb8   :  { %155 = dma.hbm_to_vmem [thread:$0]  %s7150_s10, 1024, %s150_s17, [#allocation19], %s6202_s14, %s6202_s14, %s6203_s13  }
  0xb9   :  { %6178 = dma.done.wait [#allocation4], 256  }
  0xba   :  { %6179 = vsyncadd [#allocation4], 4294967040 }
  0xbb   :  { %6180 = dma.done.wait [#allocation7], 512  }
  0xbc   :  { %6181 = vsyncadd [#allocation7], 4294966784 }
  0xbd   :  { %6182 = dma.done.wait [#allocation10], 1280  }
  0xbe   :  { %6183 = vsyncadd [#allocation10], 4294966016 }
  0xbf   :  { %6184 = dma.done.wait [#allocation13], 3072  }
  0xc0   :  { %6185 = vsyncadd [#allocation13], 4294964224 }
  0xc1   :  { %6186 = dma.done.wait [#allocation16], 4096  }
  0xc2   :  { %6187 = vsyncadd [#allocation16], 4294963200 }
  0xc3   :  { %6188 = dma.done.wait [#allocation19], 2048  }
  0xc4   :  { %6189 = vsyncadd [#allocation19], 4294965248  ;;  %v6209_v0 = vmov 0.0   ;;  %v6210_v1 = vmov 0   ;;  %vm6211_vm0 = vmmov 0   ;;  %v5679_v6 = vld [vmem:[#allocation11] sm:$0xff]   ;;  %v331_v32 = vlaneseq }
  0xc5   :  { %5002 = vmatprep.subr.bf16.mxu0 %v6209_v0  ;;  %537 = vmatprep.mubr.bf16.mxu1 %v6210_v1  ;;  %v5673_v2 = vld [vmem:[#allocation12 + $0x4] ss:$8 sps:$4 sm:$0xff]   ;;  %v5675_v3 = vld [vmem:[#allocation12] ss:$8 sps:$4 sm:$0xff]   ;;  %v5676_v4 = vld [vmem:[#allocation12 + $0x14] ss:$8 sps:$4 sm:$0xff]  }
  0xc6   :  { %5018 = vmatprep.mubr.msk.bf16.mxu0 %vm6211_vm0, %v6209_v0  ;;  %505 = vmatprep.subr.bf16.mxu1 %v5673_v2  ;;  %v5678_v5 = vld [vmem:[#allocation12 + $0x10] ss:$8 sps:$4 sm:$0xff]   ;;  %v5680_v7 = vld [vmem:[#allocation12 + $0x24] ss:$8 sps:$4 sm:$0xff]   ;;  %v5682_v9 = vld [vmem:[#allocation12 + $0x20] ss:$8 sps:$4 sm:$0xff]  }
  0xc7   :  { %506 = vmatpush1.bf16.msra.mxu1 %v5675_v3  ;;  %5003 = vmatpush3.bf16.msra.mxu0 %v5679_v6  ;;  %v5683_v8 = vld [vmem:[#allocation11 + $0x8] sm:$0xff]   ;;  %v5684_v10 = vld [vmem:[#allocation12 + $0x34] ss:$8 sps:$4 sm:$0xff]   ;;  %v5686_v12 = vld [vmem:[#allocation12 + $0x30] ss:$8 sps:$4 sm:$0xff]   ;;  %v6492_v33 = vshrl.u32 %v331_v32, 7 }
  0xc8   :  { %507 = vmatprep.subr.bf16.mxu1 %v5676_v4  ;;  %5004 = vmatprep.subr.bf16.mxu0 %v6209_v0  ;;  %v5687_v11 = vld [vmem:[#allocation11 + $0x10] sm:$0xff]   ;;  %v5688_v13 = vld [vmem:[#allocation12 + $0x44] ss:$8 sps:$4 sm:$0xff]   ;;  %v5691_v14 = vld [vmem:[#allocation11 + $0x18] sm:$0xff]   ;;  %vm560_vm1 = vcmask 130048   ;;  %s6212_s22 = smov 96  }
  0xc9   :  { %v5690_v15 = vld [vmem:[#allocation12 + $0x40] ss:$8 sps:$4 sm:$0xff]   ;;  %v5692_v16 = vld [vmem:[#allocation12 + $0x54] ss:$8 sps:$4 sm:$0xff]   ;;  %v5694_v18 = vld [vmem:[#allocation12 + $0x50] ss:$8 sps:$4 sm:$0xff]  }
  0xca   :  { %v5695_v17 = vld [vmem:[#allocation11 + $0x20] sm:$0xff]   ;;  %v5699_v20 = vld [vmem:[#allocation11 + $0x28] sm:$0xff]   ;;  %v5700_v22 = vld [vmem:[#allocation12 + $0x74] ss:$8 sps:$4 sm:$0xff]   ;;  %v550_v34 = vsub.s32 1, %v6492_v33  ;;  %v333_v35 = vsub.s32 0, %v6492_v33 }
  0xcb   :  { %508 = vmatpush1.bf16.msra.mxu1 %v5678_v5  ;;  %5005 = vmatpush3.bf16.msra.mxu0 %v5683_v8  ;;  %v5696_v19 = vld [vmem:[#allocation12 + $0x64] ss:$8 sps:$4 sm:$0xff]   ;;  %v5698_v21 = vld [vmem:[#allocation12 + $0x60] ss:$8 sps:$4 sm:$0xff]   ;;  %v5703_v23 = vld [vmem:[#allocation11 + $0x30] sm:$0xff]   ;;  %v556_v37 = vsub.s32 2, %v6492_v33 }
  0xcc   :  { %509 = vmatprep.subr.bf16.mxu1 %v5680_v7  ;;  %5006 = vmatprep.subr.bf16.mxu0 %v6209_v0  ;;  %v5702_v24 = vld [vmem:[#allocation12 + $0x70] ss:$8 sps:$4 sm:$0xff]   ;;  %v196_v28 = vld [vmem:[#allocation3] sm:$0xff]  ;;  %v197_v29 = vld [vmem:[#allocation3 + $0x8] sm:$0xff]  ;;  %s6213_s25 = smov 112   ;;  %s6214_s24 = smov 80  }
  0xcd   :  { %v198_v25 = vld [vmem:[#allocation6] sm:$0xff]  ;;  %v199_v26 = vld [vmem:[#allocation6 + $0x8] sm:$0xff]  ;;  %v330_v31 = vpack.c.bf16 %v197_v29, %v196_v28  ;;  %vm6510_vm2 = vmpackc.low %vm560_vm1, %vm560_vm1  ;;  %s6215_s26 = smov 48   ;;  %s6216_s9 = smov 32   ;;  %vm963_vm3 = vcmask 261248   ;;  %vm1174_vm4 = vcmask 392448  }
  0xce   :  { %v5704_v27 = vld [vmem:[#allocation11 + $0x38] sm:$0xff]   ;;  %v424_v30 = vpack.c.bf16 %v199_v26, %v198_v25  ;;  %v328_v36 = vld [vmem:[%s7151_s11] sm:$0xff]  ;;  %v6532_v60 = vld [vmem:[#allocation8] sm:$0xff]  ;;  %s6217_s23 = smov 16   ;;  %vm1385_vm5 = vcmask 523648   ;;  %vm1596_vm6 = vcmask 654848  }
  0xcf   :  { %510 = vmatpush1.bf16.msra.mxu1 %v5682_v9  ;;  %5007 = vmatpush3.bf16.msra.mxu0 %v5687_v11  ;;  %v551_v38 = vrot.slane %v328_v36, %v550_v34  ;;  %v334_v39 = vrot.slane %v328_v36, %v333_v35  ;;  %v557_v41 = vrot.slane %v328_v36, %v556_v37  ;;  %v6534_v62 = vld [vmem:[#allocation8 + $0x8] sm:$0xff]  ;;  %vm1807_vm7 = vcmask 786048  }
  0xd0   :  { %511 = vmatprep.subr.bf16.mxu1 %v5684_v10  ;;  %5008 = vmatprep.subr.bf16.mxu0 %v6209_v0  ;;  %vm2018_vm8 = vcmask 917248   ;;  %vm2229_vm9 = vcmask 1048448  }
  0xd3   :  { %512 = vmatpush1.bf16.msra.mxu1 %v5686_v12  ;;  %5009 = vmatpush3.bf16.msra.mxu0 %v5691_v14 }
  0xd4   :  { %513 = vmatprep.subr.bf16.mxu1 %v5688_v13  ;;  %5010 = vmatprep.subr.bf16.mxu0 %v6209_v0 }
  0xd7   :  { %514 = vmatpush1.bf16.msra.mxu1 %v5690_v15  ;;  %5011 = vmatpush3.bf16.msra.mxu0 %v5695_v17 }
  0xd8   :  { %515 = vmatprep.subr.bf16.mxu1 %v5692_v16  ;;  %5012 = vmatprep.subr.bf16.mxu0 %v6209_v0 }
  0xdb   :  { %516 = vmatpush1.bf16.msra.mxu1 %v5694_v18  ;;  %5013 = vmatpush3.bf16.msra.mxu0 %v5699_v20 }
  0xdc   :  { %517 = vmatprep.subr.bf16.mxu1 %v5696_v19  ;;  %5014 = vmatprep.subr.bf16.mxu0 %v6209_v0 }
  0xdf   :  { %518 = vmatpush1.bf16.msra.mxu1 %v5698_v21  ;;  %5015 = vmatpush3.bf16.msra.mxu0 %v5703_v23 }
  0xe0   :  { %519 = vmatprep.subr.bf16.mxu1 %v5700_v22  ;;  %5016 = vmatprep.subr.bf16.mxu0 %v6209_v0 }
  0xe3   :  { %520 = vmatpush1.bf16.msra.mxu1 %v5702_v24  ;;  %5017 = vmatpush3.bf16.msra.mxu0 %v5704_v27 }
  0xe6   :  { %538 = vmatmul.mubr.bf16.vlgmr.msra.gmra.mrb[0].mxu1 %v424_v30  ;;  %5019 = vmatmul.mubr.bf16.vlgmr.msra.gmra.mrb[0].mxu0 %v330_v31 }
 0x1b9   :  { %v539_v40 = vpop.f32.mrb[0].mxu1  ;;  %v417_v44 = vpop.f32.mrb[0].mxu0 }
 0x1ba   :  { %v541_v42 = vpop.f32.mrb[1].mxu1  ;;  %v552_v45 = vadd.f32 %v551_v38, %v539_v40  ;;  %v6506_v48 = vadd.f32 %v417_v44, %v334_v39  ;;  %v5020_v49 = vpop.f32.mrb[1].mxu0 }
 0x1bb   :  { %v543_v43 = vpop.f32.mrb[2].mxu1  ;;  %v558_v50 = vadd.f32 %v557_v41, %v541_v42  ;;  %v420_v53 = vpop.f32.mrb[2].mxu0 }
 0x1bc   :  { %v553_v46 = vadd.f32 %v551_v38, %v543_v43  ;;  %v545_v47 = vpop.f32.mrb[3].mxu1  ;;  %v5021_v56 = vpop.f32.mrb[3].mxu0  ;;  %5026 = vmatprep.mubr.msk.f32.mxu0 %vm560_vm1, %v6506_v48  ;;  %v6528_v59 = vadd.f32 %v420_v53, %v334_v39 }
 0x1bd   :  { %v559_v51 = vadd.f32 %v557_v41, %v545_v47 }
 0x1be   :  { %v6514_v54 = vpack.i.bf16 %v553_v46, %v552_v45  ;;  %v5346_v55 = vpack.c.bf16 %v553_v46, %v552_v45 }
 0x1bf   :  { %v5352_v57 = vpack.c.bf16 %v559_v51, %v558_v50  ;;  %v6518_v58 = vpack.i.bf16 %v559_v51, %v558_v50 }
 0x1c0   :  { %5539 = vrot.lane.b32.xlu1 %v6514_v54, %s6212_s22  ;;  %5348 = vmatprep.subr.msk.bf16.mxu0 %vm6510_vm2, %v5346_v55 }
 0x1c1   :  { %5351 = vmatpush3.bf16.xpose.msk.msra.mxu0 %vm6510_vm2, %v5346_v55 }
 0x1c2   :  { %5353 = vmatprep.subr.bf16.mxu0 %v5352_v57 }
 0x1c4   :  { %753 = vrot.lane.b32.xlu1 %v6506_v48, %s6213_s25 }
 0x1c8   :  { %5027 = vmatmul.mubr.msk.f32.vlgmr.msra.gmra.mrb[4].mxu0 %vm560_vm1, %v6528_v59 }
 0x1c9   :  { %5355 = vmatpush3.bf16.msra.mxu0 %v5352_v57 }
 0x232   :  { %v5540_v20 = vpop.permute.xlu1 %5539 }
 0x233   :  { %v5542_v26 = vunpack.i.h.bf16 %v5540_v20  ;;  %v5541_v27 = vunpack.i.l.bf16 %v5540_v20 }
 0x235   :  { %v5366_v30 = vpack.c.bf16 %v5542_v26, %v5541_v27 }
 0x236   :  { %v754_v21 = vpop.permute.xlu1 %753 }
 0x29b   :  { %v5028_v61 = vpop.f32.mrb[4].mxu0 }
 0x29c   :  { %v639_v63 = vpop.f32.mrb[5].mxu0  ;;  %v645_v3 = vadd.f32 %v5028_v61, %v6534_v62 }
 0x29d   :  { %v640_v2 = vadd.f32 %v639_v63, %v6532_v60 }
 0x29e   :  { %v651_v5 = vsel %vm560_vm1, %v645_v3, -inf }
 0x29f   :  { %v648_v4 = vsel %vm560_vm1, %v640_v2, -inf }
 0x2a0   :  { %649 = vmax.xlane.f32.xlu0 %v648_v4 }
 0x2a4   :  { %652 = vmax.xlane.f32.xlu0 %v651_v5 }
 0x2ba   :  { %5534 = vrot.lane.b32.xlu0 %v6514_v54, %s6213_s25 }
 0x2be   :  { %966 = vrot.lane.b32.xlu0 %v6506_v48, %s6212_s22 }
 0x32d   :  { %v650_v6 = vpop.xlane.xlu0 %649 }
 0x32e   :  { %v654_v7 = vsub.f32 %v640_v2, %v650_v6 }
 0x330   :  { %v656_v10 = vmul.f32 1.442695, %v654_v7 }
 0x331   :  { %v653_v8 = vpop.xlane.xlu0 %652 }
 0x332   :  { %v655_v9 = vsub.f32 %v645_v3, %v653_v8 }
 0x334   :  { %v658_v11 = vmul.f32 1.442695, %v655_v9 }
 0x335   :  { %v5535_v12 = vpop.permute.xlu0 %5534 }
 0x336   :  { %5769 = vpow2.f32 %v658_v11  ;;  %v5537_v13 = vunpack.i.h.bf16 %v5535_v12  ;;  %v5536_v14 = vunpack.i.l.bf16 %v5535_v12 }
 0x337   :  { %5771 = vpow2.f32 %v656_v10 }
 0x338   :  { %v5356_v15 = vpack.c.bf16 %v5537_v13, %v5536_v14 }
 0x339   :  { %v967_v32 = vpop.permute.xlu0 %966 }
 0x33a   :  { %5358 = vmatprep.subr.msk.bf16.mxu0 %vm6510_vm2, %v5356_v15 }
 0x340   :  { %v5770_v16 = vpop.eup %5769 }
 0x341   :  { %v663_v17 = vsel %vm560_vm1, %v5770_v16, 0.0  ;;  %v5772_v18 = vpop.eup %5771 }
 0x342   :  { %664 = vadd.xlane.f32.xlu1 %v663_v17  ;;  %v660_v19 = vsel %vm560_vm1, %v5772_v18, 0.0 }
 0x346   :  { %661 = vadd.xlane.f32.xlu1 %v660_v19 }
 0x357   :  { %755 = vrot.lane.b32.xlu1 %v6528_v59, %s6213_s25 }
 0x35b   :  { %968 = vrot.lane.b32.xlu1 %v6528_v59, %s6212_s22 }
 0x3cf   :  { %v665_v22 = vpop.xlane.xlu1 %664 }
 0x3d0   :  { %5773 = vrcp.f32 %v665_v22 }
 0x3d3   :  { %v662_v23 = vpop.xlane.xlu1 %661 }
 0x3d4   :  { %5775 = vrcp.f32 %v662_v23 }
 0x3d7   :  { %v756_v31 = vpop.permute.xlu1 %755 }
 0x3da   :  { %v5774_v24 = vpop.eup %5773 }
 0x3db   :  { %v669_v29 = vmul.f32 %v5774_v24, %v5770_v16  ;;  %v969_v36 = vpop.permute.xlu1 %968 }
 0x3de   :  { %v5776_v25 = vpop.eup %5775 }
 0x3df   :  { %v668_v28 = vmul.f32 %v5776_v25, %v5772_v18 }
 0x3e1   :  { %5033 = vmatprep.mubr.msk.f32.mxu0 %vm560_vm1, %v668_v28 }
 0x3e2   :  { %5034 = vmatmul.mubr.msk.f32.vlgmr.msra.gmra.mrb[6].mxu0 %vm560_vm1, %v669_v29 }
 0x3e3   :  { %5361 = vmatpush3.bf16.xpose.msk.msra.mxu0 %vm6510_vm2, %v5356_v15  ;;  %5040 = vmatprep.mubr.msk.f32.mxu0 %vm560_vm1, %v754_v21 }
 0x3e4   :  { %5368 = vmatprep.subr.msk.bf16.mxu0 %vm6510_vm2, %v5366_v30 }
 0x3ea   :  { %5041 = vmatmul.mubr.msk.f32.vlgmr.msra.gmra.mrb[8].mxu0 %vm560_vm1, %v756_v31 }
 0x3eb   :  { %5371 = vmatpush3.bf16.xpose.msk.msra.mxu0 %vm6510_vm2, %v5366_v30  ;;  %5054 = vmatprep.mubr.msk.f32.mxu0 %vm560_vm1, %v967_v32 }
 0x3f2   :  { %5055 = vmatmul.mubr.msk.f32.vlgmr.msra.gmra.mrb[10].mxu0 %vm560_vm1, %v969_v36 }
 0x4b5   :  { %v5035_v38 = vpop.f32.mrb[6].mxu0 }
 0x4b6   :  { %752 = vst.msk [vmem:[#allocation2 + $0x8] sm:$0xff] %vm560_vm1, %v5035_v38  ;;  %v742_v39 = vpop.f32.mrb[7].mxu0 }
 0x4b7   :  { %751 = vst.msk [vmem:[#allocation2] sm:$0xff] %vm560_vm1, %v742_v39 }
 0x4bd   :  { %v5042_v40 = vpop.f32.mrb[8].mxu0 }
 0x4be   :  { %v835_v41 = vpop.f32.mrb[9].mxu0  ;;  %v841_v49 = vadd.f32 %v5042_v40, %v6534_v62 }
 0x4bf   :  { %v836_v11 = vadd.f32 %v835_v41, %v6532_v60 }
 0x4c0   :  { %v847_v50 = vsel %vm560_vm1, %v841_v49, -inf }
 0x4c1   :  { %v844_v12 = vsel %vm560_vm1, %v836_v11, -inf }
 0x4c5   :  { %v5056_v42 = vpop.f32.mrb[10].mxu0 }
 0x4c6   :  { %v1054_v43 = vadd.f32 %v5056_v42, %v6534_v62  ;;  %v1048_v44 = vpop.f32.mrb[11].mxu0 }
 0x4c7   :  { %v1049_v45 = vadd.f32 %v1048_v44, %v6532_v60 }
 0x4c8   :  { %v1060_v46 = vsel %vm560_vm1, %v1054_v43, -inf }
 0x4c9   :  { %1061 = vmax.xlane.f32.xlu1 %v1060_v46  ;;  %v1057_v47 = vsel %vm560_vm1, %v1049_v45, -inf }
 0x4ca   :  { %1058 = vmax.xlane.f32.xlu0 %v1057_v47 }
 0x4da   :  { %5549 = vrot.lane.b32.xlu1 %v6514_v54, %s6214_s24 }
 0x4de   :  { %1177 = vrot.lane.b32.xlu1 %v6506_v48, %s6214_s24 }
 0x4e2   :  { %1179 = vrot.lane.b32.xlu1 %v6528_v59, %s6214_s24 }
 0x506   :  { %848 = vmax.xlane.f32.xlu1 %v847_v50 }
 0x556   :  { %v1062_v51 = vpop.xlane.xlu1 %1061 }
 0x557   :  { %v1064_v53 = vsub.f32 %v1054_v43, %v1062_v51  ;;  %v1059_v55 = vpop.xlane.xlu0 %1058 }
 0x558   :  { %v1063_v56 = vsub.f32 %v1049_v45, %v1059_v55 }
 0x559   :  { %v1067_v57 = vmul.f32 1.442695, %v1064_v53 }
 0x55a   :  { %v1065_v61 = vmul.f32 1.442695, %v1063_v56  ;;  %v5550_v5 = vpop.permute.xlu1 %5549 }
 0x55b   :  { %5777 = vpow2.f32 %v1067_v57  ;;  %v5552_v18 = vunpack.i.h.bf16 %v5550_v5  ;;  %v5551_v19 = vunpack.i.l.bf16 %v5550_v5 }
 0x55c   :  { %5779 = vpow2.f32 %v1065_v61 }
 0x55d   :  { %v5376_v23 = vpack.c.bf16 %v5552_v18, %v5551_v19 }
 0x55e   :  { %v1178_v6 = vpop.permute.xlu1 %1177 }
 0x562   :  { %v1180_v7 = vpop.permute.xlu1 %1179 }
 0x565   :  { %v5778_v63 = vpop.eup %5777 }
 0x566   :  { %v1072_v2 = vsel %vm560_vm1, %v5778_v63, 0.0  ;;  %v5780_v3 = vpop.eup %5779 }
 0x567   :  { %1073 = vadd.xlane.f32.xlu0 %v1072_v2  ;;  %v1069_v4 = vsel %vm560_vm1, %v5780_v3, 0.0 }
 0x56b   :  { %1070 = vadd.xlane.f32.xlu0 %v1069_v4 }
 0x581   :  { %5544 = vrot.lane.b32.xlu0 %v6518_v58, %s6212_s22 }
 0x593   :  { %v849_v8 = vpop.xlane.xlu1 %848 }
 0x594   :  { %v851_v9 = vsub.f32 %v841_v49, %v849_v8 }
 0x596   :  { %v854_v10 = vmul.f32 1.442695, %v851_v9 }
 0x598   :  { %5781 = vpow2.f32 %v854_v10 }
 0x5a0   :  { %845 = vmax.xlane.f32.xlu0 %v844_v12 }
 0x5a2   :  { %v6584_v13 = vpop.eup %5781 }
 0x5a3   :  { %v859_v14 = vsel %vm560_vm1, %v6584_v13, 0.0 }
 0x5a4   :  { %860 = vadd.xlane.f32.xlu1 %v859_v14 }
 0x5f4   :  { %v1074_v15 = vpop.xlane.xlu0 %1073 }
 0x5f5   :  { %5783 = vrcp.f32 %v1074_v15 }
 0x5f8   :  { %v1071_v16 = vpop.xlane.xlu0 %1070 }
 0x5f9   :  { %5785 = vrcp.f32 %v1071_v16 }
 0x5fc   :  { %v5545_v17 = vpop.permute.xlu0 %5544 }
 0x5fd   :  { %v5547_v20 = vunpack.i.h.bf16 %v5545_v17  ;;  %v5546_v21 = vunpack.i.l.bf16 %v5545_v17 }
 0x5ff   :  { %v5372_v22 = vpack.c.bf16 %v5547_v20, %v5546_v21  ;;  %v5784_v24 = vpop.eup %5783 }
 0x600   :  { %v1078_v27 = vmul.f32 %v5784_v24, %v5778_v63 }
 0x601   :  { %5373 = vmatprep.subr.bf16.mxu0 %v5372_v22 }
 0x602   :  { %5375 = vmatpush3.bf16.msra.mxu0 %v5372_v22 }
 0x603   :  { %v5786_v25 = vpop.eup %5785  ;;  %5378 = vmatprep.subr.msk.bf16.mxu0 %vm6510_vm2, %v5376_v23 }
 0x604   :  { %v1077_v26 = vmul.f32 %v5786_v25, %v5780_v3 }
 0x606   :  { %5061 = vmatprep.mubr.msk.f32.mxu0 %vm560_vm1, %v1077_v26 }
 0x607   :  { %5062 = vmatmul.mubr.msk.f32.vlgmr.msra.gmra.mrb[12].mxu0 %vm560_vm1, %v1078_v27 }
 0x608   :  { %5068 = vmatprep.mubr.msk.f32.mxu0 %vm560_vm1, %v1178_v6 }
 0x60b   :  { %5381 = vmatpush3.bf16.xpose.msk.msra.mxu0 %vm6510_vm2, %v5376_v23 }
 0x612   :  { %5069 = vmatmul.mubr.msk.f32.vlgmr.msra.gmra.mrb[14].mxu0 %vm560_vm1, %v1180_v7 }
 0x62d   :  { %v846_v28 = vpop.xlane.xlu0 %845 }
 0x62e   :  { %v850_v31 = vsub.f32 %v836_v11, %v846_v28 }
 0x630   :  { %v852_v32 = vmul.f32 1.442695, %v850_v31 }
 0x631   :  { %v861_v3 = vpop.xlane.xlu1 %860 }
 0x632   :  { %5787 = vpow2.f32 %v852_v32 }
 0x63c   :  { %v5788_v43 = vpop.eup %5787 }
 0x63d   :  { %v856_v44 = vsel %vm560_vm1, %v5788_v43, 0.0 }
 0x6da   :  { %v6596_v29 = vpop.f32.mrb[12].mxu0 }
 0x6db   :  { %v6598_v30 = vpop.f32.mrb[13].mxu0 }
 0x6e5   :  { %v5070_v36 = vpop.f32.mrb[14].mxu0 }
 0x6e6   :  { %v1259_v38 = vpop.f32.mrb[15].mxu0  ;;  %v1265_v40 = vadd.f32 %v5070_v36, %v6534_v62 }
 0x6e7   :  { %v1260_v39 = vadd.f32 %v1259_v38, %v6532_v60 }
 0x6e8   :  { %v1271_v42 = vsel %vm560_vm1, %v1265_v40, -inf }
 0x6e9   :  { %v1268_v41 = vsel %vm560_vm1, %v1260_v39, -inf }
 0x6ea   :  { %1269 = vmax.xlane.f32.xlu0 %v1268_v41 }
 0x6ee   :  { %1272 = vmax.xlane.f32.xlu0 %v1271_v42 }
 0x6f2   :  { %857 = vadd.xlane.f32.xlu0 %v856_v44 }
 0x777   :  { %v1270_v45 = vpop.xlane.xlu0 %1269 }
 0x778   :  { %v1274_v46 = vsub.f32 %v1260_v39, %v1270_v45 }
 0x77a   :  { %v1276_v47 = vmul.f32 1.442695, %v1274_v46 }
 0x77b   :  { %v1273_v49 = vpop.xlane.xlu0 %1272 }
 0x77c   :  { %5789 = vpow2.f32 %v1276_v47  ;;  %v1275_v50 = vsub.f32 %v1265_v40, %v1273_v49 }
 0x77e   :  { %v1278_v51 = vmul.f32 1.442695, %v1275_v50 }
 0x77f   :  { %v858_v53 = vpop.xlane.xlu0 %857 }
 0x780   :  { %5791 = vpow2.f32 %v1278_v51 }
 0x781   :  { %5793 = vrcp.f32 %v858_v53 }
 0x782   :  { %5795 = vrcp.f32 %v861_v3 }
 0x786   :  { %v5790_v55 = vpop.eup %5789 }
 0x787   :  { %v1280_v56 = vsel %vm560_vm1, %v5790_v55, 0.0 }
 0x788   :  { %1281 = vadd.xlane.f32.xlu0 %v1280_v56 }
 0x78a   :  { %v5792_v57 = vpop.eup %5791 }
 0x78b   :  { %v5794_v61 = vpop.eup %5793  ;;  %v1283_v63 = vsel %vm560_vm1, %v5792_v57, 0.0 }
 0x78c   :  { %1284 = vadd.xlane.f32.xlu1 %v1283_v63  ;;  %v864_v2 = vmul.f32 %v5794_v61, %v5788_v43  ;;  %v5796_v10 = vpop.eup %5795 }
 0x78d   :  { %v865_v16 = vmul.f32 %v5796_v10, %v6584_v13 }
 0x78e   :  { %5047 = vmatprep.mubr.msk.f32.mxu1 %vm560_vm1, %v864_v2 }
 0x79d   :  { %5559 = vrot.lane.b32.xlu1 %v6518_v58, %s6214_s24 }
 0x79e   :  { %5554 = vrot.lane.b32.xlu0 %v6518_v58, %s6213_s25 }
 0x7a1   :  { %5564 = vrot.lane.b32.xlu1 %v6514_v54, %s6202_s14 }
 0x7a2   :  { %1390 = vrot.lane.b32.xlu0 %v6528_v59, %s6202_s14 }
 0x7a5   :  { %1388 = vrot.lane.b32.xlu1 %v6506_v48, %s6202_s14 }
 0x815   :  { %v1282_v4 = vpop.xlane.xlu0 %1281 }
 0x816   :  { %5797 = vrcp.f32 %v1282_v4 }
 0x819   :  { %v1285_v5 = vpop.xlane.xlu1 %1284  ;;  %v5555_v6 = vpop.permute.xlu0 %5554 }
 0x81a   :  { %5799 = vrcp.f32 %v1285_v5  ;;  %v5557_v7 = vunpack.i.h.bf16 %v5555_v6  ;;  %v5556_v8 = vunpack.i.l.bf16 %v5555_v6 }
 0x81c   :  { %v5362_v9 = vpack.c.bf16 %v5557_v7, %v5556_v8 }
 0x81d   :  { %v5560_v11 = vpop.permute.xlu1 %5559  ;;  %v1391_v13 = vpop.permute.xlu0 %1390 }
 0x81e   :  { %v5562_v12 = vunpack.i.h.bf16 %v5560_v11  ;;  %v5561_v14 = vunpack.i.l.bf16 %v5560_v11  ;;  %5363 = vmatprep.subr.bf16.mxu1 %v5362_v9 }
 0x81f   :  { %5365 = vmatpush3.bf16.msra.mxu1 %v5362_v9 }
 0x820   :  { %v5798_v15 = vpop.eup %5797  ;;  %v5382_v17 = vpack.c.bf16 %v5562_v12, %v5561_v14 }
 0x821   :  { %v5565_v18 = vpop.permute.xlu1 %5564  ;;  %v1288_v19 = vmul.f32 %v5798_v15, %v5790_v55 }
 0x822   :  { %v5567_v20 = vunpack.i.h.bf16 %v5565_v18  ;;  %v5566_v21 = vunpack.i.l.bf16 %v5565_v18  ;;  %5048 = vmatmul.mubr.msk.f32.vlgmr.msra.gmra.mrb[4].mxu1 %vm560_vm1, %v865_v16  ;;  %5383 = vmatprep.subr.bf16.mxu1 %v5382_v17 }
 0x823   :  { %5385 = vmatpush3.bf16.msra.mxu1 %v5382_v17  ;;  %5075 = vmatprep.mubr.msk.f32.mxu1 %vm560_vm1, %v1288_v19 }
 0x824   :  { %v5800_v22 = vpop.eup %5799  ;;  %v5386_v23 = vpack.c.bf16 %v5567_v20, %v5566_v21 }
 0x825   :  { %v1289_v24 = vmul.f32 %v5800_v22, %v5792_v57  ;;  %v1389_v25 = vpop.permute.xlu1 %1388 }
 0x826   :  { %5388 = vmatprep.subr.msk.bf16.mxu1 %vm6510_vm2, %v5386_v23 }
 0x827   :  { %5076 = vmatmul.mubr.msk.f32.vlgmr.msra.gmra.mrb[6].mxu1 %vm560_vm1, %v1289_v24 }
 0x828   :  { %5082 = vmatprep.mubr.msk.f32.mxu1 %vm560_vm1, %v1389_v25 }
 0x82c   :  { %5391 = vmatpush3.bf16.xpose.msk.msra.mxu1 %vm6510_vm2, %v5386_v23 }
 0x833   :  { %5083 = vmatmul.mubr.msk.f32.vlgmr.msra.gmra.mrb[8].mxu1 %vm560_vm1, %v1391_v13 }
 0x8f5   :  { %v6628_v26 = vpop.f32.mrb[4].mxu1 }
 0x8f6   :  { %v6630_v27 = vpop.f32.mrb[5].mxu1 }
 0x8fa   :  { %v6632_v28 = vpop.f32.mrb[6].mxu1 }
 0x8fb   :  { %v6634_v31 = vpop.f32.mrb[7].mxu1 }
 0x906   :  { %v5084_v32 = vpop.f32.mrb[8].mxu1 }
 0x907   :  { %v1476_v36 = vadd.f32 %v5084_v32, %v6534_v62  ;;  %v1470_v38 = vpop.f32.mrb[9].mxu1 }
 0x908   :  { %v1471_v39 = vadd.f32 %v1470_v38, %v6532_v60 }
 0x909   :  { %v1482_v40 = vsel %vm560_vm1, %v1476_v36, -inf }
 0x90a   :  { %1483 = vmax.xlane.f32.xlu0 %v1482_v40  ;;  %v1479_v41 = vsel %vm560_vm1, %v1471_v39, -inf }
 0x90b   :  { %1480 = vmax.xlane.f32.xlu1 %v1479_v41 }
 0x91c   :  { %5569 = vrot.lane.b32.xlu1 %v6518_v58, %s6202_s14 }
 0x920   :  { %1599 = vrot.lane.b32.xlu1 %v6506_v48, %s6215_s26 }
 0x924   :  { %1601 = vrot.lane.b32.xlu1 %v6528_v59, %s6215_s26 }
 0x997   :  { %v1484_v42 = vpop.xlane.xlu0 %1483 }
 0x998   :  { %v1486_v43 = vsub.f32 %v1476_v36, %v1484_v42  ;;  %v1481_v44 = vpop.xlane.xlu1 %1480 }
 0x999   :  { %v1485_v45 = vsub.f32 %v1471_v39, %v1481_v44 }
 0x99a   :  { %v1489_v46 = vmul.f32 1.442695, %v1486_v43 }
 0x99b   :  { %v1487_v47 = vmul.f32 1.442695, %v1485_v45 }
 0x99c   :  { %5801 = vpow2.f32 %v1489_v46  ;;  %v5570_v49 = vpop.permute.xlu1 %5569 }
 0x99d   :  { %v5572_v50 = vunpack.i.h.bf16 %v5570_v49  ;;  %v5571_v51 = vunpack.i.l.bf16 %v5570_v49  ;;  %5803 = vpow2.f32 %v1487_v47 }
 0x99f   :  { %v5392_v53 = vpack.c.bf16 %v5572_v50, %v5571_v51 }
 0x9a0   :  { %v1600_v11 = vpop.permute.xlu1 %1599 }
 0x9a1   :  { %5393 = vmatprep.subr.bf16.mxu0 %v5392_v53 }
 0x9a2   :  { %5395 = vmatpush3.bf16.msra.mxu0 %v5392_v53 }
 0x9a4   :  { %v1602_v12 = vpop.permute.xlu1 %1601 }
 0x9a6   :  { %v5802_v55 = vpop.eup %5801 }
 0x9a7   :  { %v1494_v56 = vsel %vm560_vm1, %v5802_v55, 0.0  ;;  %v5804_v57 = vpop.eup %5803 }
 0x9a8   :  { %1495 = vadd.xlane.f32.xlu0 %v1494_v56  ;;  %v1491_v61 = vsel %vm560_vm1, %v5804_v57, 0.0 }
 0x9ac   :  { %1492 = vadd.xlane.f32.xlu0 %v1491_v61 }
 0x9c2   :  { %5574 = vrot.lane.b32.xlu0 %v6514_v54, %s6215_s26 }
 0xa35   :  { %v1496_v63 = vpop.xlane.xlu0 %1495 }
 0xa36   :  { %5805 = vrcp.f32 %v1496_v63 }
 0xa39   :  { %v1493_v2 = vpop.xlane.xlu0 %1492 }
 0xa3a   :  { %5807 = vrcp.f32 %v1493_v2 }
 0xa3d   :  { %v5575_v3 = vpop.permute.xlu0 %5574 }
 0xa3e   :  { %v5577_v4 = vunpack.i.h.bf16 %v5575_v3  ;;  %v5576_v5 = vunpack.i.l.bf16 %v5575_v3 }
 0xa40   :  { %v5396_v6 = vpack.c.bf16 %v5577_v4, %v5576_v5  ;;  %v5806_v7 = vpop.eup %5805 }
 0xa41   :  { %v1500_v10 = vmul.f32 %v5806_v7, %v5802_v55 }
 0xa42   :  { %5398 = vmatprep.subr.msk.bf16.mxu0 %vm6510_vm2, %v5396_v6 }
 0xa44   :  { %v5808_v8 = vpop.eup %5807 }
 0xa45   :  { %v1499_v9 = vmul.f32 %v5808_v8, %v5804_v57 }
 0xa47   :  { %5089 = vmatprep.mubr.msk.f32.mxu0 %vm560_vm1, %v1499_v9 }
 0xa48   :  { %5090 = vmatmul.mubr.msk.f32.vlgmr.msra.gmra.mrb[16].mxu0 %vm560_vm1, %v1500_v10 }
 0xa49   :  { %5401 = vmatpush3.bf16.xpose.msk.msra.mxu0 %vm6510_vm2, %v5396_v6  ;;  %5096 = vmatprep.mubr.msk.f32.mxu0 %vm560_vm1, %v1600_v11 }
 0xa50   :  { %5097 = vmatmul.mubr.msk.f32.vlgmr.msra.gmra.mrb[18].mxu0 %vm560_vm1, %v1602_v12 }
 0xb1b   :  { %v6658_v14 = vpop.f32.mrb[16].mxu0 }
 0xb1c   :  { %v6660_v15 = vpop.f32.mrb[17].mxu0 }
 0xb23   :  { %v5098_v16 = vpop.f32.mrb[18].mxu0 }
 0xb24   :  { %v1687_v17 = vadd.f32 %v5098_v16, %v6534_v62  ;;  %v1681_v18 = vpop.f32.mrb[19].mxu0 }
 0xb25   :  { %v1682_v19 = vadd.f32 %v1681_v18, %v6532_v60 }
 0xb26   :  { %v1693_v20 = vsel %vm560_vm1, %v1687_v17, -inf }
 0xb27   :  { %1694 = vmax.xlane.f32.xlu0 %v1693_v20  ;;  %v1690_v21 = vsel %vm560_vm1, %v1682_v19, -inf }
 0xb28   :  { %1691 = vmax.xlane.f32.xlu1 %v1690_v21 }
 0xb39   :  { %5579 = vrot.lane.b32.xlu1 %v6518_v58, %s6215_s26 }
 0xb3d   :  { %1810 = vrot.lane.b32.xlu1 %v6506_v48, %s6216_s9 }
 0xb41   :  { %1812 = vrot.lane.b32.xlu1 %v6528_v59, %s6216_s9 }
 0xbb4   :  { %v1695_v22 = vpop.xlane.xlu0 %1694 }
 0xbb5   :  { %v1697_v23 = vsub.f32 %v1687_v17, %v1695_v22  ;;  %v1692_v24 = vpop.xlane.xlu1 %1691 }
 0xbb6   :  { %v1696_v25 = vsub.f32 %v1682_v19, %v1692_v24 }
 0xbb7   :  { %v1700_v13 = vmul.f32 1.442695, %v1697_v23 }
 0xbb8   :  { %v1698_v32 = vmul.f32 1.442695, %v1696_v25 }
 0xbb9   :  { %5809 = vpow2.f32 %v1700_v13  ;;  %v5580_v36 = vpop.permute.xlu1 %5579 }
 0xbba   :  { %v5582_v38 = vunpack.i.h.bf16 %v5580_v36  ;;  %v5581_v39 = vunpack.i.l.bf16 %v5580_v36  ;;  %5811 = vpow2.f32 %v1698_v32 }
 0xbbc   :  { %v5402_v40 = vpack.c.bf16 %v5582_v38, %v5581_v39 }
 0xbbd   :  { %v1811_v61 = vpop.permute.xlu1 %1810 }
 0xbbe   :  { %5403 = vmatprep.subr.bf16.mxu1 %v5402_v40 }
 0xbbf   :  { %5405 = vmatpush3.bf16.msra.mxu1 %v5402_v40 }
 0xbc1   :  { %v1813_v63 = vpop.permute.xlu1 %1812 }
 0xbc3   :  { %v5810_v41 = vpop.eup %5809 }
 0xbc4   :  { %v1705_v42 = vsel %vm560_vm1, %v5810_v41, 0.0  ;;  %v5812_v43 = vpop.eup %5811 }
 0xbc5   :  { %1706 = vadd.xlane.f32.xlu0 %v1705_v42  ;;  %v1702_v44 = vsel %vm560_vm1, %v5812_v43, 0.0 }
 0xbc9   :  { %1703 = vadd.xlane.f32.xlu0 %v1702_v44 }
 0xbdf   :  { %5584 = vrot.lane.b32.xlu0 %v6514_v54, %s6216_s9 }
 0xc52   :  { %v1707_v45 = vpop.xlane.xlu0 %1706 }
 0xc53   :  { %5813 = vrcp.f32 %v1707_v45 }
 0xc56   :  { %v1704_v46 = vpop.xlane.xlu0 %1703 }
 0xc57   :  { %5815 = vrcp.f32 %v1704_v46 }
 0xc5a   :  { %v5585_v47 = vpop.permute.xlu0 %5584 }
 0xc5b   :  { %v5587_v49 = vunpack.i.h.bf16 %v5585_v47  ;;  %v5586_v50 = vunpack.i.l.bf16 %v5585_v47 }
 0xc5d   :  { %v5406_v51 = vpack.c.bf16 %v5587_v49, %v5586_v50  ;;  %v5814_v53 = vpop.eup %5813 }
 0xc5e   :  { %v1711_v57 = vmul.f32 %v5814_v53, %v5810_v41 }
 0xc5f   :  { %5408 = vmatprep.subr.msk.bf16.mxu1 %vm6510_vm2, %v5406_v51 }
 0xc61   :  { %v5816_v55 = vpop.eup %5815 }
 0xc62   :  { %v1710_v56 = vmul.f32 %v5816_v55, %v5812_v43 }
 0xc64   :  { %5103 = vmatprep.mubr.msk.f32.mxu1 %vm560_vm1, %v1710_v56 }
 0xc65   :  { %5104 = vmatmul.mubr.msk.f32.vlgmr.msra.gmra.mrb[10].mxu1 %vm560_vm1, %v1711_v57 }
 0xc66   :  { %5411 = vmatpush3.bf16.xpose.msk.msra.mxu1 %vm6510_vm2, %v5406_v51  ;;  %5110 = vmatprep.mubr.msk.f32.mxu1 %vm560_vm1, %v1811_v61 }
 0xc6d   :  { %5111 = vmatmul.mubr.msk.f32.vlgmr.msra.gmra.mrb[12].mxu1 %vm560_vm1, %v1813_v63 }
 0xd38   :  { %v6684_v2 = vpop.f32.mrb[10].mxu1 }
 0xd39   :  { %v6686_v3 = vpop.f32.mrb[11].mxu1 }
 0xd40   :  { %v5112_v4 = vpop.f32.mrb[12].mxu1 }
 0xd41   :  { %v1898_v5 = vadd.f32 %v5112_v4, %v6534_v62  ;;  %v1892_v6 = vpop.f32.mrb[13].mxu1 }
 0xd42   :  { %v1893_v7 = vadd.f32 %v1892_v6, %v6532_v60 }
 0xd43   :  { %v1904_v8 = vsel %vm560_vm1, %v1898_v5, -inf }
 0xd44   :  { %1905 = vmax.xlane.f32.xlu0 %v1904_v8  ;;  %v1901_v9 = vsel %vm560_vm1, %v1893_v7, -inf }
 0xd45   :  { %1902 = vmax.xlane.f32.xlu1 %v1901_v9 }
 0xd56   :  { %5589 = vrot.lane.b32.xlu1 %v6518_v58, %s6216_s9 }
 0xd5a   :  { %2021 = vrot.lane.b32.xlu1 %v6506_v48, %s6217_s23 }
 0xd5e   :  { %2023 = vrot.lane.b32.xlu1 %v6528_v59, %s6217_s23 }
 0xdd1   :  { %v1906_v10 = vpop.xlane.xlu0 %1905 }
 0xdd2   :  { %v1908_v11 = vsub.f32 %v1898_v5, %v1906_v10  ;;  %v1903_v12 = vpop.xlane.xlu1 %1902 }
 0xdd3   :  { %v1907_v16 = vsub.f32 %v1893_v7, %v1903_v12 }
 0xdd4   :  { %v1911_v17 = vmul.f32 1.442695, %v1908_v11 }
 0xdd5   :  { %v1909_v18 = vmul.f32 1.442695, %v1907_v16 }
 0xdd6   :  { %5817 = vpow2.f32 %v1911_v17  ;;  %v5590_v19 = vpop.permute.xlu1 %5589 }
 0xdd7   :  { %v5592_v20 = vunpack.i.h.bf16 %v5590_v19  ;;  %v5591_v21 = vunpack.i.l.bf16 %v5590_v19  ;;  %5819 = vpow2.f32 %v1909_v18 }
 0xdd9   :  { %v5412_v22 = vpack.c.bf16 %v5592_v20, %v5591_v21  ;;  %v5705_v21 = vld [vmem:[#allocation14] sm:$0xff]  }
 0xdda   :  { %v2022_v44 = vpop.permute.xlu1 %2021 }
 0xddb   :  { %5413 = vmatprep.subr.bf16.mxu0 %v5412_v22 }
 0xddc   :  { %5415 = vmatpush3.bf16.msra.mxu0 %v5412_v22  ;;  %v5706_v22 = vld [vmem:[#allocation14 + $0x8] sm:$0xff]  }
 0xde0   :  { %v5818_v23 = vpop.eup %5817 }
 0xde1   :  { %v1916_v48 = vsel %vm560_vm1, %v5818_v23, 0.0  ;;  %v5820_v24 = vpop.eup %5819 }
 0xde2   :  { %1917 = vadd.xlane.f32.xlu0 %v1916_v48  ;;  %v1913_v59 = vsel %vm560_vm1, %v5820_v24, 0.0  ;;  %v5708_v48 = vld [vmem:[#allocation14 + $0x18] sm:$0xff]  }
 0xde6   :  { %1914 = vadd.xlane.f32.xlu0 %v1913_v59  ;;  %v5710_v59 = vld [vmem:[#allocation14 + $0x28] sm:$0xff]  }
 0xdfc   :  { %5594 = vrot.lane.b32.xlu0 %v6514_v54, %s6217_s23  ;;  %v2024_v54 = vpop.permute.xlu1 %2023 }
 0xe6f   :  { %v1918_v25 = vpop.xlane.xlu0 %1917 }
 0xe70   :  { %5821 = vrcp.f32 %v1918_v25  ;;  %v5711_v25 = vld [vmem:[#allocation14 + $0x30] sm:$0xff]  }
 0xe73   :  { %v1915_v13 = vpop.xlane.xlu0 %1914 }
 0xe74   :  { %5823 = vrcp.f32 %v1915_v13  ;;  %v5712_v13 = vld [vmem:[#allocation14 + $0x38] sm:$0xff]  }
 0xe77   :  { %v5595_v32 = vpop.permute.xlu0 %5594 }
 0xe78   :  { %v5597_v36 = vunpack.i.h.bf16 %v5595_v32  ;;  %v5596_v38 = vunpack.i.l.bf16 %v5595_v32 }
 0xe7a   :  { %v5416_v39 = vpack.c.bf16 %v5597_v36, %v5596_v38  ;;  %v5822_v40 = vpop.eup %5821 }
 0xe7b   :  { %v1922_v43 = vmul.f32 %v5822_v40, %v5818_v23  ;;  %v5707_v23 = vld [vmem:[#allocation14 + $0x10] sm:$0xff]  }
 0xe7c   :  { %5418 = vmatprep.subr.msk.bf16.mxu0 %vm6510_vm2, %v5416_v39 }
 0xe7e   :  { %v5824_v41 = vpop.eup %5823 }
 0xe7f   :  { %v1921_v42 = vmul.f32 %v5824_v41, %v5820_v24  ;;  %v5709_v24 = vld [vmem:[#allocation14 + $0x20] sm:$0xff]  }
 0xe81   :  { %5117 = vmatprep.mubr.msk.f32.mxu0 %vm560_vm1, %v1921_v42 }
 0xe82   :  { %5118 = vmatmul.mubr.msk.f32.vlgmr.msra.gmra.mrb[20].mxu0 %vm560_vm1, %v1922_v43  ;;  %v2237_v43 = vsub.s32 3, %v6492_v33 }
 0xe83   :  { %5421 = vmatpush3.bf16.xpose.msk.msra.mxu0 %vm6510_vm2, %v5416_v39  ;;  %5124 = vmatprep.mubr.msk.f32.mxu0 %vm560_vm1, %v2022_v44  ;;  %v6776_v44 = vld [vmem:[%s7151_s11] sm:$0xff] }
 0xe8a   :  { %5125 = vmatmul.mubr.msk.f32.vlgmr.msra.gmra.mrb[22].mxu0 %vm560_vm1, %v2024_v54  ;;  %v2238_v54 = vrot.slane %v6776_v44, %v2237_v43 }
 0xe8b   :  { %2526 = vmatprep.mubr.bf16.mxu0 %v6210_v1 }
 0xf55   :  { %v5119_v45 = vpop.f32.mrb[20].mxu0 }
 0xf56   :  { %v2001_v46 = vpop.f32.mrb[21].mxu0 }
 0xf5d   :  { %v5126_v47 = vpop.f32.mrb[22].mxu0 }
 0xf5e   :  { %v2109_v49 = vadd.f32 %v5126_v47, %v6534_v62  ;;  %v2103_v50 = vpop.f32.mrb[23].mxu0 }
 0xf5f   :  { %v2104_v51 = vadd.f32 %v2103_v50, %v6532_v60 }
 0xf60   :  { %v2115_v53 = vsel %vm560_vm1, %v2109_v49, -inf }
 0xf61   :  { %2116 = vmax.xlane.f32.xlu0 %v2115_v53  ;;  %v2112_v55 = vsel %vm560_vm1, %v2104_v51, -inf  ;;  %v5910_v53 = vld [vmem:[#allocation3] sm:$0xff] }
 0xf62   :  { %2113 = vmax.xlane.f32.xlu1 %v2112_v55 }
 0xf73   :  { %5599 = vrot.lane.b32.xlu1 %v6518_v58, %s6217_s23 }
 0xf77   :  { %959 = vrot.lane.b32.xlu1 %v6628_v26, %s6217_s23 }
 0xf7b   :  { %1168 = vrot.lane.b32.xlu1 %v6598_v30, %s6216_s9 }
 0xf7f   :  { %1170 = vrot.lane.b32.xlu1 %v6596_v29, %s6216_s9 }
 0xf83   :  { %1381 = vrot.lane.b32.xlu1 %v6632_v28, %s6215_s26 }
 0xf87   :  { %1592 = vrot.lane.b32.xlu1 %v6658_v14, %s6202_s14 }
 0xf8b   :  { %1803 = vrot.lane.b32.xlu1 %v6684_v2, %s6214_s24 }
 0xf8f   :  { %2014 = vrot.lane.b32.xlu1 %v5119_v45, %s6212_s22 }
 0xfee   :  { %v2117_v1 = vpop.xlane.xlu0 %2116 }
 0xfef   :  { %v2119_v58 = vsub.f32 %v2109_v49, %v2117_v1  ;;  %v2114_v60 = vpop.xlane.xlu1 %2113  ;;  %v5911_v1 = vld [vmem:[#allocation3 + $0x8] sm:$0xff] }
 0xff0   :  { %v2118_v62 = vsub.f32 %v2104_v51, %v2114_v60  ;;  %v5713_v60 = vld [vmem:[#allocation15] ss:$12 sps:$4 sm:$0xff]  }
 0xff1   :  { %v2122_v26 = vmul.f32 1.442695, %v2119_v58 }
 0xff2   :  { %v2120_v30 = vmul.f32 1.442695, %v2118_v62  ;;  %v5715_v62 = vld [vmem:[#allocation15 + $0x4] ss:$12 sps:$4 sm:$0xff]  }
 0xff3   :  { %v5600_v56 = vpop.permute.xlu1 %5599  ;;  %2494 = vmatprep.subr.bf16.mxu0 %v5715_v62 }
 0xff4   :  { %5825 = vpow2.f32 %v2120_v30  ;;  %v5602_v29 = vunpack.i.h.bf16 %v5600_v56  ;;  %v5601_v57 = vunpack.i.l.bf16 %v5600_v56  ;;  %v5719_v30 = vld [vmem:[#allocation15 + $0x1c] ss:$12 sps:$4 sm:$0xff]   ;;  %2495 = vmatpush1.bf16.msra.mxu0 %v5713_v60  ;;  %v5717_v56 = vld [vmem:[#allocation15 + $0x18] ss:$12 sps:$4 sm:$0xff]  }
 0xff5   :  { %5827 = vpow2.f32 %v2122_v26  ;;  %v5716_v26 = vld [vmem:[#allocation15 + $0x8] ss:$12 sps:$4 sm:$0xff]   ;;  %2496 = vmatprep.subr.bf16.mxu0 %v5719_v30 }
 0xff6   :  { %v5422_v28 = vpack.c.bf16 %v5602_v29, %v5601_v57 }
 0xff7   :  { %v960_v61 = vpop.permute.xlu1 %959 }
 0xff8   :  { %965 = vst.msk [vmem:[#allocation2 + $0x8] sm:$0xff] %vm963_vm3, %v960_v61  ;;  %5423 = vmatprep.subr.bf16.mxu1 %v5422_v28  ;;  %2497 = vmatpush1.bf16.msra.mxu0 %v5717_v56 }
 0xff9   :  { %5425 = vmatpush3.bf16.msra.mxu1 %v5422_v28 }
 0xffa   :  { %5134 = vmatprep.subr.bf16.mxu1 %v6209_v0 }
 0xffb   :  { %v1169_v14 = vpop.permute.xlu1 %1168 }
 0xffe   :  { %v5826_v63 = vpop.eup %5825 }
 0xfff   :  { %v1171_v2 = vpop.permute.xlu1 %1170  ;;  %v2124_v4 = vsel %vm560_vm1, %v5826_v63, 0.0  ;;  %v5828_v5 = vpop.eup %5827 }
0x1000   :  { %1176 = vst.msk [vmem:[#allocation2 + $0x8] sm:$0xff] %vm1174_vm4, %v1171_v2  ;;  %2125 = vadd.xlane.f32.xlu0 %v2124_v4  ;;  %v2127_v7 = vsel %vm560_vm1, %v5828_v5, 0.0 }
0x1003   :  { %v1382_v6 = vpop.permute.xlu1 %1381 }
0x1004   :  { %1387 = vst.msk [vmem:[#allocation2 + $0x8] sm:$0xff] %vm1385_vm5, %v1382_v6  ;;  %2128 = vadd.xlane.f32.xlu0 %v2127_v7  ;;  %v5723_v6 = vld [vmem:[#allocation15 + $0x34] ss:$12 sps:$4 sm:$0xff]   ;;  %v5721_v7 = vld [vmem:[#allocation15 + $0x30] ss:$12 sps:$4 sm:$0xff]  }
0x1005   :  { %2498 = vmatprep.subr.bf16.mxu0 %v5723_v6 }
0x1006   :  { %2499 = vmatpush1.bf16.msra.mxu0 %v5721_v7  ;;  %v6834_v7 = vld [vmem:[#allocation9 + $0x8] sm:$0xff] }
0x1007   :  { %v1593_v8 = vpop.permute.xlu1 %1592 }
0x1008   :  { %1598 = vst.msk [vmem:[#allocation2 + $0x8] sm:$0xff] %vm1596_vm6, %v1593_v8  ;;  %v5724_v8 = vld [vmem:[#allocation15 + $0x38] ss:$12 sps:$4 sm:$0xff]  }
0x100b   :  { %v1804_v9 = vpop.permute.xlu1 %1803 }
0x100c   :  { %1809 = vst.msk [vmem:[#allocation2 + $0x8] sm:$0xff] %vm1807_vm7, %v1804_v9  ;;  %v5727_v9 = vld [vmem:[#allocation15 + $0x4c] ss:$12 sps:$4 sm:$0xff]  }
0x100d   :  { %2500 = vmatprep.subr.bf16.mxu0 %v5727_v9 }
0x100f   :  { %v2015_v10 = vpop.permute.xlu1 %2014 }
0x1010   :  { %2020 = vst.msk [vmem:[#allocation2 + $0x8] sm:$0xff] %vm2018_vm8, %v2015_v10  ;;  %v5725_v10 = vld [vmem:[#allocation15 + $0x48] ss:$12 sps:$4 sm:$0xff]  }
0x1011   :  { %2501 = vmatpush1.bf16.msra.mxu0 %v5725_v10 }
0x101a   :  { %957 = vrot.lane.b32.xlu0 %v6630_v27, %s6217_s23 }
0x101e   :  { %1379 = vrot.lane.b32.xlu0 %v6634_v31, %s6215_s26 }
0x1022   :  { %1590 = vrot.lane.b32.xlu0 %v6660_v15, %s6202_s14 }
0x1026   :  { %1801 = vrot.lane.b32.xlu0 %v6686_v3, %s6214_s24 }
0x102a   :  { %2012 = vrot.lane.b32.xlu0 %v2001_v46, %s6212_s22 }
0x108d   :  { %v2126_v11 = vpop.xlane.xlu0 %2125 }
0x108e   :  { %5829 = vrcp.f32 %v2126_v11  ;;  %v5728_v11 = vld [vmem:[#allocation15 + $0x50] ss:$12 sps:$4 sm:$0xff]  }
0x1091   :  { %v2129_v12 = vpop.xlane.xlu0 %2128 }
0x1092   :  { %5831 = vrcp.f32 %v2129_v12  ;;  %v5731_v12 = vld [vmem:[#allocation15 + $0x64] ss:$12 sps:$4 sm:$0xff]  }
0x1093   :  { %2502 = vmatprep.subr.bf16.mxu0 %v5731_v12 }
0x1095   :  { %v958_v16 = vpop.permute.xlu0 %957 }
0x1096   :  { %964 = vst.msk [vmem:[#allocation2] sm:$0xff] %vm963_vm3, %v958_v16  ;;  %v5729_v16 = vld [vmem:[#allocation15 + $0x60] ss:$12 sps:$4 sm:$0xff]  }
0x1097   :  { %1175 = vst.msk [vmem:[#allocation2] sm:$0xff] %vm1174_vm4, %v1169_v14  ;;  %2503 = vmatpush1.bf16.msra.mxu0 %v5729_v16 }
0x1098   :  { %v5830_v27 = vpop.eup %5829 }
0x1099   :  { %v1380_v17 = vpop.permute.xlu0 %1379  ;;  %v2132_v31 = vmul.f32 %v5830_v27, %v5826_v63  ;;  %v5732_v27 = vld [vmem:[#allocation15 + $0x68] ss:$12 sps:$4 sm:$0xff]  }
0x109a   :  { %1386 = vst.msk [vmem:[#allocation2] sm:$0xff] %vm1385_vm5, %v1380_v17  ;;  %v5735_v17 = vld [vmem:[#allocation15 + $0x7c] ss:$12 sps:$4 sm:$0xff]  }
0x109b   :  { %5131 = vmatprep.mubr.msk.f32.mxu1 %vm560_vm1, %v2132_v31  ;;  %v5733_v31 = vld [vmem:[#allocation15 + $0x78] ss:$12 sps:$4 sm:$0xff]   ;;  %2504 = vmatprep.subr.bf16.mxu0 %v5735_v17 }
0x109c   :  { %v5832_v15 = vpop.eup %5831  ;;  %2505 = vmatpush1.bf16.msra.mxu0 %v5733_v31 }
0x109d   :  { %v1591_v3 = vpop.permute.xlu0 %1590  ;;  %v2133_v18 = vmul.f32 %v5832_v15, %v5828_v5  ;;  %v5720_v5 = vld [vmem:[#allocation15 + $0x20] ss:$12 sps:$4 sm:$0xff]  }
0x109e   :  { %1597 = vst.msk [vmem:[#allocation2] sm:$0xff] %vm1596_vm6, %v1591_v3  ;;  %v5736_v15 = vld [vmem:[#allocation15 + $0x80] ss:$12 sps:$4 sm:$0xff]  }
0x109f   :  { %5132 = vmatmul.mubr.msk.f32.vlgmr.msra.gmra.mrb[14].mxu1 %vm560_vm1, %v2133_v18  ;;  %v5739_v3 = vld [vmem:[#allocation15 + $0x94] ss:$12 sps:$4 sm:$0xff]   ;;  %v5737_v18 = vld [vmem:[#allocation15 + $0x90] ss:$12 sps:$4 sm:$0xff]  }
0x10a0   :  { %5150 = vmatprep.mubr.msk.bf16.mxu1 %vm6211_vm0, %v6209_v0  ;;  %5135 = vmatpush3.bf16.msra.mxu1 %v5705_v21  ;;  %v5741_v21 = vld [vmem:[#allocation15 + $0xa8] ss:$12 sps:$4 sm:$0xff]  }
0x10a1   :  { %v1802_v19 = vpop.permute.xlu0 %1801  ;;  %5136 = vmatprep.subr.bf16.mxu1 %v6209_v0  ;;  %2506 = vmatprep.subr.bf16.mxu0 %v5739_v3 }
0x10a2   :  { %1808 = vst.msk [vmem:[#allocation2] sm:$0xff] %vm1807_vm7, %v1802_v19  ;;  %v5740_v19 = vld [vmem:[#allocation15 + $0x98] ss:$12 sps:$4 sm:$0xff]   ;;  %2507 = vmatpush1.bf16.msra.mxu0 %v5737_v18 }
0x10a4   :  { %5137 = vmatpush3.bf16.msra.mxu1 %v5706_v22  ;;  %v5744_v22 = vld [vmem:[#allocation15 + $0xb0] ss:$12 sps:$4 sm:$0xff]  }
0x10a5   :  { %v2013_v20 = vpop.permute.xlu0 %2012  ;;  %5138 = vmatprep.subr.bf16.mxu1 %v6209_v0 }
0x10a6   :  { %2019 = vst.msk [vmem:[#allocation2] sm:$0xff] %vm2018_vm8, %v2013_v20  ;;  %v5743_v20 = vld [vmem:[#allocation15 + $0xac] ss:$12 sps:$4 sm:$0xff]  }
0x10a7   :  { %2508 = vmatprep.subr.bf16.mxu0 %v5743_v20 }
0x10a8   :  { %5139 = vmatpush3.bf16.msra.mxu1 %v5707_v23  ;;  %2509 = vmatpush1.bf16.msra.mxu0 %v5741_v21 }
0x10a9   :  { %5140 = vmatprep.subr.bf16.mxu1 %v6209_v0 }
0x10ac   :  { %5141 = vmatpush3.bf16.msra.mxu1 %v5708_v48 }
0x10ad   :  { %5142 = vmatprep.subr.bf16.mxu1 %v6209_v0 }
0x10b0   :  { %5143 = vmatpush3.bf16.msra.mxu1 %v5709_v24 }
0x10b1   :  { %5144 = vmatprep.subr.bf16.mxu1 %v6209_v0 }
0x10b4   :  { %5145 = vmatpush3.bf16.msra.mxu1 %v5710_v59 }
0x10b5   :  { %5146 = vmatprep.subr.bf16.mxu1 %v6209_v0 }
0x10b8   :  { %5147 = vmatpush3.bf16.msra.mxu1 %v5711_v25 }
0x10b9   :  { %5148 = vmatprep.subr.bf16.mxu1 %v6209_v0 }
0x10bc   :  { %5149 = vmatpush3.bf16.msra.mxu1 %v5712_v13 }
0x10bd   :  { %5154 = vmatprep.subr.bf16.mxu1 %v6209_v0 }
0x1172   :  { %v5133_v32 = vpop.f32.mrb[14].mxu1 }
0x1173   :  { %2225 = vrot.lane.b32.xlu1 %v5133_v32, %s6213_s25  ;;  %v2212_v36 = vpop.f32.mrb[15].mxu1  ;;  %v329_v32 = vld [vmem:[%s7151_s11 + $0x8] sm:$0xff] }
0x1174   :  { %2223 = vrot.lane.b32.xlu0 %v2212_v36, %s6213_s25 }
0x11e5   :  { %v2226_v38 = vpop.permute.xlu1 %2225 }
0x11e6   :  { %2231 = vst.msk [vmem:[#allocation2 + $0x8] sm:$0xff] %vm2229_vm9, %v2226_v38  ;;  %v2224_v39 = vpop.permute.xlu0 %2223  ;;  %v2356_v38 = vrot.slane %v329_v32, %v556_v37  ;;  %v2580_v37 = vsub.s32 4, %v6492_v33 }
0x11e7   :  { %2230 = vst.msk [vmem:[#allocation2] sm:$0xff] %vm2229_vm9, %v2224_v39 }
0x11ed   :  { %v2233_v40 = vld [vmem:[#allocation2 + $0x8] sm:$0xff] }
0x11ee   :  { %v2232_v41 = vld [vmem:[#allocation2] sm:$0xff] }
0x11ef   :  { %v2234_v42 = vpack.c.bf16 %v2233_v40, %v2232_v41  ;;  %v2362_v41 = vrot.slane %v329_v32, %v2237_v43  ;;  %v2581_v43 = vrot.slane %v6776_v44, %v2580_v37 }
0x11f1   :  { %5151 = vmatmul.mubr.bf16.vlgmr.msra.gmra.mrb[16].mxu1 %v2234_v42 }
0x11f2   :  { %5170 = vmatprep.mubr.msk.bf16.mxu1 %vm6211_vm0, %v6209_v0  ;;  %5155 = vmatpush3.bf16.msra.mxu1 %v5716_v26 }
0x11f3   :  { %5156 = vmatprep.subr.bf16.mxu1 %v6209_v0 }
0x11f6   :  { %5157 = vmatpush3.bf16.msra.mxu1 %v5720_v5 }
0x11f7   :  { %5158 = vmatprep.subr.bf16.mxu1 %v6209_v0 }
0x11fa   :  { %5159 = vmatpush3.bf16.msra.mxu1 %v5724_v8  ;;  %v6836_v8 = vld [vmem:[#allocation9] sm:$0xff] }
0x11fb   :  { %5160 = vmatprep.subr.bf16.mxu1 %v6209_v0 }
0x11fe   :  { %5161 = vmatpush3.bf16.msra.mxu1 %v5728_v11 }
0x11ff   :  { %5162 = vmatprep.subr.bf16.mxu1 %v6209_v0 }
0x1202   :  { %5163 = vmatpush3.bf16.msra.mxu1 %v5732_v27 }
0x1203   :  { %5164 = vmatprep.subr.bf16.mxu1 %v6209_v0 }
0x1206   :  { %5165 = vmatpush3.bf16.msra.mxu1 %v5736_v15 }
0x1207   :  { %5166 = vmatprep.subr.bf16.mxu1 %v6209_v0 }
0x120a   :  { %5167 = vmatpush3.bf16.msra.mxu1 %v5740_v19 }
0x120b   :  { %5168 = vmatprep.subr.bf16.mxu1 %v6209_v0 }
0x120e   :  { %5169 = vmatpush3.bf16.msra.mxu1 %v5744_v22 }
0x12c4   :  { %v2321_v45 = vpop.f32.mrb[16].mxu1 }
0x12c5   :  { %v2322_v46 = vadd.f32 %v2321_v45, %v2238_v54  ;;  %v5152_v47 = vpop.f32.mrb[17].mxu1 }
0x12c6   :  { %v2324_v49 = vpop.f32.mrb[18].mxu1 }
0x12c7   :  { %v2325_v50 = vadd.f32 %v2324_v49, %v2238_v54  ;;  %v5153_v51 = vpop.f32.mrb[19].mxu1  ;;  %v2328_v55 = vadd.f32 %v5910_v53, %v2322_v46 }
0x12c8   :  { %v2586_v51 = vsub.s32 5, %v6492_v33 }
0x12c9   :  { %2330 = vadd.xlane.f32.xlu0 %v2328_v55  ;;  %v2329_v58 = vadd.f32 %v5911_v1, %v2325_v50  ;;  %v2592_v50 = vsub.s32 6, %v6492_v33 }
0x12cb   :  { %2332 = vadd.xlane.f32.xlu1 %v2329_v58  ;;  %v2593_v53 = vrot.slane %v6776_v44, %v2592_v50 }
0x1356   :  { %v2331_v29 = vpop.xlane.xlu0 %2330 }
0x1357   :  { %v2335_v57 = vmul.f32 0.0078125, %v2331_v29 }
0x1358   :  { %v2333_v28 = vpop.xlane.xlu1 %2332 }
0x1359   :  { %v2337_v61 = vsub.f32 %v2328_v55, %v2335_v57  ;;  %v2336_v14 = vmul.f32 0.0078125, %v2333_v28 }
0x135b   :  { %v6782_v63 = vsub.f32 %v2329_v58, %v2336_v14  ;;  %v2339_v2 = vmul.f32 %v2337_v61, %v2337_v61  ;;  %v2587_v58 = vrot.slane %v6776_v44, %v2586_v51 }
0x135d   :  { %2341 = vadd.xlane.f32.xlu0 %v2339_v2  ;;  %v2340_v4 = vmul.f32 %v6782_v63, %v6782_v63 }
0x1361   :  { %2343 = vadd.xlane.f32.xlu0 %v2340_v4 }
0x13ea   :  { %v2342_v23 = vpop.xlane.xlu0 %2341 }
0x13eb   :  { %v2345_v48 = vmul.f32 0.0078125, %v2342_v23 }
0x13ed   :  { %v2347_v24 = vadd.f32 1e-05, %v2345_v48 }
0x13ee   :  { %v2344_v59 = vpop.xlane.xlu0 %2343 }
0x13ef   :  { %5833 = vrsqrt.f32 %v2347_v24  ;;  %v2346_v25 = vmul.f32 0.0078125, %v2344_v59 }
0x13f1   :  { %v2348_v13 = vadd.f32 1e-05, %v2346_v25 }
0x13f3   :  { %5835 = vrsqrt.f32 %v2348_v13 }
0x13f9   :  { %v5834_v36 = vpop.eup %5833 }
0x13fa   :  { %v2351_v39 = vmul.f32 %v5834_v36, %v2337_v61 }
0x13fc   :  { %v2357_v54 = vmul.f32 %v2356_v38, %v2351_v39 }
0x13fd   :  { %v5836_v40 = vpop.eup %5835 }
0x13fe   :  { %v2352_v42 = vmul.f32 %v5836_v40, %v6782_v63  ;;  %v6800_v46 = vadd.f32 %v2362_v41, %v2357_v54 }
0x1400   :  { %v2358_v45 = vmul.f32 %v2356_v38, %v2352_v42 }
0x1402   :  { %v6802_v47 = vadd.f32 %v2362_v41, %v2358_v45 }
0x1404   :  { %v2365_v49 = vpack.c.bf16 %v6802_v47, %v6800_v46 }
0x1406   :  { %2527 = vmatmul.mubr.bf16.vlgmr.msra.gmra.mrb[24].mxu0 %v2365_v49  ;;  %5171 = vmatmul.mubr.bf16.vlgmr.msra.gmra.mrb[20].mxu1 %v2365_v49 }
0x14d9   :  { %v2528_v55 = vpop.f32.mrb[24].mxu0  ;;  %v2571_v1 = vpop.f32.mrb[20].mxu1 }
0x14da   :  { %v6818_v60 = vadd.f32 %v2581_v43, %v2528_v55  ;;  %v2530_v62 = vpop.f32.mrb[25].mxu0  ;;  %v5172_v26 = vpop.f32.mrb[21].mxu1  ;;  %v2594_v29 = vadd.f32 %v2593_v53, %v2571_v1 }
0x14db   :  { %v2532_v30 = vpop.f32.mrb[26].mxu0  ;;  %v2574_v56 = vpop.f32.mrb[22].mxu1  ;;  %v2588_v14 = vadd.f32 %v2587_v58, %v2530_v62 }
0x14dc   :  { %v2595_v57 = vadd.f32 %v2593_v53, %v2574_v56  ;;  %v2534_v28 = vpop.f32.mrb[27].mxu0  ;;  %v5173_v61 = vpop.f32.mrb[23].mxu1  ;;  %5178 = vmatprep.mubr.msk.f32.mxu0 %vm560_vm1, %v6818_v60  ;;  %v6830_v6 = vadd.f32 %v2581_v43, %v2532_v30 }
0x14dd   :  { %v2589_v63 = vadd.f32 %v2587_v58, %v2534_v28 }
0x14de   :  { %v5432_v2 = vpack.c.bf16 %v2595_v57, %v2594_v29  ;;  %v6822_v4 = vpack.i.bf16 %v2595_v57, %v2594_v29 }
0x14df   :  { %v5426_v5 = vpack.c.bf16 %v2589_v63, %v2588_v14  ;;  %v6824_v44 = vpack.i.bf16 %v2589_v63, %v2588_v14 }
0x14e1   :  { %5428 = vmatprep.subr.msk.bf16.mxu0 %vm6510_vm2, %v5426_v5 }
0x14e2   :  { %5431 = vmatpush3.bf16.xpose.msk.msra.mxu0 %vm6510_vm2, %v5426_v5 }
0x14e3   :  { %5433 = vmatprep.subr.bf16.mxu0 %v5432_v2 }
0x14e9   :  { %5179 = vmatmul.mubr.msk.f32.vlgmr.msra.gmra.mrb[28].mxu0 %vm560_vm1, %v6830_v6 }
0x14ea   :  { %5435 = vmatpush3.bf16.msra.mxu0 %v5432_v2 }
0x15bc   :  { %v5180_v9 = vpop.f32.mrb[28].mxu0 }
0x15bd   :  { %v2680_v10 = vadd.f32 %v5180_v9, %v6834_v7  ;;  %v2674_v11 = vpop.f32.mrb[29].mxu0 }
0x15be   :  { %v2675_v12 = vadd.f32 %v2674_v11, %v6836_v8 }
0x15bf   :  { %v2686_v16 = vsel %vm560_vm1, %v2680_v10, -inf }
0x15c0   :  { %2687 = vmax.xlane.f32.xlu1 %v2686_v16  ;;  %v2683_v27 = vsel %vm560_vm1, %v2675_v12, -inf }
0x15c1   :  { %2684 = vmax.xlane.f32.xlu0 %v2683_v27 }
0x164d   :  { %v2688_v17 = vpop.xlane.xlu1 %2687 }
0x164e   :  { %v2690_v31 = vsub.f32 %v2680_v10, %v2688_v17  ;;  %v2685_v15 = vpop.xlane.xlu0 %2684 }
0x164f   :  { %v2689_v3 = vsub.f32 %v2675_v12, %v2685_v15 }
0x1650   :  { %v2693_v18 = vmul.f32 1.442695, %v2690_v31 }
0x1651   :  { %v2691_v19 = vmul.f32 1.442695, %v2689_v3 }
0x1652   :  { %5837 = vpow2.f32 %v2693_v18 }
0x1653   :  { %5839 = vpow2.f32 %v2691_v19 }
0x165c   :  { %v5838_v20 = vpop.eup %5837 }
0x165d   :  { %v5840_v21 = vpop.eup %5839  ;;  %v2698_v22 = vsel %vm560_vm1, %v5838_v20, 0.0 }
0x165e   :  { %2699 = vadd.xlane.f32.xlu1 %v2698_v22  ;;  %v2695_v23 = vsel %vm560_vm1, %v5840_v21, 0.0 }
0x165f   :  { %2696 = vadd.xlane.f32.xlu0 %v2695_v23 }
0x166f   :  { %2788 = vrot.lane.b32.xlu1 %v6818_v60, %s6213_s25 }
0x1673   :  { %2790 = vrot.lane.b32.xlu1 %v6830_v6, %s6213_s25 }
0x1675   :  { %5604 = vrot.lane.b32.xlu0 %v6824_v44, %s6213_s25 }
0x16eb   :  { %v2700_v48 = vpop.xlane.xlu1 %2699 }
0x16ec   :  { %5841 = vrcp.f32 %v2700_v48  ;;  %v2697_v24 = vpop.xlane.xlu0 %2696 }
0x16ed   :  { %5843 = vrcp.f32 %v2697_v24 }
0x16ef   :  { %v2789_v41 = vpop.permute.xlu1 %2788 }
0x16f0   :  { %v5605_v59 = vpop.permute.xlu0 %5604 }
0x16f1   :  { %v5607_v25 = vunpack.i.h.bf16 %v5605_v59  ;;  %v5606_v13 = vunpack.i.l.bf16 %v5605_v59 }
0x16f3   :  { %v5436_v32 = vpack.c.bf16 %v5607_v25, %v5606_v13  ;;  %v2791_v42 = vpop.permute.xlu1 %2790 }
0x16f5   :  { %5438 = vmatprep.subr.msk.bf16.mxu0 %vm6510_vm2, %v5436_v32 }
0x16f6   :  { %v5842_v36 = vpop.eup %5841 }
0x16f7   :  { %v5844_v38 = vpop.eup %5843  ;;  %v2704_v40 = vmul.f32 %v5842_v36, %v5838_v20 }
0x16f8   :  { %v2703_v39 = vmul.f32 %v5844_v38, %v5840_v21 }
0x16fa   :  { %5185 = vmatprep.mubr.msk.f32.mxu0 %vm560_vm1, %v2703_v39 }
0x16fb   :  { %5186 = vmatmul.mubr.msk.f32.vlgmr.msra.gmra.mrb[30].mxu0 %vm560_vm1, %v2704_v40 }
0x16fc   :  { %5441 = vmatpush3.bf16.xpose.msk.msra.mxu0 %vm6510_vm2, %v5436_v32  ;;  %5192 = vmatprep.mubr.msk.f32.mxu0 %vm560_vm1, %v2789_v41 }
0x1703   :  { %5193 = vmatmul.mubr.msk.f32.vlgmr.msra.gmra.mrb[32].mxu0 %vm560_vm1, %v2791_v42 }
0x17ce   :  { %v5187_v54 = vpop.f32.mrb[30].mxu0 }
0x17cf   :  { %2787 = vst.msk [vmem:[#allocation2 + $0x8] sm:$0xff] %vm560_vm1, %v5187_v54  ;;  %v2777_v45 = vpop.f32.mrb[31].mxu0 }
0x17d0   :  { %2786 = vst.msk [vmem:[#allocation2] sm:$0xff] %vm560_vm1, %v2777_v45 }
0x17d6   :  { %v5194_v49 = vpop.f32.mrb[32].mxu0 }
0x17d7   :  { %v2876_v43 = vadd.f32 %v5194_v49, %v6834_v7  ;;  %v2870_v53 = vpop.f32.mrb[33].mxu0 }
0x17d8   :  { %v2871_v55 = vadd.f32 %v2870_v53, %v6836_v8 }
0x17d9   :  { %v2882_v1 = vsel %vm560_vm1, %v2876_v43, -inf }
0x17da   :  { %2883 = vmax.xlane.f32.xlu0 %v2882_v1  ;;  %v2879_v58 = vsel %vm560_vm1, %v2871_v55, -inf }
0x17db   :  { %2880 = vmax.xlane.f32.xlu1 %v2879_v58 }
0x17ec   :  { %5609 = vrot.lane.b32.xlu1 %v6822_v4, %s6213_s25 }
0x17f0   :  { %5619 = vrot.lane.b32.xlu1 %v6824_v44, %s6214_s24 }
0x17f4   :  { %3000 = vrot.lane.b32.xlu1 %v6818_v60, %s6212_s22 }
0x17f8   :  { %3002 = vrot.lane.b32.xlu1 %v6830_v6, %s6212_s22 }
0x17fc   :  { %5624 = vrot.lane.b32.xlu1 %v6824_v44, %s6202_s14 }
0x1800   :  { %3420 = vrot.lane.b32.xlu1 %v6818_v60, %s6202_s14 }
0x1867   :  { %v2884_v62 = vpop.xlane.xlu0 %2883 }
0x1868   :  { %v2886_v26 = vsub.f32 %v2876_v43, %v2884_v62  ;;  %v2881_v30 = vpop.xlane.xlu1 %2880 }
0x1869   :  { %v2885_v56 = vsub.f32 %v2871_v55, %v2881_v30 }
0x186a   :  { %v2889_v29 = vmul.f32 1.442695, %v2886_v26 }
0x186b   :  { %v2887_v57 = vmul.f32 1.442695, %v2885_v56 }
0x186c   :  { %5845 = vpow2.f32 %v2889_v29  ;;  %v5610_v28 = vpop.permute.xlu1 %5609 }
0x186d   :  { %v5612_v61 = vunpack.i.h.bf16 %v5610_v28  ;;  %v5611_v14 = vunpack.i.l.bf16 %v5610_v28  ;;  %5847 = vpow2.f32 %v2887_v57 }
0x186f   :  { %v5442_v63 = vpack.c.bf16 %v5612_v61, %v5611_v14 }
0x1870   :  { %v5620_v2 = vpop.permute.xlu1 %5619 }
0x1871   :  { %v5622_v5 = vunpack.i.h.bf16 %v5620_v2  ;;  %v5621_v9 = vunpack.i.l.bf16 %v5620_v2  ;;  %5443 = vmatprep.subr.bf16.mxu0 %v5442_v63 }
0x1872   :  { %5445 = vmatpush3.bf16.msra.mxu0 %v5442_v63 }
0x1873   :  { %v5456_v10 = vpack.c.bf16 %v5622_v5, %v5621_v9 }
0x1874   :  { %v3001_v11 = vpop.permute.xlu1 %3000 }
0x1875   :  { %5458 = vmatprep.subr.msk.bf16.mxu1 %vm6510_vm2, %v5456_v10 }
0x1876   :  { %v5846_v12 = vpop.eup %5845  ;;  %5461 = vmatpush3.bf16.xpose.msk.msra.mxu1 %vm6510_vm2, %v5456_v10 }
0x1877   :  { %v2894_v16 = vsel %vm560_vm1, %v5846_v12, 0.0  ;;  %v5848_v27 = vpop.eup %5847 }
0x1878   :  { %2895 = vadd.xlane.f32.xlu0 %v2894_v16  ;;  %v3003_v17 = vpop.permute.xlu1 %3002  ;;  %v2891_v31 = vsel %vm560_vm1, %v5848_v27, 0.0 }
0x187c   :  { %2892 = vadd.xlane.f32.xlu0 %v2891_v31  ;;  %v5625_v15 = vpop.permute.xlu1 %5624 }
0x187d   :  { %v5627_v3 = vunpack.i.h.bf16 %v5625_v15  ;;  %v5626_v18 = vunpack.i.l.bf16 %v5625_v15 }
0x187f   :  { %v5466_v19 = vpack.c.bf16 %v5627_v3, %v5626_v18 }
0x1880   :  { %v3421_v39 = vpop.permute.xlu1 %3420 }
0x1881   :  { %5468 = vmatprep.subr.msk.bf16.mxu1 %vm6510_vm2, %v5466_v19 }
0x1892   :  { %5614 = vrot.lane.b32.xlu0 %v6824_v44, %s6212_s22 }
0x1896   :  { %3210 = vrot.lane.b32.xlu0 %v6818_v60, %s6214_s24 }
0x189a   :  { %3212 = vrot.lane.b32.xlu0 %v6830_v6, %s6214_s24 }
0x189e   :  { %3422 = vrot.lane.b32.xlu0 %v6830_v6, %s6202_s14 }
0x1905   :  { %v2896_v20 = vpop.xlane.xlu0 %2895 }
0x1906   :  { %5849 = vrcp.f32 %v2896_v20 }
0x1909   :  { %v2893_v21 = vpop.xlane.xlu0 %2892 }
0x190a   :  { %5851 = vrcp.f32 %v2893_v21 }
0x190d   :  { %v5615_v22 = vpop.permute.xlu0 %5614 }
0x190e   :  { %v5617_v23 = vunpack.i.h.bf16 %v5615_v22  ;;  %v5616_v48 = vunpack.i.l.bf16 %v5615_v22 }
0x1910   :  { %v5446_v24 = vpack.c.bf16 %v5617_v23, %v5616_v48  ;;  %v5850_v25 = vpop.eup %5849 }
0x1911   :  { %v3211_v59 = vpop.permute.xlu0 %3210  ;;  %v2900_v38 = vmul.f32 %v5850_v25, %v5846_v12 }
0x1912   :  { %5448 = vmatprep.subr.msk.bf16.mxu0 %vm6510_vm2, %v5446_v24  ;;  %5220 = vmatprep.mubr.msk.f32.mxu1 %vm560_vm1, %v3211_v59 }
0x1914   :  { %v5852_v13 = vpop.eup %5851 }
0x1915   :  { %v3213_v32 = vpop.permute.xlu0 %3212  ;;  %v2899_v36 = vmul.f32 %v5852_v13, %v5848_v27 }
0x1916   :  { %5221 = vmatmul.mubr.msk.f32.vlgmr.msra.gmra.mrb[24].mxu1 %vm560_vm1, %v3213_v32 }
0x1917   :  { %5471 = vmatpush3.bf16.xpose.msk.msra.mxu1 %vm6510_vm2, %v5466_v19  ;;  %5199 = vmatprep.mubr.msk.f32.mxu0 %vm560_vm1, %v2899_v36 }
0x1918   :  { %5234 = vmatprep.mubr.msk.f32.mxu1 %vm560_vm1, %v3421_v39  ;;  %5200 = vmatmul.mubr.msk.f32.vlgmr.msra.gmra.mrb[34].mxu0 %vm560_vm1, %v2900_v38 }
0x1919   :  { %5451 = vmatpush3.bf16.xpose.msk.msra.mxu0 %vm6510_vm2, %v5446_v24  ;;  %5206 = vmatprep.mubr.msk.f32.mxu0 %vm560_vm1, %v3001_v11  ;;  %v3423_v40 = vpop.permute.xlu0 %3422 }
0x191e   :  { %5235 = vmatmul.mubr.msk.f32.vlgmr.msra.gmra.mrb[26].mxu1 %vm560_vm1, %v3423_v40 }
0x1920   :  { %5207 = vmatmul.mubr.msk.f32.vlgmr.msra.gmra.mrb[36].mxu0 %vm560_vm1, %v3003_v17 }
0x19e9   :  { %v5222_v41 = vpop.f32.mrb[24].mxu1 }
0x19ea   :  { %v3292_v42 = vpop.f32.mrb[25].mxu1  ;;  %v3298_v29 = vadd.f32 %v5222_v41, %v6834_v7 }
0x19eb   :  { %v6906_v54 = vpop.f32.mrb[34].mxu0  ;;  %v3293_v62 = vadd.f32 %v3292_v42, %v6836_v8 }
0x19ec   :  { %v6908_v45 = vpop.f32.mrb[35].mxu0  ;;  %v3304_v14 = vsel %vm560_vm1, %v3298_v29, -inf }
0x19ed   :  { %v3301_v57 = vsel %vm560_vm1, %v3293_v62, -inf }
0x19f1   :  { %v5236_v49 = vpop.f32.mrb[26].mxu1 }
0x19f2   :  { %v3502_v43 = vpop.f32.mrb[27].mxu1  ;;  %v3508_v61 = vadd.f32 %v5236_v49, %v6834_v7 }
0x19f3   :  { %v5208_v53 = vpop.f32.mrb[36].mxu0  ;;  %v3503_v30 = vadd.f32 %v3502_v43, %v6836_v8 }
0x19f4   :  { %v3088_v55 = vadd.f32 %v5208_v53, %v6834_v7  ;;  %v3082_v1 = vpop.f32.mrb[37].mxu0  ;;  %v3514_v63 = vsel %vm560_vm1, %v3508_v61, -inf }
0x19f5   :  { %v3083_v58 = vadd.f32 %v3082_v1, %v6836_v8  ;;  %v3511_v28 = vsel %vm560_vm1, %v3503_v30, -inf }
0x19f6   :  { %v3094_v26 = vsel %vm560_vm1, %v3088_v55, -inf }
0x19f7   :  { %3095 = vmax.xlane.f32.xlu0 %v3094_v26  ;;  %v3091_v56 = vsel %vm560_vm1, %v3083_v58, -inf }
0x19f8   :  { %3092 = vmax.xlane.f32.xlu1 %v3091_v56 }
0x19fb   :  { %3302 = vmax.xlane.f32.xlu0 %v3301_v57 }
0x19fc   :  { %3512 = vmax.xlane.f32.xlu1 %v3511_v28 }
0x19ff   :  { %3305 = vmax.xlane.f32.xlu0 %v3304_v14 }
0x1a03   :  { %3515 = vmax.xlane.f32.xlu0 %v3514_v63 }
0x1a84   :  { %v3096_v2 = vpop.xlane.xlu0 %3095 }
0x1a85   :  { %v3093_v5 = vpop.xlane.xlu1 %3092  ;;  %v3098_v15 = vsub.f32 %v3088_v55, %v3096_v2 }
0x1a86   :  { %v3097_v39 = vsub.f32 %v3083_v58, %v3093_v5 }
0x1a87   :  { %v3101_v20 = vmul.f32 1.442695, %v3098_v15 }
0x1a88   :  { %v3303_v9 = vpop.xlane.xlu0 %3302  ;;  %v3099_v40 = vmul.f32 1.442695, %v3097_v39 }
0x1a89   :  { %v3307_v10 = vsub.f32 %v3293_v62, %v3303_v9  ;;  %v3513_v11 = vpop.xlane.xlu1 %3512 }
0x1a8a   :  { %v3517_v12 = vsub.f32 %v3503_v30, %v3513_v11 }
0x1a8b   :  { %v3309_v16 = vmul.f32 1.442695, %v3307_v10 }
0x1a8c   :  { %v3519_v27 = vmul.f32 1.442695, %v3517_v12  ;;  %v3306_v17 = vpop.xlane.xlu0 %3305 }
0x1a8d   :  { %5853 = vpow2.f32 %v3309_v16  ;;  %v3308_v31 = vsub.f32 %v3298_v29, %v3306_v17 }
0x1a8e   :  { %5855 = vpow2.f32 %v3519_v27 }
0x1a8f   :  { %v3311_v3 = vmul.f32 1.442695, %v3308_v31 }
0x1a90   :  { %v3516_v18 = vpop.xlane.xlu0 %3515 }
0x1a91   :  { %5857 = vpow2.f32 %v3311_v3  ;;  %v3518_v19 = vsub.f32 %v3508_v61, %v3516_v18 }
0x1a93   :  { %v3521_v21 = vmul.f32 1.442695, %v3518_v19 }
0x1a95   :  { %5859 = vpow2.f32 %v3521_v21 }
0x1a96   :  { %5861 = vpow2.f32 %v3101_v20 }
0x1a97   :  { %v5854_v22 = vpop.eup %5853  ;;  %5863 = vpow2.f32 %v3099_v40 }
0x1a98   :  { %v3313_v23 = vsel %vm560_vm1, %v5854_v22, 0.0  ;;  %v6923_v48 = vpop.eup %5855 }
0x1a99   :  { %3314 = vadd.xlane.f32.xlu1 %v3313_v23  ;;  %v3523_v59 = vsel %vm560_vm1, %v6923_v48, 0.0 }
0x1a9b   :  { %v6925_v24 = vpop.eup %5857 }
0x1a9c   :  { %v3316_v25 = vsel %vm560_vm1, %v6925_v24, 0.0 }
0x1a9d   :  { %3524 = vadd.xlane.f32.xlu1 %v3523_v59  ;;  %3317 = vadd.xlane.f32.xlu0 %v3316_v25 }
0x1a9f   :  { %v6931_v13 = vpop.eup %5859 }
0x1aa0   :  { %v3526_v32 = vsel %vm560_vm1, %v6931_v13, 0.0  ;;  %v5862_v36 = vpop.eup %5861 }
0x1aa1   :  { %3527 = vadd.xlane.f32.xlu0 %v3526_v32  ;;  %v3106_v38 = vsel %vm560_vm1, %v5862_v36, 0.0  ;;  %v5864_v41 = vpop.eup %5863 }
0x1aa2   :  { %v3103_v42 = vsel %vm560_vm1, %v5864_v41, 0.0 }
0x1aa5   :  { %3107 = vadd.xlane.f32.xlu0 %v3106_v38 }
0x1aae   :  { %5629 = vrot.lane.b32.xlu1 %v6822_v4, %s6212_s22 }
0x1abb   :  { %5634 = vrot.lane.b32.xlu0 %v6822_v4, %s6214_s24 }
0x1abf   :  { %3632 = vrot.lane.b32.xlu0 %v6830_v6, %s6215_s26 }
0x1ad2   :  { %3104 = vadd.xlane.f32.xlu1 %v3103_v42 }
0x1ae3   :  { %5639 = vrot.lane.b32.xlu1 %v6822_v4, %s6202_s14 }
0x1ae7   :  { %5644 = vrot.lane.b32.xlu1 %v6824_v44, %s6215_s26 }
0x1aeb   :  { %3630 = vrot.lane.b32.xlu1 %v6818_v60, %s6215_s26 }
0x1b26   :  { %v3315_v49 = vpop.xlane.xlu1 %3314 }
0x1b27   :  { %5865 = vrcp.f32 %v3315_v49 }
0x1b2a   :  { %v3525_v43 = vpop.xlane.xlu1 %3524  ;;  %v3318_v53 = vpop.xlane.xlu0 %3317 }
0x1b2e   :  { %v5630_v55 = vpop.permute.xlu1 %5629  ;;  %v3528_v1 = vpop.xlane.xlu0 %3527 }
0x1b2f   :  { %v5632_v58 = vunpack.i.h.bf16 %v5630_v55  ;;  %v5631_v62 = vunpack.i.l.bf16 %v5630_v55 }
0x1b31   :  { %v5452_v26 = vpack.c.bf16 %v5632_v58, %v5631_v62  ;;  %v5866_v63 = vpop.eup %5865 }
0x1b32   :  { %v3108_v30 = vpop.xlane.xlu0 %3107  ;;  %v3321_v17 = vmul.f32 %v5866_v63, %v5854_v22 }
0x1b33   :  { %5453 = vmatprep.subr.bf16.mxu0 %v5452_v26  ;;  %5867 = vrcp.f32 %v3108_v30 }
0x1b34   :  { %5455 = vmatpush3.bf16.msra.mxu0 %v5452_v26 }
0x1b36   :  { %v5635_v56 = vpop.permute.xlu0 %5634 }
0x1b37   :  { %v5637_v29 = vunpack.i.h.bf16 %v5635_v56  ;;  %v5636_v57 = vunpack.i.l.bf16 %v5635_v56 }
0x1b39   :  { %v5462_v28 = vpack.c.bf16 %v5637_v29, %v5636_v57 }
0x1b3b   :  { %5463 = vmatprep.subr.bf16.mxu0 %v5462_v28 }
0x1b3d   :  { %v5868_v2 = vpop.eup %5867 }
0x1b3e   :  { %v3112_v16 = vmul.f32 %v5868_v2, %v5862_v36 }
0x1b5f   :  { %v3105_v61 = vpop.xlane.xlu1 %3104 }
0x1b60   :  { %5869 = vrcp.f32 %v3105_v61 }
0x1b61   :  { %5871 = vrcp.f32 %v3318_v53 }
0x1b62   :  { %5873 = vrcp.f32 %v3525_v43 }
0x1b63   :  { %v5640_v14 = vpop.permute.xlu1 %5639  ;;  %5875 = vrcp.f32 %v3528_v1 }
0x1b64   :  { %v5642_v9 = vunpack.i.h.bf16 %v5640_v14  ;;  %v5641_v10 = vunpack.i.l.bf16 %v5640_v14 }
0x1b66   :  { %v5472_v15 = vpack.c.bf16 %v5642_v9, %v5641_v10 }
0x1b67   :  { %v5645_v11 = vpop.permute.xlu1 %5644 }
0x1b68   :  { %v5647_v3 = vunpack.i.h.bf16 %v5645_v11  ;;  %v5646_v18 = vunpack.i.l.bf16 %v5645_v11 }
0x1b6a   :  { %v5870_v5 = vpop.eup %5869  ;;  %v5476_v23 = vpack.c.bf16 %v5647_v3, %v5646_v18 }
0x1b6b   :  { %v3111_v12 = vmul.f32 %v5870_v5, %v5864_v41  ;;  %v5872_v27 = vpop.eup %5871  ;;  %v3631_v59 = vpop.permute.xlu1 %3630 }
0x1b6c   :  { %v5874_v31 = vpop.eup %5873  ;;  %v3322_v19 = vmul.f32 %v5872_v27, %v6925_v24 }
0x1b6d   :  { %5213 = vmatprep.mubr.msk.f32.mxu0 %vm560_vm1, %v3111_v12  ;;  %v5876_v20 = vpop.eup %5875  ;;  %v3531_v21 = vmul.f32 %v5874_v31, %v6923_v48  ;;  %v3633_v48 = vpop.permute.xlu0 %3632 }
0x1b6e   :  { %5214 = vmatmul.mubr.msk.f32.vlgmr.msra.gmra.mrb[38].mxu0 %vm560_vm1, %v3112_v16  ;;  %v3532_v22 = vmul.f32 %v5876_v20, %v6931_v13 }
0x1b6f   :  { %5465 = vmatpush3.bf16.msra.mxu0 %v5462_v28  ;;  %5227 = vmatprep.mubr.msk.f32.mxu0 %vm560_vm1, %v3321_v17 }
0x1b70   :  { %5473 = vmatprep.subr.bf16.mxu0 %v5472_v15 }
0x1b72   :  { %5228 = vmatmul.mubr.msk.f32.vlgmr.msra.gmra.mrb[40].mxu0 %vm560_vm1, %v3322_v19 }
0x1b73   :  { %5475 = vmatpush3.bf16.msra.mxu0 %v5472_v15  ;;  %5241 = vmatprep.mubr.msk.f32.mxu0 %vm560_vm1, %v3531_v21 }
0x1b74   :  { %5478 = vmatprep.subr.msk.bf16.mxu0 %vm6510_vm2, %v5476_v23 }
0x1b76   :  { %5242 = vmatmul.mubr.msk.f32.vlgmr.msra.gmra.mrb[42].mxu0 %vm560_vm1, %v3532_v22 }
0x1b77   :  { %5248 = vmatprep.mubr.msk.f32.mxu0 %vm560_vm1, %v3631_v59 }
0x1b7c   :  { %5481 = vmatpush3.bf16.xpose.msk.msra.mxu0 %vm6510_vm2, %v5476_v23 }
0x1b83   :  { %5249 = vmatmul.mubr.msk.f32.vlgmr.msra.gmra.mrb[44].mxu0 %vm560_vm1, %v3633_v48 }
0x1c41   :  { %v6964_v24 = vpop.f32.mrb[38].mxu0 }
0x1c42   :  { %v6966_v25 = vpop.f32.mrb[39].mxu0 }
0x1c45   :  { %v6968_v32 = vpop.f32.mrb[40].mxu0 }
0x1c46   :  { %v6970_v13 = vpop.f32.mrb[41].mxu0 }
0x1c49   :  { %v6972_v36 = vpop.f32.mrb[42].mxu0 }
0x1c4a   :  { %v6974_v38 = vpop.f32.mrb[43].mxu0 }
0x1c56   :  { %v5250_v39 = vpop.f32.mrb[44].mxu0 }
0x1c57   :  { %v3718_v40 = vadd.f32 %v5250_v39, %v6834_v7  ;;  %v3712_v41 = vpop.f32.mrb[45].mxu0 }
0x1c58   :  { %v3713_v42 = vadd.f32 %v3712_v41, %v6836_v8 }
0x1c59   :  { %v3724_v49 = vsel %vm560_vm1, %v3718_v40, -inf }
0x1c5a   :  { %3725 = vmax.xlane.f32.xlu0 %v3724_v49  ;;  %v3721_v43 = vsel %vm560_vm1, %v3713_v42, -inf }
0x1c5b   :  { %3722 = vmax.xlane.f32.xlu1 %v3721_v43 }
0x1c6c   :  { %5649 = vrot.lane.b32.xlu1 %v6822_v4, %s6215_s26 }
0x1c70   :  { %3840 = vrot.lane.b32.xlu1 %v6818_v60, %s6216_s9 }
0x1c74   :  { %3842 = vrot.lane.b32.xlu1 %v6830_v6, %s6216_s9 }
0x1ce7   :  { %v3726_v53 = vpop.xlane.xlu0 %3725 }
0x1ce8   :  { %v3728_v55 = vsub.f32 %v3718_v40, %v3726_v53  ;;  %v3723_v1 = vpop.xlane.xlu1 %3722 }
0x1ce9   :  { %v3727_v58 = vsub.f32 %v3713_v42, %v3723_v1 }
0x1cea   :  { %v3731_v62 = vmul.f32 1.442695, %v3728_v55 }
0x1ceb   :  { %v3729_v26 = vmul.f32 1.442695, %v3727_v58 }
0x1cec   :  { %5877 = vpow2.f32 %v3731_v62  ;;  %v5650_v30 = vpop.permute.xlu1 %5649 }
0x1ced   :  { %v5652_v56 = vunpack.i.h.bf16 %v5650_v30  ;;  %v5651_v29 = vunpack.i.l.bf16 %v5650_v30  ;;  %5879 = vpow2.f32 %v3729_v26 }
0x1cef   :  { %v5482_v57 = vpack.c.bf16 %v5652_v56, %v5651_v29 }
0x1cf0   :  { %v3841_v15 = vpop.permute.xlu1 %3840 }
0x1cf1   :  { %5483 = vmatprep.subr.bf16.mxu1 %v5482_v57 }
0x1cf2   :  { %5485 = vmatpush3.bf16.msra.mxu1 %v5482_v57 }
0x1cf4   :  { %v3843_v3 = vpop.permute.xlu1 %3842 }
0x1cf6   :  { %v5878_v28 = vpop.eup %5877 }
0x1cf7   :  { %v3736_v61 = vsel %vm560_vm1, %v5878_v28, 0.0  ;;  %v5880_v14 = vpop.eup %5879 }
0x1cf8   :  { %3737 = vadd.xlane.f32.xlu0 %v3736_v61  ;;  %v3733_v63 = vsel %vm560_vm1, %v5880_v14, 0.0 }
0x1cfc   :  { %3734 = vadd.xlane.f32.xlu0 %v3733_v63 }
0x1d12   :  { %5654 = vrot.lane.b32.xlu0 %v6824_v44, %s6216_s9 }
0x1d85   :  { %v3738_v2 = vpop.xlane.xlu0 %3737 }
0x1d86   :  { %5881 = vrcp.f32 %v3738_v2 }
0x1d89   :  { %v3735_v5 = vpop.xlane.xlu0 %3734 }
0x1d8a   :  { %5883 = vrcp.f32 %v3735_v5 }
0x1d8d   :  { %v5655_v9 = vpop.permute.xlu0 %5654 }
0x1d8e   :  { %v5657_v10 = vunpack.i.h.bf16 %v5655_v9  ;;  %v5656_v11 = vunpack.i.l.bf16 %v5655_v9 }
0x1d90   :  { %v5486_v12 = vpack.c.bf16 %v5657_v10, %v5656_v11  ;;  %v5882_v16 = vpop.eup %5881 }
0x1d91   :  { %v3742_v31 = vmul.f32 %v5882_v16, %v5878_v28 }
0x1d92   :  { %5488 = vmatprep.subr.msk.bf16.mxu1 %vm6510_vm2, %v5486_v12 }
0x1d94   :  { %v5884_v27 = vpop.eup %5883 }
0x1d95   :  { %v3741_v17 = vmul.f32 %v5884_v27, %v5880_v14 }
0x1d97   :  { %5255 = vmatprep.mubr.msk.f32.mxu1 %vm560_vm1, %v3741_v17 }
0x1d98   :  { %5256 = vmatmul.mubr.msk.f32.vlgmr.msra.gmra.mrb[28].mxu1 %vm560_vm1, %v3742_v31 }
0x1d99   :  { %5491 = vmatpush3.bf16.xpose.msk.msra.mxu1 %vm6510_vm2, %v5486_v12  ;;  %5262 = vmatprep.mubr.msk.f32.mxu1 %vm560_vm1, %v3841_v15 }
0x1da0   :  { %5263 = vmatmul.mubr.msk.f32.vlgmr.msra.gmra.mrb[30].mxu1 %vm560_vm1, %v3843_v3 }
0x1e6b   :  { %v6998_v18 = vpop.f32.mrb[28].mxu1 }
0x1e6c   :  { %v7000_v19 = vpop.f32.mrb[29].mxu1 }
0x1e73   :  { %v5264_v20 = vpop.f32.mrb[30].mxu1 }
0x1e74   :  { %v3928_v21 = vadd.f32 %v5264_v20, %v6834_v7  ;;  %v3922_v23 = vpop.f32.mrb[31].mxu1 }
0x1e75   :  { %v3923_v22 = vadd.f32 %v3922_v23, %v6836_v8 }
0x1e76   :  { %v3934_v59 = vsel %vm560_vm1, %v3928_v21, -inf }
0x1e77   :  { %3935 = vmax.xlane.f32.xlu0 %v3934_v59  ;;  %v3931_v48 = vsel %vm560_vm1, %v3923_v22, -inf }
0x1e78   :  { %3932 = vmax.xlane.f32.xlu1 %v3931_v48 }
0x1e89   :  { %5659 = vrot.lane.b32.xlu1 %v6822_v4, %s6216_s9 }
0x1e8d   :  { %4050 = vrot.lane.b32.xlu1 %v6818_v60, %s6217_s23 }
0x1e91   :  { %4052 = vrot.lane.b32.xlu1 %v6830_v6, %s6217_s23 }
0x1f04   :  { %v3936_v39 = vpop.xlane.xlu0 %3935 }
0x1f05   :  { %v3938_v40 = vsub.f32 %v3928_v21, %v3936_v39  ;;  %v3933_v41 = vpop.xlane.xlu1 %3932 }
0x1f06   :  { %v3937_v42 = vsub.f32 %v3923_v22, %v3933_v41 }
0x1f07   :  { %v3941_v49 = vmul.f32 1.442695, %v3938_v40 }
0x1f08   :  { %v3939_v43 = vmul.f32 1.442695, %v3937_v42 }
0x1f09   :  { %5885 = vpow2.f32 %v3941_v49  ;;  %v5660_v53 = vpop.permute.xlu1 %5659 }
0x1f0a   :  { %v5662_v55 = vunpack.i.h.bf16 %v5660_v53  ;;  %v5661_v1 = vunpack.i.l.bf16 %v5660_v53  ;;  %5887 = vpow2.f32 %v3939_v43 }
0x1f0c   :  { %v5492_v58 = vpack.c.bf16 %v5662_v55, %v5661_v1 }
0x1f0d   :  { %v4051_v9 = vpop.permute.xlu1 %4050 }
0x1f0e   :  { %5493 = vmatprep.subr.bf16.mxu0 %v5492_v58 }
0x1f0f   :  { %5495 = vmatpush3.bf16.msra.mxu0 %v5492_v58 }
0x1f13   :  { %v5886_v62 = vpop.eup %5885 }
0x1f14   :  { %v3946_v60 = vsel %vm560_vm1, %v5886_v62, 0.0  ;;  %v5888_v26 = vpop.eup %5887 }
0x1f15   :  { %3947 = vadd.xlane.f32.xlu0 %v3946_v60  ;;  %v3943_v6 = vsel %vm560_vm1, %v5888_v26, 0.0  ;;  %v5745_v60 = vld [vmem:[#allocation17] sm:$0xff]  }
0x1f19   :  { %3944 = vadd.xlane.f32.xlu0 %v3943_v6  ;;  %v5747_v6 = vld [vmem:[#allocation17 + $0x10] sm:$0xff]  }
0x1f2f   :  { %5664 = vrot.lane.b32.xlu0 %v6824_v44, %s6217_s23  ;;  %v4053_v44 = vpop.permute.xlu1 %4052 }
0x1fa2   :  { %v3948_v30 = vpop.xlane.xlu0 %3947 }
0x1fa3   :  { %5889 = vrcp.f32 %v3948_v30  ;;  %v5748_v30 = vld [vmem:[#allocation17 + $0x18] sm:$0xff]  }
0x1fa6   :  { %v3945_v56 = vpop.xlane.xlu0 %3944 }
0x1fa7   :  { %5891 = vrcp.f32 %v3945_v56  ;;  %v5749_v56 = vld [vmem:[#allocation17 + $0x20] sm:$0xff]  }
0x1faa   :  { %v5665_v29 = vpop.permute.xlu0 %5664 }
0x1fab   :  { %v5667_v57 = vunpack.i.h.bf16 %v5665_v29  ;;  %v5666_v28 = vunpack.i.l.bf16 %v5665_v29  ;;  %v5750_v29 = vld [vmem:[#allocation17 + $0x28] sm:$0xff]  }
0x1fad   :  { %v5496_v61 = vpack.c.bf16 %v5667_v57, %v5666_v28  ;;  %v5890_v14 = vpop.eup %5889  ;;  %v5751_v57 = vld [vmem:[#allocation17 + $0x30] sm:$0xff]   ;;  %v5752_v28 = vld [vmem:[#allocation17 + $0x38] sm:$0xff]  }
0x1fae   :  { %v3952_v5 = vmul.f32 %v5890_v14, %v5886_v62 }
0x1faf   :  { %5498 = vmatprep.subr.msk.bf16.mxu0 %vm6510_vm2, %v5496_v61 }
0x1fb1   :  { %v5892_v63 = vpop.eup %5891 }
0x1fb2   :  { %v3951_v2 = vmul.f32 %v5892_v63, %v5888_v26  ;;  %v5746_v26 = vld [vmem:[#allocation17 + $0x8] sm:$0xff]  }
0x1fb4   :  { %5269 = vmatprep.mubr.msk.f32.mxu0 %vm560_vm1, %v3951_v2 }
0x1fb5   :  { %5270 = vmatmul.mubr.msk.f32.vlgmr.msra.gmra.mrb[46].mxu0 %vm560_vm1, %v3952_v5 }
0x1fb6   :  { %5501 = vmatpush3.bf16.xpose.msk.msra.mxu0 %vm6510_vm2, %v5496_v61  ;;  %5276 = vmatprep.mubr.msk.f32.mxu0 %vm560_vm1, %v4051_v9 }
0x1fb7   :  { %5306 = vmatprep.subr.bf16.mxu0 %v6209_v0 }
0x1fbd   :  { %5277 = vmatmul.mubr.msk.f32.vlgmr.msra.gmra.mrb[48].mxu0 %vm560_vm1, %v4053_v44 }
0x1fbe   :  { %5322 = vmatprep.mubr.msk.bf16.mxu0 %vm6211_vm0, %v6209_v0 }
0x2088   :  { %v5271_v10 = vpop.f32.mrb[46].mxu0 }
0x2089   :  { %v4031_v11 = vpop.f32.mrb[47].mxu0 }
0x2090   :  { %v5278_v12 = vpop.f32.mrb[48].mxu0 }
0x2091   :  { %v4138_v16 = vadd.f32 %v5278_v12, %v6834_v7  ;;  %v4132_v27 = vpop.f32.mrb[49].mxu0 }
0x2092   :  { %v4133_v17 = vadd.f32 %v4132_v27, %v6836_v8 }
0x2093   :  { %v4144_v52 = vsel %vm560_vm1, %v4138_v16, -inf }
0x2094   :  { %4145 = vmax.xlane.f32.xlu0 %v4144_v52  ;;  %v4141_v31 = vsel %vm560_vm1, %v4133_v17, -inf }
0x2095   :  { %4142 = vmax.xlane.f32.xlu1 %v4141_v31 }
0x20a6   :  { %5669 = vrot.lane.b32.xlu1 %v6822_v4, %s6217_s23 }
0x20aa   :  { %2994 = vrot.lane.b32.xlu1 %v6906_v54, %s6217_s23 }
0x20ae   :  { %3202 = vrot.lane.b32.xlu1 %v6966_v25, %s6216_s9 }
0x20b2   :  { %3204 = vrot.lane.b32.xlu1 %v6964_v24, %s6216_s9 }
0x20b6   :  { %3414 = vrot.lane.b32.xlu1 %v6968_v32, %s6215_s26 }
0x20ba   :  { %3624 = vrot.lane.b32.xlu1 %v6972_v36, %s6202_s14 }
0x20be   :  { %3834 = vrot.lane.b32.xlu1 %v6998_v18, %s6214_s24 }
0x20c2   :  { %4044 = vrot.lane.b32.xlu1 %v5271_v10, %s6212_s22  ;;  %v4265_v10 = vsub.s32 7, %v6492_v33 }
0x2121   :  { %v4146_v4 = vpop.xlane.xlu0 %4145 }
0x2122   :  { %v4148_v7 = vsub.f32 %v4138_v16, %v4146_v4  ;;  %v4143_v8 = vpop.xlane.xlu1 %4142 }
0x2123   :  { %v4147_v54 = vsub.f32 %v4133_v17, %v4143_v8 }
0x2124   :  { %v4151_v15 = vmul.f32 1.442695, %v4148_v7 }
0x2125   :  { %v4149_v25 = vmul.f32 1.442695, %v4147_v54  ;;  %v5753_v54 = vld [vmem:[#allocation18] sm:$0xff]  }
0x2126   :  { %v5670_v3 = vpop.permute.xlu1 %5669  ;;  %5307 = vmatpush3.bf16.msra.mxu0 %v5753_v54 }
0x2127   :  { %5893 = vpow2.f32 %v4149_v25  ;;  %v5672_v24 = vunpack.i.h.bf16 %v5670_v3  ;;  %v5671_v20 = vunpack.i.l.bf16 %v5670_v3  ;;  %5308 = vmatprep.subr.bf16.mxu0 %v6209_v0 }
0x2128   :  { %5895 = vpow2.f32 %v4151_v15 }
0x2129   :  { %v5502_v32 = vpack.c.bf16 %v5672_v24, %v5671_v20 }
0x212a   :  { %v2995_v21 = vpop.permute.xlu1 %2994 }
0x212b   :  { %2999 = vst.msk [vmem:[#allocation2 + $0x8] sm:$0xff] %vm963_vm3, %v2995_v21  ;;  %5503 = vmatprep.subr.bf16.mxu1 %v5502_v32 }
0x212c   :  { %5505 = vmatpush3.bf16.msra.mxu1 %v5502_v32 }
0x212d   :  { %5286 = vmatprep.subr.bf16.mxu1 %v6209_v0 }
0x212e   :  { %v3203_v36 = vpop.permute.xlu1 %3202 }
0x2131   :  { %v5894_v18 = vpop.eup %5893 }
0x2132   :  { %v3205_v23 = vpop.permute.xlu1 %3204  ;;  %v4153_v22 = vsel %vm560_vm1, %v5894_v18, 0.0  ;;  %v5896_v59 = vpop.eup %5895 }
0x2133   :  { %3209 = vst.msk [vmem:[#allocation2 + $0x8] sm:$0xff] %vm1174_vm4, %v3205_v23  ;;  %4154 = vadd.xlane.f32.xlu0 %v4153_v22  ;;  %v4156_v39 = vsel %vm560_vm1, %v5896_v59, 0.0  ;;  %v5757_v23 = vld [vmem:[#allocation18 + $0x20] sm:$0xff]   ;;  %v5758_v22 = vld [vmem:[#allocation18 + $0x28] sm:$0xff]  }
0x2136   :  { %v3415_v48 = vpop.permute.xlu1 %3414 }
0x2137   :  { %3419 = vst.msk [vmem:[#allocation2 + $0x8] sm:$0xff] %vm1385_vm5, %v3415_v48  ;;  %4157 = vadd.xlane.f32.xlu0 %v4156_v39  ;;  %v5760_v48 = vld [vmem:[#allocation18 + $0x38] sm:$0xff]   ;;  %v5761_v39 = vld [vmem:[#allocation20] sm:$0xff]  }
0x213a   :  { %v3625_v40 = vpop.permute.xlu1 %3624 }
0x213b   :  { %3629 = vst.msk [vmem:[#allocation2 + $0x8] sm:$0xff] %vm1596_vm6, %v3625_v40  ;;  %v5762_v40 = vld [vmem:[#allocation20 + $0x8] sm:$0xff]  }
0x213e   :  { %v3835_v41 = vpop.permute.xlu1 %3834 }
0x213f   :  { %3839 = vst.msk [vmem:[#allocation2 + $0x8] sm:$0xff] %vm1807_vm7, %v3835_v41  ;;  %v5763_v41 = vld [vmem:[#allocation20 + $0x10] sm:$0xff]  }
0x2142   :  { %v4045_v42 = vpop.permute.xlu1 %4044 }
0x2143   :  { %4049 = vst.msk [vmem:[#allocation2 + $0x8] sm:$0xff] %vm2018_vm8, %v4045_v42  ;;  %v5764_v42 = vld [vmem:[#allocation20 + $0x18] sm:$0xff]  }
0x214d   :  { %2992 = vrot.lane.b32.xlu0 %v6908_v45, %s6217_s23 }
0x2151   :  { %3412 = vrot.lane.b32.xlu0 %v6970_v13, %s6215_s26 }
0x2155   :  { %3622 = vrot.lane.b32.xlu0 %v6974_v38, %s6202_s14 }
0x2159   :  { %3832 = vrot.lane.b32.xlu0 %v7000_v19, %s6214_s24 }
0x215d   :  { %4042 = vrot.lane.b32.xlu0 %v4031_v11, %s6212_s22  ;;  %v5912_v11 = vld [vmem:[%s7151_s11] sm:$0xff] }
0x215e   :  { %v4266_v12 = vrot.slane %v5912_v11, %v4265_v10 }
0x21c0   :  { %v4155_v49 = vpop.xlane.xlu0 %4154 }
0x21c1   :  { %5897 = vrcp.f32 %v4155_v49  ;;  %v5765_v49 = vld [vmem:[#allocation20 + $0x20] sm:$0xff]  }
0x21c4   :  { %v4158_v43 = vpop.xlane.xlu0 %4157 }
0x21c5   :  { %5899 = vrcp.f32 %v4158_v43  ;;  %v5766_v43 = vld [vmem:[#allocation20 + $0x28] sm:$0xff]  }
0x21c8   :  { %v2993_v53 = vpop.permute.xlu0 %2992 }
0x21c9   :  { %2998 = vst.msk [vmem:[#allocation2] sm:$0xff] %vm963_vm3, %v2993_v53 }
0x21ca   :  { %3208 = vst.msk [vmem:[#allocation2] sm:$0xff] %vm1174_vm4, %v3203_v36 }
0x21cb   :  { %v5898_v45 = vpop.eup %5897 }
0x21cc   :  { %v3413_v55 = vpop.permute.xlu0 %3412  ;;  %v4161_v13 = vmul.f32 %v5898_v45, %v5894_v18  ;;  %v5756_v18 = vld [vmem:[#allocation18 + $0x18] sm:$0xff]  }
0x21cd   :  { %3418 = vst.msk [vmem:[#allocation2] sm:$0xff] %vm1385_vm5, %v3413_v55 }
0x21ce   :  { %5283 = vmatprep.mubr.msk.f32.mxu1 %vm560_vm1, %v4161_v13 }
0x21cf   :  { %v5900_v38 = vpop.eup %5899 }
0x21d0   :  { %v4162_v19 = vmul.f32 %v5900_v38, %v5896_v59  ;;  %v3623_v1 = vpop.permute.xlu0 %3622  ;;  %v5759_v59 = vld [vmem:[#allocation18 + $0x30] sm:$0xff]  }
0x21d1   :  { %3628 = vst.msk [vmem:[#allocation2] sm:$0xff] %vm1596_vm6, %v3623_v1  ;;  %v5913_v1 = vld [vmem:[%s7151_s11 + $0x8] sm:$0xff]  ;;  %s6218_s11 = smov [#allocation21]  }
0x21d2   :  { %5284 = vmatmul.mubr.msk.f32.vlgmr.msra.gmra.mrb[32].mxu1 %vm560_vm1, %v4162_v19  ;;  %s4627_s17 = sshll.u32 %s6218_s11, 4  ;;  %s4628_s17 = int_to_ptr.vmem [resolvable:$true] %s4627_s17 }
0x21d3   :  { %5302 = vmatprep.mubr.msk.bf16.mxu1 %vm6211_vm0, %v6209_v0  ;;  %5287 = vmatpush3.bf16.msra.mxu1 %v5745_v60  ;;  %v4389_v60 = vrot.slane %v5913_v1, %v2586_v51  ;;  %s6156_s5 = scalar_lea.vmem %s4628_s17, 256  ;;  %p6161_p5 = scmp.lt.s32.totalorder %s4628_s17, %s4628_s17 }
0x21d4   :  { %v3833_v58 = vpop.permute.xlu0 %3832  ;;  %5288 = vmatprep.subr.bf16.mxu1 %v6209_v0  ;;  %p6157_p4 = scmp.ne.s32.totalorder %s4628_s17, %s6156_s5  ;;  %p6162_p6 = scmp.lt.s32.totalorder %s6156_s5, %s6156_s5 }
0x21d5   :  { %3838 = vst.msk [vmem:[#allocation2] sm:$0xff] %vm1807_vm7, %v3833_v58  ;;  %v4383_v58 = vrot.slane %v5913_v1, %v2580_v37  ;;  %v4396_v37 = vrot.slane %v5913_v1, %v333_v35 }
0x21d6   :  { %p6163_p7 = por %p6162_p6, %p6161_p5 }
0x21d7   :  { %5289 = vmatpush3.bf16.msra.mxu1 %v5746_v26 }
0x21d8   :  { %v4043_v62 = vpop.permute.xlu0 %4042  ;;  %5290 = vmatprep.subr.bf16.mxu1 %v6209_v0  ;;  %p6164_p8 = pnand %p6163_p7, %p6157_p4 }
0x21d9   :  { %4048 = vst.msk [vmem:[#allocation2] sm:$0xff] %vm2018_vm8, %v4043_v62 }
0x21db   :  { %5291 = vmatpush3.bf16.msra.mxu1 %v5747_v6 }
0x21dc   :  { %5292 = vmatprep.subr.bf16.mxu1 %v6209_v0 }
0x21df   :  { %5293 = vmatpush3.bf16.msra.mxu1 %v5748_v30 }
0x21e0   :  { %5294 = vmatprep.subr.bf16.mxu1 %v6209_v0 }
0x21e3   :  { %5295 = vmatpush3.bf16.msra.mxu1 %v5749_v56 }
0x21e4   :  { %5296 = vmatprep.subr.bf16.mxu1 %v6209_v0 }
0x21e7   :  { %5297 = vmatpush3.bf16.msra.mxu1 %v5750_v29 }
0x21e8   :  { %5298 = vmatprep.subr.bf16.mxu1 %v6209_v0 }
0x21eb   :  { %5299 = vmatpush3.bf16.msra.mxu1 %v5751_v57 }
0x21ec   :  { %5300 = vmatprep.subr.bf16.mxu1 %v6209_v0 }
0x21ef   :  { %5301 = vmatpush3.bf16.msra.mxu1 %v5752_v28 }
0x21f0   :  { %5326 = vmatprep.subr.bf16.mxu1 %v6209_v0 }
0x22a5   :  { %v5285_v61 = vpop.f32.mrb[32].mxu1 }
0x22a6   :  { %4254 = vrot.lane.b32.xlu1 %v5285_v61, %s6213_s25  ;;  %v4241_v14 = vpop.f32.mrb[33].mxu1 }
0x22a7   :  { %4252 = vrot.lane.b32.xlu0 %v4241_v14, %s6213_s25  ;;  %v5767_v14 = vld [vmem:[#allocation20 + $0x30] sm:$0xff]  }
0x2318   :  { %v4255_v63 = vpop.permute.xlu1 %4254 }
0x2319   :  { %4259 = vst.msk [vmem:[#allocation2 + $0x8] sm:$0xff] %vm2229_vm9, %v4255_v63  ;;  %v4253_v2 = vpop.permute.xlu0 %4252  ;;  %v5768_v63 = vld [vmem:[#allocation20 + $0x38] sm:$0xff]  }
0x231a   :  { %4258 = vst.msk [vmem:[#allocation2] sm:$0xff] %vm2229_vm9, %v4253_v2 }
0x2320   :  { %v4261_v5 = vld [vmem:[#allocation2 + $0x8] sm:$0xff] }
0x2321   :  { %v4260_v9 = vld [vmem:[#allocation2] sm:$0xff] }
0x2322   :  { %v4262_v44 = vpack.c.bf16 %v4261_v5, %v4260_v9 }
0x2324   :  { %5303 = vmatmul.mubr.bf16.vlgmr.msra.gmra.mrb[36].mxu1 %v4262_v44 }
0x2325   :  { %5342 = vmatprep.mubr.msk.bf16.mxu1 %vm6211_vm0, %v6209_v0  ;;  %5327 = vmatpush3.bf16.msra.mxu1 %v5761_v39  ;;  %v4617_v39 = vrot.slane %v5913_v1, %v4265_v10 }
0x2326   :  { %5328 = vmatprep.subr.bf16.mxu1 %v6209_v0 }
0x2329   :  { %5329 = vmatpush3.bf16.msra.mxu1 %v5762_v40 }
0x232a   :  { %5330 = vmatprep.subr.bf16.mxu1 %v6209_v0 }
0x232d   :  { %5331 = vmatpush3.bf16.msra.mxu1 %v5763_v41 }
0x232e   :  { %5332 = vmatprep.subr.bf16.mxu1 %v6209_v0 }
0x2331   :  { %5333 = vmatpush3.bf16.msra.mxu1 %v5764_v42 }
0x2332   :  { %5334 = vmatprep.subr.bf16.mxu1 %v6209_v0 }
0x2335   :  { %5335 = vmatpush3.bf16.msra.mxu1 %v5765_v49 }
0x2336   :  { %5336 = vmatprep.subr.bf16.mxu1 %v6209_v0 }
0x2339   :  { %5337 = vmatpush3.bf16.msra.mxu1 %v5766_v43 }
0x233a   :  { %5338 = vmatprep.subr.bf16.mxu1 %v6209_v0 }
0x233d   :  { %5339 = vmatpush3.bf16.msra.mxu1 %v5767_v14 }
0x233e   :  { %5340 = vmatprep.subr.bf16.mxu1 %v6209_v0 }
0x2341   :  { %5341 = vmatpush3.bf16.msra.mxu1 %v5768_v63 }
0x23f7   :  { %v4349_v16 = vpop.f32.mrb[36].mxu1 }
0x23f8   :  { %v4350_v27 = vadd.f32 %v4349_v16, %v4266_v12  ;;  %v5304_v17 = vpop.f32.mrb[37].mxu1 }
0x23f9   :  { %v4352_v52 = vpop.f32.mrb[38].mxu1  ;;  %v4583_v17 = vrot.slane %v5913_v1, %v550_v34 }
0x23fa   :  { %v4356_v31 = vadd.f32 %v4350_v27, %v6800_v46  ;;  %v4353_v4 = vadd.f32 %v4352_v52, %v4266_v12  ;;  %v5305_v7 = vpop.f32.mrb[39].mxu1  ;;  %v5754_v46 = vld [vmem:[#allocation18 + $0x8] sm:$0xff]  }
0x23fb   :  { %5309 = vmatpush3.bf16.msra.mxu0 %v5754_v46 }
0x23fc   :  { %v4357_v8 = vadd.f32 %v4353_v4, %v6802_v47  ;;  %4358 = vadd.xlane.f32.xlu0 %v4356_v31  ;;  %5310 = vmatprep.subr.bf16.mxu0 %v6209_v0  ;;  %v5755_v47 = vld [vmem:[#allocation18 + $0x10] sm:$0xff]  }
0x23fe   :  { %4360 = vadd.xlane.f32.xlu1 %v4357_v8 }
0x23ff   :  { %5311 = vmatpush3.bf16.msra.mxu0 %v5755_v47 }
0x2400   :  { %5312 = vmatprep.subr.bf16.mxu0 %v6209_v0 }
0x2403   :  { %5313 = vmatpush3.bf16.msra.mxu0 %v5756_v18 }
0x2404   :  { %5314 = vmatprep.subr.bf16.mxu0 %v6209_v0 }
0x2407   :  { %5315 = vmatpush3.bf16.msra.mxu0 %v5757_v23 }
0x2408   :  { %5316 = vmatprep.subr.bf16.mxu0 %v6209_v0 }
0x240b   :  { %5317 = vmatpush3.bf16.msra.mxu0 %v5758_v22 }
0x240c   :  { %5318 = vmatprep.subr.bf16.mxu0 %v6209_v0 }
0x240f   :  { %5319 = vmatpush3.bf16.msra.mxu0 %v5759_v59  ;;  %v4611_v59 = vrot.slane %v5913_v1, %v2592_v50 }
0x2410   :  { %5320 = vmatprep.subr.bf16.mxu0 %v6209_v0 }
0x2413   :  { %5321 = vmatpush3.bf16.msra.mxu0 %v5760_v48 }
0x2489   :  { %v4359_v15 = vpop.xlane.xlu0 %4358 }
0x248a   :  { %v4362_v25 = vmul.f32 0.0078125, %v4359_v15 }
0x248b   :  { %v4361_v3 = vpop.xlane.xlu1 %4360 }
0x248c   :  { %v4364_v24 = vsub.f32 %v4356_v31, %v4362_v25  ;;  %v4363_v20 = vmul.f32 0.0078125, %v4361_v3 }
0x248e   :  { %v4365_v32 = vsub.f32 %v4357_v8, %v4363_v20  ;;  %v4366_v21 = vmul.f32 %v4364_v24, %v4364_v24 }
0x2490   :  { %4368 = vadd.xlane.f32.xlu0 %v4366_v21  ;;  %v4367_v36 = vmul.f32 %v4365_v32, %v4365_v32 }
0x2494   :  { %4370 = vadd.xlane.f32.xlu0 %v4367_v36 }
0x251d   :  { %v4369_v53 = vpop.xlane.xlu0 %4368 }
0x251e   :  { %v4372_v45 = vmul.f32 0.0078125, %v4369_v53 }
0x2520   :  { %v4374_v55 = vadd.f32 1e-05, %v4372_v45 }
0x2521   :  { %v4371_v13 = vpop.xlane.xlu0 %4370 }
0x2522   :  { %5901 = vrsqrt.f32 %v4374_v55  ;;  %v4373_v38 = vmul.f32 0.0078125, %v4371_v13 }
0x2524   :  { %v4375_v19 = vadd.f32 1e-05, %v4373_v38 }
0x2526   :  { %5903 = vrsqrt.f32 %v4375_v19 }
0x252c   :  { %v5902_v62 = vpop.eup %5901 }
0x252d   :  { %v4378_v26 = vmul.f32 %v5902_v62, %v4364_v24 }
0x252f   :  { %v4384_v6 = vmul.f32 %v4383_v58, %v4378_v26 }
0x2530   :  { %v5904_v30 = vpop.eup %5903 }
0x2531   :  { %v4379_v56 = vmul.f32 %v5904_v30, %v4365_v32  ;;  %v4390_v29 = vadd.f32 %v4389_v60, %v4384_v6 }
0x2533   :  { %v4385_v57 = vmul.f32 %v4383_v58, %v4379_v56 }
0x2535   :  { %v4391_v28 = vadd.f32 %v4389_v60, %v4385_v57 }
0x2537   :  { %v4392_v61 = vpack.c.bf16 %v4391_v28, %v4390_v29 }
0x2539   :  { %5323 = vmatmul.mubr.bf16.vlgmr.msra.gmra.mrb[52].mxu0 %v4392_v61 }
0x260c   :  { %v4479_v2 = vpop.f32.mrb[52].mxu0 }
0x260d   :  { %v4480_v51 = vadd.f32 %v4479_v2, %v4396_v37  ;;  %v5324_v5 = vpop.f32.mrb[53].mxu0 }
0x260e   :  { %v4482_v9 = vpop.f32.mrb[54].mxu0 }
0x260f   :  { %v4483_v44 = vadd.f32 %v4482_v9, %v4396_v37  ;;  %v5325_v11 = vpop.f32.mrb[55].mxu0  ;;  %v4486_v12 = vmax.f32 %v4480_v51, 0.0 }
0x2611   :  { %v4487_v16 = vmax.f32 %v4483_v44, 0.0 }
0x2613   :  { %v4488_v27 = vpack.c.bf16 %v4487_v16, %v4486_v12 }
0x2615   :  { %5343 = vmatmul.mubr.bf16.vlgmr.msra.gmra.mrb[40].mxu1 %v4488_v27 }
0x26e8   :  { %v4571_v52 = vpop.f32.mrb[40].mxu1 }
0x26e9   :  { %v4578_v0 = vadd.f32 %v4571_v52, %v4390_v29  ;;  %v5344_v31 = vpop.f32.mrb[41].mxu1 }
0x26ea   :  { %v4574_v4 = vpop.f32.mrb[42].mxu1 }
0x26eb   :  { %v4584_v7 = vadd.f32 %v4583_v17, %v4578_v0  ;;  %v4579_v8 = vadd.f32 %v4574_v4, %v4391_v28  ;;  %v5345_v35 = vpop.f32.mrb[43].mxu1 }
0x26ed   :  { %v4585_v54 = vadd.f32 %v4583_v17, %v4579_v8  ;;  %4586 = vadd.xlane.f32.xlu0 %v4584_v7 }
0x26ef   :  { %4588 = vadd.xlane.f32.xlu1 %v4585_v54 }
0x277a   :  { %v4587_v15 = vpop.xlane.xlu0 %4586 }
0x277b   :  { %v4590_v25 = vmul.f32 0.0078125, %v4587_v15 }
0x277c   :  { %v4589_v3 = vpop.xlane.xlu1 %4588 }
0x277d   :  { %v4592_v24 = vsub.f32 %v4584_v7, %v4590_v25  ;;  %v4591_v20 = vmul.f32 0.0078125, %v4589_v3 }
0x277f   :  { %v4593_v32 = vsub.f32 %v4585_v54, %v4591_v20  ;;  %v4594_v21 = vmul.f32 %v4592_v24, %v4592_v24 }
0x2781   :  { %4596 = vadd.xlane.f32.xlu0 %v4594_v21  ;;  %v4595_v36 = vmul.f32 %v4593_v32, %v4593_v32 }
0x2783   :  { %4598 = vadd.xlane.f32.xlu1 %v4595_v36 }
0x280e   :  { %v4597_v34 = vpop.xlane.xlu0 %4596 }
0x280f   :  { %v4600_v46 = vmul.f32 0.0078125, %v4597_v34 }
0x2810   :  { %v4599_v47 = vpop.xlane.xlu1 %4598 }
0x2811   :  { %v4602_v18 = vadd.f32 1e-05, %v4600_v46  ;;  %v4601_v23 = vmul.f32 0.0078125, %v4599_v47 }
0x2813   :  { %5905 = vrsqrt.f32 %v4602_v18  ;;  %v4603_v22 = vadd.f32 1e-05, %v4601_v23 }
0x2815   :  { %5907 = vrsqrt.f32 %v4603_v22 }
0x281d   :  { %v5906_v48 = vpop.eup %5905 }
0x281e   :  { %v4606_v40 = vmul.f32 %v5906_v48, %v4592_v24 }
0x281f   :  { %v5908_v41 = vpop.eup %5907 }
0x2820   :  { %v4607_v42 = vmul.f32 %v5908_v41, %v4593_v32  ;;  %v4612_v49 = vmul.f32 %v4611_v59, %v4606_v40 }
0x2822   :  { %v4613_v43 = vmul.f32 %v4611_v59, %v4607_v42  ;;  %v4618_v53 = vadd.f32 %v4617_v39, %v4612_v49 }
0x2824   :  { %v4619_v45 = vadd.f32 %v4617_v39, %v4613_v43  ;;  %4620 = vst [vmem:[#allocation21] sm:$0xff] %v4618_v53 }
0x2826   :  { %4621 = vst [vmem:[#allocation21 + $0x8] sm:$0xff] %v4619_v45 }
0x2827   :  { %6167 = shalt.err (!%p6164_p8)
}
0x2828   :  { %s6168_s0 = scalar_lea.hbm %s7152_s12, 256 }
0x2829   :  { %p6169_p9 = scmp.ne.s32.totalorder %s7152_s12, %s6168_s0  ;;  %p6172_p10 = scmp.lt.u32.totalorder %s6168_s0, %s7152_s12 }
0x282b   :  { %p6174_p11 = pnand %p6172_p10, %p6169_p9 }
0x282d   :  { %6177 = shalt.err (!%p6174_p11)
}
0x282e   :  { %4633 = dma.vmem_to_hbm [thread:$0]  %s4628_s17, 256, %s7152_s12, [#allocation5], %s6194_s15, %s6194_s15, %s6195_s16  }
0x282f   :  { %6190 = dma.done.wait [#allocation5], 256  }
0x2830   :  { %6191 = vsyncadd [#allocation5], 4294967040 }
0x2831   :  { %4637 = vsyncpa [#allocation4], 1 }
0x2832   :  { %4638 = vsyncpa [#allocation7], 1 }
0x2833   :  { %4639 = vsyncpa [#allocation10], 1 }
0x2834   :  { %4640 = vsyncpa [#allocation13], 1 }
0x2835   :  { %4641 = vsyncpa [#allocation16], 1 }
0x2836   :  { %4642 = vsyncpa [#allocation19], 1 }
0x2837   :  { %4643 = vsyncpa [#allocation5], 1 }

</bundles_post_ra>
